<compile_context>
chip_gen: v7x
topology: tpu7x:2x2x1
jax: 0.10.0
libtpu: 0.0.40
codegen_flags: <defaults>
</compile_context>

<pallas_src>
import jax
import jax.numpy as jnp
from jax.experimental import pallas as pl
from jax.experimental.pallas import tpu as pltpu

LN_EPS = 1e-5  # torch.nn.LayerNorm default


# ----------------------------------------------------------------------------
# Packed-parameter layout (shared by the packer and the kernel factory)
# ----------------------------------------------------------------------------
def _wslab_layout(n_layers, d, d_ff, proj_cols):
    """Column offsets of every (d, *) weight inside the packed weight slab."""
    per_layer = []
    c = 0
    for _ in range(n_layers):
        offs = {}
        for name, width in (("sa_wqkv", 3 * d), ("sa_wo", d), ("ca_wq", d),
                            ("ca_wkv", 2 * d), ("ca_wo", d), ("w1", d_ff)):
            offs[name] = (c, c + width)
            c += width
        per_layer.append(offs)
    proj = (c, c + proj_cols)
    c += proj_cols
    return per_layer, proj, c


def pack_params(params, d_model, d_ff, c_out, proj_cols):
    """Pack per-layer dicts into a handful of slabs (done once, outside jit)."""
    n_layers = len(params["layers"])
    layer_off, proj_off, total_cols = _wslab_layout(
        n_layers, d_model, d_ff, proj_cols)

    # --- all weights whose input dim is d_model, concatenated along columns ---
    w_slab = jnp.zeros((d_model, total_cols), jnp.float32)
    for li, lp in enumerate(params["layers"]):
        for name in ("sa_wqkv", "sa_wo", "ca_wq", "ca_wkv", "ca_wo", "w1"):
            c0, c1 = layer_off[li][name]
            w_slab = w_slab.at[:, c0:c1].set(lp[name])
    p0, _ = proj_off
    w_slab = w_slab.at[:, p0:p0 + c_out].set(params["proj_w"])

    # --- second FFN weight (input dim d_ff) ---
    w2_slab = jnp.concatenate([lp["w2"] for lp in params["layers"]], axis=1)

    # --- wide biases (qkv bias, kv bias, ffn bias), zero-padded rows ---
    wide = max(3 * d_model, 2 * d_model, d_ff)
    bw_rows = []
    for lp in params["layers"]:
        for name, width in (("sa_bqkv", 3 * d_model),
                            ("ca_bkv", 2 * d_model),
                            ("b1", d_ff)):
            row = jnp.zeros((1, wide), jnp.float32)
            bw_rows.append(row.at[:, :width].set(lp[name]))
    bias_wide = jnp.concatenate(bw_rows, axis=0)

    # --- width-D biases and LayerNorm gains/shifts: 10 rows/layer + 2 final ---
    bd_rows = []
    for lp in params["layers"]:
        for name in ("sa_bo", "ca_bq", "ca_bo", "b2",
                     "norm1_g", "norm1_b", "norm2_g", "norm2_b",
                     "norm3_g", "norm3_b"):
            bd_rows.append(lp[name].reshape(1, d_model))
    bd_rows.append(params["norm_g"].reshape(1, d_model))
    bd_rows.append(params["norm_b"].reshape(1, d_model))
    bias_d = jnp.concatenate(bd_rows, axis=0)

    proj_b = jnp.zeros((1, proj_cols), jnp.float32)
    proj_b = proj_b.at[:, :c_out].set(params["proj_b"])

    return dict(w_slab=w_slab.astype(jnp.bfloat16),
                w2_slab=w2_slab.astype(jnp.bfloat16),
                bias_d=bias_d, bias_wide=bias_wide, proj_b=proj_b)


# ----------------------------------------------------------------------------
# Fused decoder kernel (whole forward pass, all batches, one pallas_call)
# ----------------------------------------------------------------------------
def _make_decoder_kernel(n_layers, n_heads, d_model, d_ff, B, L, S, proj_cols):
    d_head = d_model // n_heads
    scale = 1.0 / (d_head ** 0.5)
    layer_off, proj_off, _ = _wslab_layout(n_layers, d_model, d_ff, proj_cols)

    def layernorm(z, g, b):
        # torch.nn.LayerNorm (biased variance) over the last dim, f32 math.
        mu = jnp.mean(z, axis=-1, keepdims=True)
        zc = z - mu                                   # centered once, reused
        var = jnp.mean(zc * zc, axis=-1, keepdims=True)
        return zc * jax.lax.rsqrt(var + LN_EPS) * g + b

    def mm(a, w):
        # bf16 MXU matmul with f32 accumulation; weight slabs are already bf16.
        return jnp.dot(a.astype(jnp.bfloat16), w,
                       preferred_element_type=jnp.float32)

    def mha(q2, k2, v2, wo, bo, s_len):
        """Multi-head attention over all batches.

        q2: (B*L, D), k2/v2: (B*s_len, D) f32 -> (B*L, D) f32.
        Heads are concatenated so the output projection is a single
        (B*L, D) @ (D, D) matmul (K = D, not K = d_head).
        """
        q3 = q2.reshape(B, L, d_model).astype(jnp.bfloat16)
        k3 = k2.reshape(B, s_len, d_model).astype(jnp.bfloat16)
        v3 = v2.reshape(B, s_len, d_model).astype(jnp.bfloat16)
        heads = []
        for h in range(n_heads):                      # small, static unroll
            lo = h * d_head
            qh = q3[:, :, lo:lo + d_head]
            kh = k3[:, :, lo:lo + d_head]
            vh = v3[:, :, lo:lo + d_head]
            sc = jnp.einsum("bld,bsd->bls", qh, kh,
                            preferred_element_type=jnp.float32) * scale
            sc = sc - jnp.max(sc, axis=-1, keepdims=True)
            p = jnp.exp(sc)
            p = p * pl.reciprocal(jnp.sum(p, axis=-1, keepdims=True),
                                  approx=True)        # divide on the EUP slot
            oh = jnp.einsum("bls,bsd->bld", p.astype(jnp.bfloat16), vh,
                            preferred_element_type=jnp.float32)
            heads.append(oh.reshape(B * L, d_head))
        o = jnp.concatenate(heads, axis=-1)           # (B*L, D)
        return mm(o, wo) + bo

    def kernel(x_ref, cross_ref, w_ref, w2_ref, bd_ref, bw_ref, pb_ref,
               out_ref):
        d = d_model
        x = x_ref[...].reshape(B * L, d)              # all batches at once
        cr = cross_ref[...].reshape(B * S, d)

        for li in range(n_layers):                    # static unroll
            off = layer_off[li]
            wcol = lambda name: w_ref[:, off[name][0]:off[name][1]]
            bd = lambda r: bd_ref[10 * li + r:10 * li + r + 1, :]
            bw = lambda r, width: bw_ref[3 * li + r:3 * li + r + 1, :width]

            # ---- self attention: fused QKV projection ----
            qkv = mm(x, wcol("sa_wqkv")) + bw(0, 3 * d)
            sa = mha(qkv[:, :d], qkv[:, d:2 * d], qkv[:, 2 * d:],
                     wcol("sa_wo"), bd(0), L)
            x = layernorm(x + sa, bd(4), bd(5))

            # ---- cross attention: fused KV projection over the encoder ----
            q = mm(x, wcol("ca_wq")) + bd(1)
            kv = mm(cr, wcol("ca_wkv")) + bw(1, 2 * d)
            ca = mha(q, kv[:, :d], kv[:, d:], wcol("ca_wo"), bd(2), S)
            x = layernorm(x + ca, bd(6), bd(7))

            # ---- FFN: Conv1d(k=1) -> ReLU -> Conv1d(k=1) == per-token MLP ----
            h = jnp.maximum(mm(x, wcol("w1")) + bw(2, d_ff), 0.0)
            y = mm(h, w2_ref[:, li * d:(li + 1) * d]) + bd(3)
            x = layernorm(x + y, bd(8), bd(9))

        # ---- final LayerNorm + lane-padded projection ----
        x = layernorm(x,
                      bd_ref[10 * n_layers:10 * n_layers + 1, :],
                      bd_ref[10 * n_layers + 1:10 * n_layers + 2, :])
        p0, p1 = proj_off
        out = mm(x, w_ref[:, p0:p1]) + pb_ref[...]    # (B*L, proj_cols)
        out_ref[...] = out.astype(out_ref.dtype)      # unmasked lane-dense vst

    return kernel


def decoder_forward(x, cross, packed, n_layers, n_heads,
                    d_model, d_ff, c_out):
    """Full Decoder forward in a single (grid-less) pallas_call."""
    B, L, _ = x.shape
    S = cross.shape[1]
    proj_cols = packed["proj_b"].shape[1]

    kernel = _make_decoder_kernel(n_layers, n_heads, d_model, d_ff,
                                  B, L, S, proj_cols)
    vmem = pl.BlockSpec(memory_space=pltpu.MemorySpace.VMEM)

    out_padded = pl.pallas_call(
        kernel,
        out_shape=jax.ShapeDtypeStruct((B * L, proj_cols), jnp.float32),
        in_specs=[vmem] * 7,
        out_specs=vmem,
        compiler_params=pltpu.CompilerParams(
            vmem_limit_bytes=32 * 1024 * 1024),
    )(x, cross, packed["w_slab"], packed["w2_slab"],
      packed["bias_d"], packed["bias_wide"], packed["proj_b"])

    # Strip lane padding and restore (B, L, c_out).
    return out_padded[:, :c_out].reshape(B, L, c_out)


# ----------------------------------------------------------------------------
# Deterministic parameter init (fused QKV / KV weight layout, f32 masters)
# ----------------------------------------------------------------------------
def init_params(key, d_model, d_ff, c_out, n_layers):
    keys = iter(jax.random.split(key, 256))

    def lin(din, dout):
        w = jax.random.normal(next(keys), (din, dout), jnp.float32) / (din ** 0.5)
        b = 0.01 * jax.random.normal(next(keys), (1, dout), jnp.float32)
        return w, b

    layers = []
    for _ in range(n_layers):
        sa_wqkv, sa_bqkv = lin(d_model, 3 * d_model)
        sa_wo, sa_bo = lin(d_model, d_model)
        ca_wq, ca_bq = lin(d_model, d_model)
        ca_wkv, ca_bkv = lin(d_model, 2 * d_model)
        ca_wo, ca_bo = lin(d_model, d_model)
        w1, b1 = lin(d_model, d_ff)
        w2, b2 = lin(d_ff, d_model)
        layers.append(dict(
            sa_wqkv=sa_wqkv, sa_bqkv=sa_bqkv, sa_wo=sa_wo, sa_bo=sa_bo,
            ca_wq=ca_wq, ca_bq=ca_bq, ca_wkv=ca_wkv, ca_bkv=ca_bkv,
            ca_wo=ca_wo, ca_bo=ca_bo,
            w1=w1, b1=b1, w2=w2, b2=b2,
            norm1_g=jnp.ones((1, d_model), jnp.float32),
            norm1_b=jnp.zeros((1, d_model), jnp.float32),
            norm2_g=jnp.ones((1, d_model), jnp.float32),
            norm2_b=jnp.zeros((1, d_model), jnp.float32),
            norm3_g=jnp.ones((1, d_model), jnp.float32),
            norm3_b=jnp.zeros((1, d_model), jnp.float32),
        ))
    proj_w, proj_b = lin(d_model, c_out)
    return dict(layers=layers,
                norm_g=jnp.ones((1, d_model), jnp.float32),
                norm_b=jnp.zeros((1, d_model), jnp.float32),
                proj_w=proj_w, proj_b=proj_b)


# ----------------------------------------------------------------------------
if __name__ == "__main__":
    B, L, S = 2, 8, 8          # batch, target seq len, cross (encoder) seq len
    D_MODEL, N_HEADS = 32, 4
    D_FF, C_OUT, N_LAYERS = 64, 4, 2

    key = jax.random.PRNGKey(0)
    kx, kc, kp = jax.random.split(key, 3)
    x = jax.random.normal(kx, (B, L, D_MODEL), jnp.float32)
    cross = jax.random.normal(kc, (B, S, D_MODEL), jnp.float32)
    params = init_params(kp, D_MODEL, D_FF, C_OUT, N_LAYERS)
    packed = pack_params(params, D_MODEL, D_FF, C_OUT, proj_cols=128)

    fwd = jax.jit(lambda xx, cc: decoder_forward(
        xx, cc, packed, N_LAYERS, N_HEADS, D_MODEL, D_FF, C_OUT))
    out = fwd(x, cross)
    jax.block_until_ready(out)

    assert out.shape == (B, L, C_OUT), out.shape
    assert bool(jnp.all(jnp.isfinite(out)))
    print("KERNEL_OK")
</pallas_src>

<mosaic_0001>
module attributes {stable_mosaic.version = 11 : i64} {
  func.func @kernel(%arg0: memref<2x8x32xf32, #tpu.memory_space<vmem>>, %arg1: memref<2x8x32xf32, #tpu.memory_space<vmem>>, %arg2: memref<32x768xbf16, #tpu.memory_space<vmem>>, %arg3: memref<64x64xbf16, #tpu.memory_space<vmem>>, %arg4: memref<22x32xf32, #tpu.memory_space<vmem>>, %arg5: memref<6x96xf32, #tpu.memory_space<vmem>>, %arg6: memref<1x128xf32, #tpu.memory_space<vmem>>, %arg7: memref<16x128xf32, #tpu.memory_space<vmem>>) attributes {dimension_semantics = [], scalar_prefetch = 0 : i64, scratch_operands = 0 : i64, tpu.core_type = #tpu.core_type<tc>} {
    %c0 = arith.constant 0 : index
    %c0_0 = arith.constant 0 : index
    %c0_1 = arith.constant 0 : index
    %0 = vector.load %arg0[%c0, %c0_0, %c0_1] : memref<2x8x32xf32, #tpu.memory_space<vmem>>, vector<2x8x32xf32>
    %1 = vector.shape_cast %0 : vector<2x8x32xf32> to vector<16x32xf32>
    %c0_2 = arith.constant 0 : index
    %c0_3 = arith.constant 0 : index
    %c0_4 = arith.constant 0 : index
    %2 = vector.load %arg1[%c0_2, %c0_3, %c0_4] : memref<2x8x32xf32, #tpu.memory_space<vmem>>, vector<2x8x32xf32>
    %3 = vector.shape_cast %2 : vector<2x8x32xf32> to vector<16x32xf32>
    %c0_5 = arith.constant 0 : index
    %c0_6 = arith.constant 0 : index
    %4 = vector.load %arg2[%c0_5, %c0_6] : memref<32x768xbf16, #tpu.memory_space<vmem>>, vector<32x96xbf16>
    %5 = arith.truncf %1 : vector<16x32xf32> to vector<16x32xbf16>
    %cst = arith.constant dense<0.000000e+00> : vector<16x96xf32>
    %6 = tpu.matmul %5, %4, %cst {dimension_numbers = #tpu.dot_dimension_numbers<[1], [0], [0], [1], [0, 0, 1, 1], [], []>} : vector<16x32xbf16>, vector<32x96xbf16>, vector<16x96xf32> -> vector<16x96xf32>
    %c0_7 = arith.constant 0 : index
    %c0_8 = arith.constant 0 : index
    %7 = vector.load %arg5[%c0_7, %c0_8] : memref<6x96xf32, #tpu.memory_space<vmem>>, vector<1x96xf32>
    %8 = vector.broadcast %7 : vector<1x96xf32> to vector<16x96xf32>
    %9 = arith.addf %6, %8 : vector<16x96xf32>
    %10 = vector.extract_strided_slice %9 {offsets = [0, 0], sizes = [16, 32], strides = [1, 1]} : vector<16x96xf32> to vector<16x32xf32>
    %11 = vector.extract_strided_slice %9 {offsets = [0, 32], sizes = [16, 32], strides = [1, 1]} : vector<16x96xf32> to vector<16x32xf32>
    %12 = vector.extract_strided_slice %9 {offsets = [0, 64], sizes = [16, 32], strides = [1, 1]} : vector<16x96xf32> to vector<16x32xf32>
    %c0_9 = arith.constant 0 : index
    %c96 = arith.constant 96 : index
    %13 = vector.load %arg2[%c0_9, %c96] : memref<32x768xbf16, #tpu.memory_space<vmem>>, vector<32x32xbf16>
    %c0_10 = arith.constant 0 : index
    %c0_11 = arith.constant 0 : index
    %14 = vector.load %arg4[%c0_10, %c0_11] : memref<22x32xf32, #tpu.memory_space<vmem>>, vector<1x32xf32>
    %15 = vector.shape_cast %10 : vector<16x32xf32> to vector<2x8x32xf32>
    %16 = arith.truncf %15 : vector<2x8x32xf32> to vector<2x8x32xbf16>
    %17 = vector.shape_cast %11 : vector<16x32xf32> to vector<2x8x32xf32>
    %18 = arith.truncf %17 : vector<2x8x32xf32> to vector<2x8x32xbf16>
    %19 = vector.shape_cast %12 : vector<16x32xf32> to vector<2x8x32xf32>
    %20 = arith.truncf %19 : vector<2x8x32xf32> to vector<2x8x32xbf16>
    %21 = vector.extract_strided_slice %16 {offsets = [0, 0, 0], sizes = [2, 8, 8], strides = [1, 1, 1]} : vector<2x8x32xbf16> to vector<2x8x8xbf16>
    %22 = vector.extract_strided_slice %18 {offsets = [0, 0, 0], sizes = [2, 8, 8], strides = [1, 1, 1]} : vector<2x8x32xbf16> to vector<2x8x8xbf16>
    %23 = vector.extract_strided_slice %20 {offsets = [0, 0, 0], sizes = [2, 8, 8], strides = [1, 1, 1]} : vector<2x8x32xbf16> to vector<2x8x8xbf16>
    "tpu.trace_start"() <{level = 10 : i32, message = "bld,bsd->bls"}> : () -> ()
    %cst_12 = arith.constant dense<0.000000e+00> : vector<2x8x8xf32>
    %24 = tpu.matmul %21, %22, %cst_12 {dimension_numbers = #tpu.dot_dimension_numbers<[2], [2], [1], [1], [0, 0, 0, 1, 1, 1], [0], [0]>} : vector<2x8x8xbf16>, vector<2x8x8xbf16>, vector<2x8x8xf32> -> vector<2x8x8xf32>
    "tpu.trace_stop"() : () -> ()
    %cst_13 = arith.constant 0.353553385 : f32
    %25 = vector.broadcast %cst_13 : f32 to vector<2x8x8xf32>
    %26 = arith.mulf %24, %25 : vector<2x8x8xf32>
    %cst_14 = arith.constant dense<0xFF800000> : vector<2x8xf32>
    %27 = vector.multi_reduction <maximumf>, %26, %cst_14 [2] : vector<2x8x8xf32> to vector<2x8xf32>
    %28 = vector.shape_cast %27 : vector<2x8xf32> to vector<2x8x1xf32>
    %29 = vector.broadcast %28 : vector<2x8x1xf32> to vector<2x8x8xf32>
    %30 = arith.subf %26, %29 : vector<2x8x8xf32>
    %31 = math.exp %30 : vector<2x8x8xf32>
    %cst_15 = arith.constant dense<0.000000e+00> : vector<2x8xf32>
    %32 = vector.multi_reduction <add>, %31, %cst_15 [2] : vector<2x8x8xf32> to vector<2x8xf32>
    %33 = vector.shape_cast %32 : vector<2x8xf32> to vector<2x8x1xf32>
    %34 = tpu.reciprocal %33 {approx = true} : vector<2x8x1xf32> -> vector<2x8x1xf32>
    %35 = vector.broadcast %34 : vector<2x8x1xf32> to vector<2x8x8xf32>
    %36 = arith.mulf %31, %35 : vector<2x8x8xf32>
    %37 = arith.truncf %36 : vector<2x8x8xf32> to vector<2x8x8xbf16>
    "tpu.trace_start"() <{level = 10 : i32, message = "bls,bsd->bld"}> : () -> ()
    %cst_16 = arith.constant dense<0.000000e+00> : vector<2x8x8xf32>
    %38 = tpu.matmul %37, %23, %cst_16 {dimension_numbers = #tpu.dot_dimension_numbers<[2], [1], [1], [2], [0, 0, 0, 1, 1, 2], [0], [0]>} : vector<2x8x8xbf16>, vector<2x8x8xbf16>, vector<2x8x8xf32> -> vector<2x8x8xf32>
    "tpu.trace_stop"() : () -> ()
    %39 = vector.shape_cast %38 : vector<2x8x8xf32> to vector<16x8xf32>
    %40 = vector.extract_strided_slice %16 {offsets = [0, 0, 8], sizes = [2, 8, 8], strides = [1, 1, 1]} : vector<2x8x32xbf16> to vector<2x8x8xbf16>
    %41 = vector.extract_strided_slice %18 {offsets = [0, 0, 8], sizes = [2, 8, 8], strides = [1, 1, 1]} : vector<2x8x32xbf16> to vector<2x8x8xbf16>
    %42 = vector.extract_strided_slice %20 {offsets = [0, 0, 8], sizes = [2, 8, 8], strides = [1, 1, 1]} : vector<2x8x32xbf16> to vector<2x8x8xbf16>
    "tpu.trace_start"() <{level = 10 : i32, message = "bld,bsd->bls"}> : () -> ()
    %cst_17 = arith.constant dense<0.000000e+00> : vector<2x8x8xf32>
    %43 = tpu.matmul %40, %41, %cst_17 {dimension_numbers = #tpu.dot_dimension_numbers<[2], [2], [1], [1], [0, 0, 0, 1, 1, 1], [0], [0]>} : vector<2x8x8xbf16>, vector<2x8x8xbf16>, vector<2x8x8xf32> -> vector<2x8x8xf32>
    "tpu.trace_stop"() : () -> ()
    %cst_18 = arith.constant 0.353553385 : f32
    %44 = vector.broadcast %cst_18 : f32 to vector<2x8x8xf32>
    %45 = arith.mulf %43, %44 : vector<2x8x8xf32>
    %cst_19 = arith.constant dense<0xFF800000> : vector<2x8xf32>
    %46 = vector.multi_reduction <maximumf>, %45, %cst_19 [2] : vector<2x8x8xf32> to vector<2x8xf32>
    %47 = vector.shape_cast %46 : vector<2x8xf32> to vector<2x8x1xf32>
    %48 = vector.broadcast %47 : vector<2x8x1xf32> to vector<2x8x8xf32>
    %49 = arith.subf %45, %48 : vector<2x8x8xf32>
    %50 = math.exp %49 : vector<2x8x8xf32>
    %cst_20 = arith.constant dense<0.000000e+00> : vector<2x8xf32>
    %51 = vector.multi_reduction <add>, %50, %cst_20 [2] : vector<2x8x8xf32> to vector<2x8xf32>
    %52 = vector.shape_cast %51 : vector<2x8xf32> to vector<2x8x1xf32>
    %53 = tpu.reciprocal %52 {approx = true} : vector<2x8x1xf32> -> vector<2x8x1xf32>
    %54 = vector.broadcast %53 : vector<2x8x1xf32> to vector<2x8x8xf32>
    %55 = arith.mulf %50, %54 : vector<2x8x8xf32>
    %56 = arith.truncf %55 : vector<2x8x8xf32> to vector<2x8x8xbf16>
    "tpu.trace_start"() <{level = 10 : i32, message = "bls,bsd->bld"}> : () -> ()
    %cst_21 = arith.constant dense<0.000000e+00> : vector<2x8x8xf32>
    %57 = tpu.matmul %56, %42, %cst_21 {dimension_numbers = #tpu.dot_dimension_numbers<[2], [1], [1], [2], [0, 0, 0, 1, 1, 2], [0], [0]>} : vector<2x8x8xbf16>, vector<2x8x8xbf16>, vector<2x8x8xf32> -> vector<2x8x8xf32>
    "tpu.trace_stop"() : () -> ()
    %58 = vector.shape_cast %57 : vector<2x8x8xf32> to vector<16x8xf32>
    %59 = vector.extract_strided_slice %16 {offsets = [0, 0, 16], sizes = [2, 8, 8], strides = [1, 1, 1]} : vector<2x8x32xbf16> to vector<2x8x8xbf16>
    %60 = vector.extract_strided_slice %18 {offsets = [0, 0, 16], sizes = [2, 8, 8], strides = [1, 1, 1]} : vector<2x8x32xbf16> to vector<2x8x8xbf16>
    %61 = vector.extract_strided_slice %20 {offsets = [0, 0, 16], sizes = [2, 8, 8], strides = [1, 1, 1]} : vector<2x8x32xbf16> to vector<2x8x8xbf16>
    "tpu.trace_start"() <{level = 10 : i32, message = "bld,bsd->bls"}> : () -> ()
    %cst_22 = arith.constant dense<0.000000e+00> : vector<2x8x8xf32>
    %62 = tpu.matmul %59, %60, %cst_22 {dimension_numbers = #tpu.dot_dimension_numbers<[2], [2], [1], [1], [0, 0, 0, 1, 1, 1], [0], [0]>} : vector<2x8x8xbf16>, vector<2x8x8xbf16>, vector<2x8x8xf32> -> vector<2x8x8xf32>
    "tpu.trace_stop"() : () -> ()
    %cst_23 = arith.constant 0.353553385 : f32
    %63 = vector.broadcast %cst_23 : f32 to vector<2x8x8xf32>
    %64 = arith.mulf %62, %63 : vector<2x8x8xf32>
    %cst_24 = arith.constant dense<0xFF800000> : vector<2x8xf32>
    %65 = vector.multi_reduction <maximumf>, %64, %cst_24 [2] : vector<2x8x8xf32> to vector<2x8xf32>
    %66 = vector.shape_cast %65 : vector<2x8xf32> to vector<2x8x1xf32>
    %67 = vector.broadcast %66 : vector<2x8x1xf32> to vector<2x8x8xf32>
    %68 = arith.subf %64, %67 : vector<2x8x8xf32>
    %69 = math.exp %68 : vector<2x8x8xf32>
    %cst_25 = arith.constant dense<0.000000e+00> : vector<2x8xf32>
    %70 = vector.multi_reduction <add>, %69, %cst_25 [2] : vector<2x8x8xf32> to vector<2x8xf32>
    %71 = vector.shape_cast %70 : vector<2x8xf32> to vector<2x8x1xf32>
    %72 = tpu.reciprocal %71 {approx = true} : vector<2x8x1xf32> -> vector<2x8x1xf32>
    %73 = vector.broadcast %72 : vector<2x8x1xf32> to vector<2x8x8xf32>
    %74 = arith.mulf %69, %73 : vector<2x8x8xf32>
    %75 = arith.truncf %74 : vector<2x8x8xf32> to vector<2x8x8xbf16>
    "tpu.trace_start"() <{level = 10 : i32, message = "bls,bsd->bld"}> : () -> ()
    %cst_26 = arith.constant dense<0.000000e+00> : vector<2x8x8xf32>
    %76 = tpu.matmul %75, %61, %cst_26 {dimension_numbers = #tpu.dot_dimension_numbers<[2], [1], [1], [2], [0, 0, 0, 1, 1, 2], [0], [0]>} : vector<2x8x8xbf16>, vector<2x8x8xbf16>, vector<2x8x8xf32> -> vector<2x8x8xf32>
    "tpu.trace_stop"() : () -> ()
    %77 = vector.shape_cast %76 : vector<2x8x8xf32> to vector<16x8xf32>
    %78 = vector.extract_strided_slice %16 {offsets = [0, 0, 24], sizes = [2, 8, 8], strides = [1, 1, 1]} : vector<2x8x32xbf16> to vector<2x8x8xbf16>
    %79 = vector.extract_strided_slice %18 {offsets = [0, 0, 24], sizes = [2, 8, 8], strides = [1, 1, 1]} : vector<2x8x32xbf16> to vector<2x8x8xbf16>
    %80 = vector.extract_strided_slice %20 {offsets = [0, 0, 24], sizes = [2, 8, 8], strides = [1, 1, 1]} : vector<2x8x32xbf16> to vector<2x8x8xbf16>
    "tpu.trace_start"() <{level = 10 : i32, message = "bld,bsd->bls"}> : () -> ()
    %cst_27 = arith.constant dense<0.000000e+00> : vector<2x8x8xf32>
    %81 = tpu.matmul %78, %79, %cst_27 {dimension_numbers = #tpu.dot_dimension_numbers<[2], [2], [1], [1], [0, 0, 0, 1, 1, 1], [0], [0]>} : vector<2x8x8xbf16>, vector<2x8x8xbf16>, vector<2x8x8xf32> -> vector<2x8x8xf32>
    "tpu.trace_stop"() : () -> ()
    %cst_28 = arith.constant 0.353553385 : f32
    %82 = vector.broadcast %cst_28 : f32 to vector<2x8x8xf32>
    %83 = arith.mulf %81, %82 : vector<2x8x8xf32>
    %cst_29 = arith.constant dense<0xFF800000> : vector<2x8xf32>
    %84 = vector.multi_reduction <maximumf>, %83, %cst_29 [2] : vector<2x8x8xf32> to vector<2x8xf32>
    %85 = vector.shape_cast %84 : vector<2x8xf32> to vector<2x8x1xf32>
    %86 = vector.broadcast %85 : vector<2x8x1xf32> to vector<2x8x8xf32>
    %87 = arith.subf %83, %86 : vector<2x8x8xf32>
    %88 = math.exp %87 : vector<2x8x8xf32>
    %cst_30 = arith.constant dense<0.000000e+00> : vector<2x8xf32>
    %89 = vector.multi_reduction <add>, %88, %cst_30 [2] : vector<2x8x8xf32> to vector<2x8xf32>
    %90 = vector.shape_cast %89 : vector<2x8xf32> to vector<2x8x1xf32>
    %91 = tpu.reciprocal %90 {approx = true} : vector<2x8x1xf32> -> vector<2x8x1xf32>
    %92 = vector.broadcast %91 : vector<2x8x1xf32> to vector<2x8x8xf32>
    %93 = arith.mulf %88, %92 : vector<2x8x8xf32>
    %94 = arith.truncf %93 : vector<2x8x8xf32> to vector<2x8x8xbf16>
    "tpu.trace_start"() <{level = 10 : i32, message = "bls,bsd->bld"}> : () -> ()
    %cst_31 = arith.constant dense<0.000000e+00> : vector<2x8x8xf32>
    %95 = tpu.matmul %94, %80, %cst_31 {dimension_numbers = #tpu.dot_dimension_numbers<[2], [1], [1], [2], [0, 0, 0, 1, 1, 2], [0], [0]>} : vector<2x8x8xbf16>, vector<2x8x8xbf16>, vector<2x8x8xf32> -> vector<2x8x8xf32>
    "tpu.trace_stop"() : () -> ()
    %96 = vector.shape_cast %95 : vector<2x8x8xf32> to vector<16x8xf32>
    %97 = tpu.concatenate %39, %58, %77, %96 in 1 : vector<16x8xf32>, vector<16x8xf32>, vector<16x8xf32>, vector<16x8xf32> -> vector<16x32xf32>
    %98 = arith.truncf %97 : vector<16x32xf32> to vector<16x32xbf16>
    %cst_32 = arith.constant dense<0.000000e+00> : vector<16x32xf32>
    %99 = tpu.matmul %98, %13, %cst_32 {dimension_numbers = #tpu.dot_dimension_numbers<[1], [0], [0], [1], [0, 0, 1, 1], [], []>} : vector<16x32xbf16>, vector<32x32xbf16>, vector<16x32xf32> -> vector<16x32xf32>
    %100 = vector.broadcast %14 : vector<1x32xf32> to vector<16x32xf32>
    %101 = arith.addf %99, %100 : vector<16x32xf32>
    %102 = arith.addf %1, %101 : vector<16x32xf32>
    %c4 = arith.constant 4 : index
    %c0_33 = arith.constant 0 : index
    %103 = vector.load %arg4[%c4, %c0_33] : memref<22x32xf32, #tpu.memory_space<vmem>>, vector<1x32xf32>
    %c5 = arith.constant 5 : index
    %c0_34 = arith.constant 0 : index
    %104 = vector.load %arg4[%c5, %c0_34] : memref<22x32xf32, #tpu.memory_space<vmem>>, vector<1x32xf32>
    %cst_35 = arith.constant dense<0.000000e+00> : vector<16xf32>
    %105 = vector.multi_reduction <add>, %102, %cst_35 [1] : vector<16x32xf32> to vector<16xf32>
    %106 = vector.shape_cast %105 : vector<16xf32> to vector<16x1xf32>
    %cst_36 = arith.constant 3.200000e+01 : f32
    %107 = vector.broadcast %cst_36 : f32 to vector<16x1xf32>
    %108 = arith.divf %106, %107 : vector<16x1xf32>
    %109 = vector.broadcast %108 : vector<16x1xf32> to vector<16x32xf32>
    %110 = arith.subf %102, %109 : vector<16x32xf32>
    %111 = arith.mulf %110, %110 : vector<16x32xf32>
    %cst_37 = arith.constant dense<0.000000e+00> : vector<16xf32>
    %112 = vector.multi_reduction <add>, %111, %cst_37 [1] : vector<16x32xf32> to vector<16xf32>
    %113 = vector.shape_cast %112 : vector<16xf32> to vector<16x1xf32>
    %cst_38 = arith.constant 3.200000e+01 : f32
    %114 = vector.broadcast %cst_38 : f32 to vector<16x1xf32>
    %115 = arith.divf %113, %114 : vector<16x1xf32>
    %cst_39 = arith.constant 9.99999974E-6 : f32
    %116 = vector.broadcast %cst_39 : f32 to vector<16x1xf32>
    %117 = arith.addf %115, %116 : vector<16x1xf32>
    %118 = math.rsqrt %117 : vector<16x1xf32>
    %119 = vector.broadcast %118 : vector<16x1xf32> to vector<16x32xf32>
    %120 = arith.mulf %110, %119 : vector<16x32xf32>
    %121 = vector.broadcast %103 : vector<1x32xf32> to vector<16x32xf32>
    %122 = arith.mulf %120, %121 : vector<16x32xf32>
    %123 = vector.broadcast %104 : vector<1x32xf32> to vector<16x32xf32>
    %124 = arith.addf %122, %123 : vector<16x32xf32>
    %c0_40 = arith.constant 0 : index
    %c128 = arith.constant 128 : index
    %125 = vector.load %arg2[%c0_40, %c128] : memref<32x768xbf16, #tpu.memory_space<vmem>>, vector<32x32xbf16>
    %126 = arith.truncf %124 : vector<16x32xf32> to vector<16x32xbf16>
    %cst_41 = arith.constant dense<0.000000e+00> : vector<16x32xf32>
    %127 = tpu.matmul %126, %125, %cst_41 {dimension_numbers = #tpu.dot_dimension_numbers<[1], [0], [0], [1], [0, 0, 1, 1], [], []>} : vector<16x32xbf16>, vector<32x32xbf16>, vector<16x32xf32> -> vector<16x32xf32>
    %c1 = arith.constant 1 : index
    %c0_42 = arith.constant 0 : index
    %128 = vector.load %arg4[%c1, %c0_42] : memref<22x32xf32, #tpu.memory_space<vmem>>, vector<1x32xf32>
    %129 = vector.broadcast %128 : vector<1x32xf32> to vector<16x32xf32>
    %130 = arith.addf %127, %129 : vector<16x32xf32>
    %c0_43 = arith.constant 0 : index
    %c160 = arith.constant 160 : index
    %131 = vector.load %arg2[%c0_43, %c160] : memref<32x768xbf16, #tpu.memory_space<vmem>>, vector<32x64xbf16>
    %132 = arith.truncf %3 : vector<16x32xf32> to vector<16x32xbf16>
    %cst_44 = arith.constant dense<0.000000e+00> : vector<16x64xf32>
    %133 = tpu.matmul %132, %131, %cst_44 {dimension_numbers = #tpu.dot_dimension_numbers<[1], [0], [0], [1], [0, 0, 1, 1], [], []>} : vector<16x32xbf16>, vector<32x64xbf16>, vector<16x64xf32> -> vector<16x64xf32>
    %c1_45 = arith.constant 1 : index
    %c0_46 = arith.constant 0 : index
    %134 = vector.load %arg5[%c1_45, %c0_46] : memref<6x96xf32, #tpu.memory_space<vmem>>, vector<1x64xf32>
    %135 = vector.broadcast %134 : vector<1x64xf32> to vector<16x64xf32>
    %136 = arith.addf %133, %135 : vector<16x64xf32>
    %137 = vector.extract_strided_slice %136 {offsets = [0, 0], sizes = [16, 32], strides = [1, 1]} : vector<16x64xf32> to vector<16x32xf32>
    %138 = vector.extract_strided_slice %136 {offsets = [0, 32], sizes = [16, 32], strides = [1, 1]} : vector<16x64xf32> to vector<16x32xf32>
    %c0_47 = arith.constant 0 : index
    %c224 = arith.constant 224 : index
    %139 = vector.load %arg2[%c0_47, %c224] : memref<32x768xbf16, #tpu.memory_space<vmem>>, vector<32x32xbf16>
    %c2 = arith.constant 2 : index
    %c0_48 = arith.constant 0 : index
    %140 = vector.load %arg4[%c2, %c0_48] : memref<22x32xf32, #tpu.memory_space<vmem>>, vector<1x32xf32>
    %141 = vector.shape_cast %130 : vector<16x32xf32> to vector<2x8x32xf32>
    %142 = arith.truncf %141 : vector<2x8x32xf32> to vector<2x8x32xbf16>
    %143 = vector.shape_cast %137 : vector<16x32xf32> to vector<2x8x32xf32>
    %144 = arith.truncf %143 : vector<2x8x32xf32> to vector<2x8x32xbf16>
    %145 = vector.shape_cast %138 : vector<16x32xf32> to vector<2x8x32xf32>
    %146 = arith.truncf %145 : vector<2x8x32xf32> to vector<2x8x32xbf16>
    %147 = vector.extract_strided_slice %142 {offsets = [0, 0, 0], sizes = [2, 8, 8], strides = [1, 1, 1]} : vector<2x8x32xbf16> to vector<2x8x8xbf16>
    %148 = vector.extract_strided_slice %144 {offsets = [0, 0, 0], sizes = [2, 8, 8], strides = [1, 1, 1]} : vector<2x8x32xbf16> to vector<2x8x8xbf16>
    %149 = vector.extract_strided_slice %146 {offsets = [0, 0, 0], sizes = [2, 8, 8], strides = [1, 1, 1]} : vector<2x8x32xbf16> to vector<2x8x8xbf16>
    "tpu.trace_start"() <{level = 10 : i32, message = "bld,bsd->bls"}> : () -> ()
    %cst_49 = arith.constant dense<0.000000e+00> : vector<2x8x8xf32>
    %150 = tpu.matmul %147, %148, %cst_49 {dimension_numbers = #tpu.dot_dimension_numbers<[2], [2], [1], [1], [0, 0, 0, 1, 1, 1], [0], [0]>} : vector<2x8x8xbf16>, vector<2x8x8xbf16>, vector<2x8x8xf32> -> vector<2x8x8xf32>
    "tpu.trace_stop"() : () -> ()
    %cst_50 = arith.constant 0.353553385 : f32
    %151 = vector.broadcast %cst_50 : f32 to vector<2x8x8xf32>
    %152 = arith.mulf %150, %151 : vector<2x8x8xf32>
    %cst_51 = arith.constant dense<0xFF800000> : vector<2x8xf32>
    %153 = vector.multi_reduction <maximumf>, %152, %cst_51 [2] : vector<2x8x8xf32> to vector<2x8xf32>
    %154 = vector.shape_cast %153 : vector<2x8xf32> to vector<2x8x1xf32>
    %155 = vector.broadcast %154 : vector<2x8x1xf32> to vector<2x8x8xf32>
    %156 = arith.subf %152, %155 : vector<2x8x8xf32>
    %157 = math.exp %156 : vector<2x8x8xf32>
    %cst_52 = arith.constant dense<0.000000e+00> : vector<2x8xf32>
    %158 = vector.multi_reduction <add>, %157, %cst_52 [2] : vector<2x8x8xf32> to vector<2x8xf32>
    %159 = vector.shape_cast %158 : vector<2x8xf32> to vector<2x8x1xf32>
    %160 = tpu.reciprocal %159 {approx = true} : vector<2x8x1xf32> -> vector<2x8x1xf32>
    %161 = vector.broadcast %160 : vector<2x8x1xf32> to vector<2x8x8xf32>
    %162 = arith.mulf %157, %161 : vector<2x8x8xf32>
    %163 = arith.truncf %162 : vector<2x8x8xf32> to vector<2x8x8xbf16>
    "tpu.trace_start"() <{level = 10 : i32, message = "bls,bsd->bld"}> : () -> ()
    %cst_53 = arith.constant dense<0.000000e+00> : vector<2x8x8xf32>
    %164 = tpu.matmul %163, %149, %cst_53 {dimension_numbers = #tpu.dot_dimension_numbers<[2], [1], [1], [2], [0, 0, 0, 1, 1, 2], [0], [0]>} : vector<2x8x8xbf16>, vector<2x8x8xbf16>, vector<2x8x8xf32> -> vector<2x8x8xf32>
    "tpu.trace_stop"() : () -> ()
    %165 = vector.shape_cast %164 : vector<2x8x8xf32> to vector<16x8xf32>
    %166 = vector.extract_strided_slice %142 {offsets = [0, 0, 8], sizes = [2, 8, 8], strides = [1, 1, 1]} : vector<2x8x32xbf16> to vector<2x8x8xbf16>
    %167 = vector.extract_strided_slice %144 {offsets = [0, 0, 8], sizes = [2, 8, 8], strides = [1, 1, 1]} : vector<2x8x32xbf16> to vector<2x8x8xbf16>
    %168 = vector.extract_strided_slice %146 {offsets = [0, 0, 8], sizes = [2, 8, 8], strides = [1, 1, 1]} : vector<2x8x32xbf16> to vector<2x8x8xbf16>
    "tpu.trace_start"() <{level = 10 : i32, message = "bld,bsd->bls"}> : () -> ()
    %cst_54 = arith.constant dense<0.000000e+00> : vector<2x8x8xf32>
    %169 = tpu.matmul %166, %167, %cst_54 {dimension_numbers = #tpu.dot_dimension_numbers<[2], [2], [1], [1], [0, 0, 0, 1, 1, 1], [0], [0]>} : vector<2x8x8xbf16>, vector<2x8x8xbf16>, vector<2x8x8xf32> -> vector<2x8x8xf32>
    "tpu.trace_stop"() : () -> ()
    %cst_55 = arith.constant 0.353553385 : f32
    %170 = vector.broadcast %cst_55 : f32 to vector<2x8x8xf32>
    %171 = arith.mulf %169, %170 : vector<2x8x8xf32>
    %cst_56 = arith.constant dense<0xFF800000> : vector<2x8xf32>
    %172 = vector.multi_reduction <maximumf>, %171, %cst_56 [2] : vector<2x8x8xf32> to vector<2x8xf32>
    %173 = vector.shape_cast %172 : vector<2x8xf32> to vector<2x8x1xf32>
    %174 = vector.broadcast %173 : vector<2x8x1xf32> to vector<2x8x8xf32>
    %175 = arith.subf %171, %174 : vector<2x8x8xf32>
    %176 = math.exp %175 : vector<2x8x8xf32>
    %cst_57 = arith.constant dense<0.000000e+00> : vector<2x8xf32>
    %177 = vector.multi_reduction <add>, %176, %cst_57 [2] : vector<2x8x8xf32> to vector<2x8xf32>
    %178 = vector.shape_cast %177 : vector<2x8xf32> to vector<2x8x1xf32>
    %179 = tpu.reciprocal %178 {approx = true} : vector<2x8x1xf32> -> vector<2x8x1xf32>
    %180 = vector.broadcast %179 : vector<2x8x1xf32> to vector<2x8x8xf32>
    %181 = arith.mulf %176, %180 : vector<2x8x8xf32>
    %182 = arith.truncf %181 : vector<2x8x8xf32> to vector<2x8x8xbf16>
    "tpu.trace_start"() <{level = 10 : i32, message = "bls,bsd->bld"}> : () -> ()
    %cst_58 = arith.constant dense<0.000000e+00> : vector<2x8x8xf32>
    %183 = tpu.matmul %182, %168, %cst_58 {dimension_numbers = #tpu.dot_dimension_numbers<[2], [1], [1], [2], [0, 0, 0, 1, 1, 2], [0], [0]>} : vector<2x8x8xbf16>, vector<2x8x8xbf16>, vector<2x8x8xf32> -> vector<2x8x8xf32>
    "tpu.trace_stop"() : () -> ()
    %184 = vector.shape_cast %183 : vector<2x8x8xf32> to vector<16x8xf32>
    %185 = vector.extract_strided_slice %142 {offsets = [0, 0, 16], sizes = [2, 8, 8], strides = [1, 1, 1]} : vector<2x8x32xbf16> to vector<2x8x8xbf16>
    %186 = vector.extract_strided_slice %144 {offsets = [0, 0, 16], sizes = [2, 8, 8], strides = [1, 1, 1]} : vector<2x8x32xbf16> to vector<2x8x8xbf16>
    %187 = vector.extract_strided_slice %146 {offsets = [0, 0, 16], sizes = [2, 8, 8], strides = [1, 1, 1]} : vector<2x8x32xbf16> to vector<2x8x8xbf16>
    "tpu.trace_start"() <{level = 10 : i32, message = "bld,bsd->bls"}> : () -> ()
    %cst_59 = arith.constant dense<0.000000e+00> : vector<2x8x8xf32>
    %188 = tpu.matmul %185, %186, %cst_59 {dimension_numbers = #tpu.dot_dimension_numbers<[2], [2], [1], [1], [0, 0, 0, 1, 1, 1], [0], [0]>} : vector<2x8x8xbf16>, vector<2x8x8xbf16>, vector<2x8x8xf32> -> vector<2x8x8xf32>
    "tpu.trace_stop"() : () -> ()
    %cst_60 = arith.constant 0.353553385 : f32
    %189 = vector.broadcast %cst_60 : f32 to vector<2x8x8xf32>
    %190 = arith.mulf %188, %189 : vector<2x8x8xf32>
    %cst_61 = arith.constant dense<0xFF800000> : vector<2x8xf32>
    %191 = vector.multi_reduction <maximumf>, %190, %cst_61 [2] : vector<2x8x8xf32> to vector<2x8xf32>
    %192 = vector.shape_cast %191 : vector<2x8xf32> to vector<2x8x1xf32>
    %193 = vector.broadcast %192 : vector<2x8x1xf32> to vector<2x8x8xf32>
    %194 = arith.subf %190, %193 : vector<2x8x8xf32>
    %195 = math.exp %194 : vector<2x8x8xf32>
    %cst_62 = arith.constant dense<0.000000e+00> : vector<2x8xf32>
    %196 = vector.multi_reduction <add>, %195, %cst_62 [2] : vector<2x8x8xf32> to vector<2x8xf32>
    %197 = vector.shape_cast %196 : vector<2x8xf32> to vector<2x8x1xf32>
    %198 = tpu.reciprocal %197 {approx = true} : vector<2x8x1xf32> -> vector<2x8x1xf32>
    %199 = vector.broadcast %198 : vector<2x8x1xf32> to vector<2x8x8xf32>
    %200 = arith.mulf %195, %199 : vector<2x8x8xf32>
    %201 = arith.truncf %200 : vector<2x8x8xf32> to vector<2x8x8xbf16>
    "tpu.trace_start"() <{level = 10 : i32, message = "bls,bsd->bld"}> : () -> ()
    %cst_63 = arith.constant dense<0.000000e+00> : vector<2x8x8xf32>
    %202 = tpu.matmul %201, %187, %cst_63 {dimension_numbers = #tpu.dot_dimension_numbers<[2], [1], [1], [2], [0, 0, 0, 1, 1, 2], [0], [0]>} : vector<2x8x8xbf16>, vector<2x8x8xbf16>, vector<2x8x8xf32> -> vector<2x8x8xf32>
    "tpu.trace_stop"() : () -> ()
    %203 = vector.shape_cast %202 : vector<2x8x8xf32> to vector<16x8xf32>
    %204 = vector.extract_strided_slice %142 {offsets = [0, 0, 24], sizes = [2, 8, 8], strides = [1, 1, 1]} : vector<2x8x32xbf16> to vector<2x8x8xbf16>
    %205 = vector.extract_strided_slice %144 {offsets = [0, 0, 24], sizes = [2, 8, 8], strides = [1, 1, 1]} : vector<2x8x32xbf16> to vector<2x8x8xbf16>
    %206 = vector.extract_strided_slice %146 {offsets = [0, 0, 24], sizes = [2, 8, 8], strides = [1, 1, 1]} : vector<2x8x32xbf16> to vector<2x8x8xbf16>
    "tpu.trace_start"() <{level = 10 : i32, message = "bld,bsd->bls"}> : () -> ()
    %cst_64 = arith.constant dense<0.000000e+00> : vector<2x8x8xf32>
    %207 = tpu.matmul %204, %205, %cst_64 {dimension_numbers = #tpu.dot_dimension_numbers<[2], [2], [1], [1], [0, 0, 0, 1, 1, 1], [0], [0]>} : vector<2x8x8xbf16>, vector<2x8x8xbf16>, vector<2x8x8xf32> -> vector<2x8x8xf32>
    "tpu.trace_stop"() : () -> ()
    %cst_65 = arith.constant 0.353553385 : f32
    %208 = vector.broadcast %cst_65 : f32 to vector<2x8x8xf32>
    %209 = arith.mulf %207, %208 : vector<2x8x8xf32>
    %cst_66 = arith.constant dense<0xFF800000> : vector<2x8xf32>
    %210 = vector.multi_reduction <maximumf>, %209, %cst_66 [2] : vector<2x8x8xf32> to vector<2x8xf32>
    %211 = vector.shape_cast %210 : vector<2x8xf32> to vector<2x8x1xf32>
    %212 = vector.broadcast %211 : vector<2x8x1xf32> to vector<2x8x8xf32>
    %213 = arith.subf %209, %212 : vector<2x8x8xf32>
    %214 = math.exp %213 : vector<2x8x8xf32>
    %cst_67 = arith.constant dense<0.000000e+00> : vector<2x8xf32>
    %215 = vector.multi_reduction <add>, %214, %cst_67 [2] : vector<2x8x8xf32> to vector<2x8xf32>
    %216 = vector.shape_cast %215 : vector<2x8xf32> to vector<2x8x1xf32>
    %217 = tpu.reciprocal %216 {approx = true} : vector<2x8x1xf32> -> vector<2x8x1xf32>
    %218 = vector.broadcast %217 : vector<2x8x1xf32> to vector<2x8x8xf32>
    %219 = arith.mulf %214, %218 : vector<2x8x8xf32>
    %220 = arith.truncf %219 : vector<2x8x8xf32> to vector<2x8x8xbf16>
    "tpu.trace_start"() <{level = 10 : i32, message = "bls,bsd->bld"}> : () -> ()
    %cst_68 = arith.constant dense<0.000000e+00> : vector<2x8x8xf32>
    %221 = tpu.matmul %220, %206, %cst_68 {dimension_numbers = #tpu.dot_dimension_numbers<[2], [1], [1], [2], [0, 0, 0, 1, 1, 2], [0], [0]>} : vector<2x8x8xbf16>, vector<2x8x8xbf16>, vector<2x8x8xf32> -> vector<2x8x8xf32>
    "tpu.trace_stop"() : () -> ()
    %222 = vector.shape_cast %221 : vector<2x8x8xf32> to vector<16x8xf32>
    %223 = tpu.concatenate %165, %184, %203, %222 in 1 : vector<16x8xf32>, vector<16x8xf32>, vector<16x8xf32>, vector<16x8xf32> -> vector<16x32xf32>
    %224 = arith.truncf %223 : vector<16x32xf32> to vector<16x32xbf16>
    %cst_69 = arith.constant dense<0.000000e+00> : vector<16x32xf32>
    %225 = tpu.matmul %224, %139, %cst_69 {dimension_numbers = #tpu.dot_dimension_numbers<[1], [0], [0], [1], [0, 0, 1, 1], [], []>} : vector<16x32xbf16>, vector<32x32xbf16>, vector<16x32xf32> -> vector<16x32xf32>
    %226 = vector.broadcast %140 : vector<1x32xf32> to vector<16x32xf32>
    %227 = arith.addf %225, %226 : vector<16x32xf32>
    %228 = arith.addf %124, %227 : vector<16x32xf32>
    %c6 = arith.constant 6 : index
    %c0_70 = arith.constant 0 : index
    %229 = vector.load %arg4[%c6, %c0_70] : memref<22x32xf32, #tpu.memory_space<vmem>>, vector<1x32xf32>
    %c7 = arith.constant 7 : index
    %c0_71 = arith.constant 0 : index
    %230 = vector.load %arg4[%c7, %c0_71] : memref<22x32xf32, #tpu.memory_space<vmem>>, vector<1x32xf32>
    %cst_72 = arith.constant dense<0.000000e+00> : vector<16xf32>
    %231 = vector.multi_reduction <add>, %228, %cst_72 [1] : vector<16x32xf32> to vector<16xf32>
    %232 = vector.shape_cast %231 : vector<16xf32> to vector<16x1xf32>
    %cst_73 = arith.constant 3.200000e+01 : f32
    %233 = vector.broadcast %cst_73 : f32 to vector<16x1xf32>
    %234 = arith.divf %232, %233 : vector<16x1xf32>
    %235 = vector.broadcast %234 : vector<16x1xf32> to vector<16x32xf32>
    %236 = arith.subf %228, %235 : vector<16x32xf32>
    %237 = arith.mulf %236, %236 : vector<16x32xf32>
    %cst_74 = arith.constant dense<0.000000e+00> : vector<16xf32>
    %238 = vector.multi_reduction <add>, %237, %cst_74 [1] : vector<16x32xf32> to vector<16xf32>
    %239 = vector.shape_cast %238 : vector<16xf32> to vector<16x1xf32>
    %cst_75 = arith.constant 3.200000e+01 : f32
    %240 = vector.broadcast %cst_75 : f32 to vector<16x1xf32>
    %241 = arith.divf %239, %240 : vector<16x1xf32>
    %cst_76 = arith.constant 9.99999974E-6 : f32
    %242 = vector.broadcast %cst_76 : f32 to vector<16x1xf32>
    %243 = arith.addf %241, %242 : vector<16x1xf32>
    %244 = math.rsqrt %243 : vector<16x1xf32>
    %245 = vector.broadcast %244 : vector<16x1xf32> to vector<16x32xf32>
    %246 = arith.mulf %236, %245 : vector<16x32xf32>
    %247 = vector.broadcast %229 : vector<1x32xf32> to vector<16x32xf32>
    %248 = arith.mulf %246, %247 : vector<16x32xf32>
    %249 = vector.broadcast %230 : vector<1x32xf32> to vector<16x32xf32>
    %250 = arith.addf %248, %249 : vector<16x32xf32>
    %c0_77 = arith.constant 0 : index
    %c256 = arith.constant 256 : index
    %251 = vector.load %arg2[%c0_77, %c256] : memref<32x768xbf16, #tpu.memory_space<vmem>>, vector<32x64xbf16>
    %252 = arith.truncf %250 : vector<16x32xf32> to vector<16x32xbf16>
    %cst_78 = arith.constant dense<0.000000e+00> : vector<16x64xf32>
    %253 = tpu.matmul %252, %251, %cst_78 {dimension_numbers = #tpu.dot_dimension_numbers<[1], [0], [0], [1], [0, 0, 1, 1], [], []>} : vector<16x32xbf16>, vector<32x64xbf16>, vector<16x64xf32> -> vector<16x64xf32>
    %c2_79 = arith.constant 2 : index
    %c0_80 = arith.constant 0 : index
    %254 = vector.load %arg5[%c2_79, %c0_80] : memref<6x96xf32, #tpu.memory_space<vmem>>, vector<1x64xf32>
    %255 = vector.broadcast %254 : vector<1x64xf32> to vector<16x64xf32>
    %256 = arith.addf %253, %255 : vector<16x64xf32>
    %cst_81 = arith.constant 0.000000e+00 : f32
    %257 = vector.broadcast %cst_81 : f32 to vector<16x64xf32>
    %258 = arith.maximumf %256, %257 : vector<16x64xf32>
    %c0_82 = arith.constant 0 : index
    %c0_83 = arith.constant 0 : index
    %259 = vector.load %arg3[%c0_82, %c0_83] : memref<64x64xbf16, #tpu.memory_space<vmem>>, vector<64x32xbf16>
    %260 = arith.truncf %258 : vector<16x64xf32> to vector<16x64xbf16>
    %cst_84 = arith.constant dense<0.000000e+00> : vector<16x32xf32>
    %261 = tpu.matmul %260, %259, %cst_84 {dimension_numbers = #tpu.dot_dimension_numbers<[1], [0], [0], [1], [0, 0, 1, 1], [], []>} : vector<16x64xbf16>, vector<64x32xbf16>, vector<16x32xf32> -> vector<16x32xf32>
    %c3 = arith.constant 3 : index
    %c0_85 = arith.constant 0 : index
    %262 = vector.load %arg4[%c3, %c0_85] : memref<22x32xf32, #tpu.memory_space<vmem>>, vector<1x32xf32>
    %263 = vector.broadcast %262 : vector<1x32xf32> to vector<16x32xf32>
    %264 = arith.addf %261, %263 : vector<16x32xf32>
    %265 = arith.addf %250, %264 : vector<16x32xf32>
    %c8 = arith.constant 8 : index
    %c0_86 = arith.constant 0 : index
    %266 = vector.load %arg4[%c8, %c0_86] : memref<22x32xf32, #tpu.memory_space<vmem>>, vector<1x32xf32>
    %c9 = arith.constant 9 : index
    %c0_87 = arith.constant 0 : index
    %267 = vector.load %arg4[%c9, %c0_87] : memref<22x32xf32, #tpu.memory_space<vmem>>, vector<1x32xf32>
    %cst_88 = arith.constant dense<0.000000e+00> : vector<16xf32>
    %268 = vector.multi_reduction <add>, %265, %cst_88 [1] : vector<16x32xf32> to vector<16xf32>
    %269 = vector.shape_cast %268 : vector<16xf32> to vector<16x1xf32>
    %cst_89 = arith.constant 3.200000e+01 : f32
    %270 = vector.broadcast %cst_89 : f32 to vector<16x1xf32>
    %271 = arith.divf %269, %270 : vector<16x1xf32>
    %272 = vector.broadcast %271 : vector<16x1xf32> to vector<16x32xf32>
    %273 = arith.subf %265, %272 : vector<16x32xf32>
    %274 = arith.mulf %273, %273 : vector<16x32xf32>
    %cst_90 = arith.constant dense<0.000000e+00> : vector<16xf32>
    %275 = vector.multi_reduction <add>, %274, %cst_90 [1] : vector<16x32xf32> to vector<16xf32>
    %276 = vector.shape_cast %275 : vector<16xf32> to vector<16x1xf32>
    %cst_91 = arith.constant 3.200000e+01 : f32
    %277 = vector.broadcast %cst_91 : f32 to vector<16x1xf32>
    %278 = arith.divf %276, %277 : vector<16x1xf32>
    %cst_92 = arith.constant 9.99999974E-6 : f32
    %279 = vector.broadcast %cst_92 : f32 to vector<16x1xf32>
    %280 = arith.addf %278, %279 : vector<16x1xf32>
    %281 = math.rsqrt %280 : vector<16x1xf32>
    %282 = vector.broadcast %281 : vector<16x1xf32> to vector<16x32xf32>
    %283 = arith.mulf %273, %282 : vector<16x32xf32>
    %284 = vector.broadcast %266 : vector<1x32xf32> to vector<16x32xf32>
    %285 = arith.mulf %283, %284 : vector<16x32xf32>
    %286 = vector.broadcast %267 : vector<1x32xf32> to vector<16x32xf32>
    %287 = arith.addf %285, %286 : vector<16x32xf32>
    %c0_93 = arith.constant 0 : index
    %c320 = arith.constant 320 : index
    %288 = vector.load %arg2[%c0_93, %c320] : memref<32x768xbf16, #tpu.memory_space<vmem>>, vector<32x96xbf16>
    %289 = arith.truncf %287 : vector<16x32xf32> to vector<16x32xbf16>
    %cst_94 = arith.constant dense<0.000000e+00> : vector<16x96xf32>
    %290 = tpu.matmul %289, %288, %cst_94 {dimension_numbers = #tpu.dot_dimension_numbers<[1], [0], [0], [1], [0, 0, 1, 1], [], []>} : vector<16x32xbf16>, vector<32x96xbf16>, vector<16x96xf32> -> vector<16x96xf32>
    %c3_95 = arith.constant 3 : index
    %c0_96 = arith.constant 0 : index
    %291 = vector.load %arg5[%c3_95, %c0_96] : memref<6x96xf32, #tpu.memory_space<vmem>>, vector<1x96xf32>
    %292 = vector.broadcast %291 : vector<1x96xf32> to vector<16x96xf32>
    %293 = arith.addf %290, %292 : vector<16x96xf32>
    %294 = vector.extract_strided_slice %293 {offsets = [0, 0], sizes = [16, 32], strides = [1, 1]} : vector<16x96xf32> to vector<16x32xf32>
    %295 = vector.extract_strided_slice %293 {offsets = [0, 32], sizes = [16, 32], strides = [1, 1]} : vector<16x96xf32> to vector<16x32xf32>
    %296 = vector.extract_strided_slice %293 {offsets = [0, 64], sizes = [16, 32], strides = [1, 1]} : vector<16x96xf32> to vector<16x32xf32>
    %c0_97 = arith.constant 0 : index
    %c416 = arith.constant 416 : index
    %297 = vector.load %arg2[%c0_97, %c416] : memref<32x768xbf16, #tpu.memory_space<vmem>>, vector<32x32xbf16>
    %c10 = arith.constant 10 : index
    %c0_98 = arith.constant 0 : index
    %298 = vector.load %arg4[%c10, %c0_98] : memref<22x32xf32, #tpu.memory_space<vmem>>, vector<1x32xf32>
    %299 = vector.shape_cast %294 : vector<16x32xf32> to vector<2x8x32xf32>
    %300 = arith.truncf %299 : vector<2x8x32xf32> to vector<2x8x32xbf16>
    %301 = vector.shape_cast %295 : vector<16x32xf32> to vector<2x8x32xf32>
    %302 = arith.truncf %301 : vector<2x8x32xf32> to vector<2x8x32xbf16>
    %303 = vector.shape_cast %296 : vector<16x32xf32> to vector<2x8x32xf32>
    %304 = arith.truncf %303 : vector<2x8x32xf32> to vector<2x8x32xbf16>
    %305 = vector.extract_strided_slice %300 {offsets = [0, 0, 0], sizes = [2, 8, 8], strides = [1, 1, 1]} : vector<2x8x32xbf16> to vector<2x8x8xbf16>
    %306 = vector.extract_strided_slice %302 {offsets = [0, 0, 0], sizes = [2, 8, 8], strides = [1, 1, 1]} : vector<2x8x32xbf16> to vector<2x8x8xbf16>
    %307 = vector.extract_strided_slice %304 {offsets = [0, 0, 0], sizes = [2, 8, 8], strides = [1, 1, 1]} : vector<2x8x32xbf16> to vector<2x8x8xbf16>
    "tpu.trace_start"() <{level = 10 : i32, message = "bld,bsd->bls"}> : () -> ()
    %cst_99 = arith.constant dense<0.000000e+00> : vector<2x8x8xf32>
    %308 = tpu.matmul %305, %306, %cst_99 {dimension_numbers = #tpu.dot_dimension_numbers<[2], [2], [1], [1], [0, 0, 0, 1, 1, 1], [0], [0]>} : vector<2x8x8xbf16>, vector<2x8x8xbf16>, vector<2x8x8xf32> -> vector<2x8x8xf32>
    "tpu.trace_stop"() : () -> ()
    %cst_100 = arith.constant 0.353553385 : f32
    %309 = vector.broadcast %cst_100 : f32 to vector<2x8x8xf32>
    %310 = arith.mulf %308, %309 : vector<2x8x8xf32>
    %cst_101 = arith.constant dense<0xFF800000> : vector<2x8xf32>
    %311 = vector.multi_reduction <maximumf>, %310, %cst_101 [2] : vector<2x8x8xf32> to vector<2x8xf32>
    %312 = vector.shape_cast %311 : vector<2x8xf32> to vector<2x8x1xf32>
    %313 = vector.broadcast %312 : vector<2x8x1xf32> to vector<2x8x8xf32>
    %314 = arith.subf %310, %313 : vector<2x8x8xf32>
    %315 = math.exp %314 : vector<2x8x8xf32>
    %cst_102 = arith.constant dense<0.000000e+00> : vector<2x8xf32>
    %316 = vector.multi_reduction <add>, %315, %cst_102 [2] : vector<2x8x8xf32> to vector<2x8xf32>
    %317 = vector.shape_cast %316 : vector<2x8xf32> to vector<2x8x1xf32>
    %318 = tpu.reciprocal %317 {approx = true} : vector<2x8x1xf32> -> vector<2x8x1xf32>
    %319 = vector.broadcast %318 : vector<2x8x1xf32> to vector<2x8x8xf32>
    %320 = arith.mulf %315, %319 : vector<2x8x8xf32>
    %321 = arith.truncf %320 : vector<2x8x8xf32> to vector<2x8x8xbf16>
    "tpu.trace_start"() <{level = 10 : i32, message = "bls,bsd->bld"}> : () -> ()
    %cst_103 = arith.constant dense<0.000000e+00> : vector<2x8x8xf32>
    %322 = tpu.matmul %321, %307, %cst_103 {dimension_numbers = #tpu.dot_dimension_numbers<[2], [1], [1], [2], [0, 0, 0, 1, 1, 2], [0], [0]>} : vector<2x8x8xbf16>, vector<2x8x8xbf16>, vector<2x8x8xf32> -> vector<2x8x8xf32>
    "tpu.trace_stop"() : () -> ()
    %323 = vector.shape_cast %322 : vector<2x8x8xf32> to vector<16x8xf32>
    %324 = vector.extract_strided_slice %300 {offsets = [0, 0, 8], sizes = [2, 8, 8], strides = [1, 1, 1]} : vector<2x8x32xbf16> to vector<2x8x8xbf16>
    %325 = vector.extract_strided_slice %302 {offsets = [0, 0, 8], sizes = [2, 8, 8], strides = [1, 1, 1]} : vector<2x8x32xbf16> to vector<2x8x8xbf16>
    %326 = vector.extract_strided_slice %304 {offsets = [0, 0, 8], sizes = [2, 8, 8], strides = [1, 1, 1]} : vector<2x8x32xbf16> to vector<2x8x8xbf16>
    "tpu.trace_start"() <{level = 10 : i32, message = "bld,bsd->bls"}> : () -> ()
    %cst_104 = arith.constant dense<0.000000e+00> : vector<2x8x8xf32>
    %327 = tpu.matmul %324, %325, %cst_104 {dimension_numbers = #tpu.dot_dimension_numbers<[2], [2], [1], [1], [0, 0, 0, 1, 1, 1], [0], [0]>} : vector<2x8x8xbf16>, vector<2x8x8xbf16>, vector<2x8x8xf32> -> vector<2x8x8xf32>
    "tpu.trace_stop"() : () -> ()
    %cst_105 = arith.constant 0.353553385 : f32
    %328 = vector.broadcast %cst_105 : f32 to vector<2x8x8xf32>
    %329 = arith.mulf %327, %328 : vector<2x8x8xf32>
    %cst_106 = arith.constant dense<0xFF800000> : vector<2x8xf32>
    %330 = vector.multi_reduction <maximumf>, %329, %cst_106 [2] : vector<2x8x8xf32> to vector<2x8xf32>
    %331 = vector.shape_cast %330 : vector<2x8xf32> to vector<2x8x1xf32>
    %332 = vector.broadcast %331 : vector<2x8x1xf32> to vector<2x8x8xf32>
    %333 = arith.subf %329, %332 : vector<2x8x8xf32>
    %334 = math.exp %333 : vector<2x8x8xf32>
    %cst_107 = arith.constant dense<0.000000e+00> : vector<2x8xf32>
    %335 = vector.multi_reduction <add>, %334, %cst_107 [2] : vector<2x8x8xf32> to vector<2x8xf32>
    %336 = vector.shape_cast %335 : vector<2x8xf32> to vector<2x8x1xf32>
    %337 = tpu.reciprocal %336 {approx = true} : vector<2x8x1xf32> -> vector<2x8x1xf32>
    %338 = vector.broadcast %337 : vector<2x8x1xf32> to vector<2x8x8xf32>
    %339 = arith.mulf %334, %338 : vector<2x8x8xf32>
    %340 = arith.truncf %339 : vector<2x8x8xf32> to vector<2x8x8xbf16>
    "tpu.trace_start"() <{level = 10 : i32, message = "bls,bsd->bld"}> : () -> ()
    %cst_108 = arith.constant dense<0.000000e+00> : vector<2x8x8xf32>
    %341 = tpu.matmul %340, %326, %cst_108 {dimension_numbers = #tpu.dot_dimension_numbers<[2], [1], [1], [2], [0, 0, 0, 1, 1, 2], [0], [0]>} : vector<2x8x8xbf16>, vector<2x8x8xbf16>, vector<2x8x8xf32> -> vector<2x8x8xf32>
    "tpu.trace_stop"() : () -> ()
    %342 = vector.shape_cast %341 : vector<2x8x8xf32> to vector<16x8xf32>
    %343 = vector.extract_strided_slice %300 {offsets = [0, 0, 16], sizes = [2, 8, 8], strides = [1, 1, 1]} : vector<2x8x32xbf16> to vector<2x8x8xbf16>
    %344 = vector.extract_strided_slice %302 {offsets = [0, 0, 16], sizes = [2, 8, 8], strides = [1, 1, 1]} : vector<2x8x32xbf16> to vector<2x8x8xbf16>
    %345 = vector.extract_strided_slice %304 {offsets = [0, 0, 16], sizes = [2, 8, 8], strides = [1, 1, 1]} : vector<2x8x32xbf16> to vector<2x8x8xbf16>
    "tpu.trace_start"() <{level = 10 : i32, message = "bld,bsd->bls"}> : () -> ()
    %cst_109 = arith.constant dense<0.000000e+00> : vector<2x8x8xf32>
    %346 = tpu.matmul %343, %344, %cst_109 {dimension_numbers = #tpu.dot_dimension_numbers<[2], [2], [1], [1], [0, 0, 0, 1, 1, 1], [0], [0]>} : vector<2x8x8xbf16>, vector<2x8x8xbf16>, vector<2x8x8xf32> -> vector<2x8x8xf32>
    "tpu.trace_stop"() : () -> ()
    %cst_110 = arith.constant 0.353553385 : f32
    %347 = vector.broadcast %cst_110 : f32 to vector<2x8x8xf32>
    %348 = arith.mulf %346, %347 : vector<2x8x8xf32>
    %cst_111 = arith.constant dense<0xFF800000> : vector<2x8xf32>
    %349 = vector.multi_reduction <maximumf>, %348, %cst_111 [2] : vector<2x8x8xf32> to vector<2x8xf32>
    %350 = vector.shape_cast %349 : vector<2x8xf32> to vector<2x8x1xf32>
    %351 = vector.broadcast %350 : vector<2x8x1xf32> to vector<2x8x8xf32>
    %352 = arith.subf %348, %351 : vector<2x8x8xf32>
    %353 = math.exp %352 : vector<2x8x8xf32>
    %cst_112 = arith.constant dense<0.000000e+00> : vector<2x8xf32>
    %354 = vector.multi_reduction <add>, %353, %cst_112 [2] : vector<2x8x8xf32> to vector<2x8xf32>
    %355 = vector.shape_cast %354 : vector<2x8xf32> to vector<2x8x1xf32>
    %356 = tpu.reciprocal %355 {approx = true} : vector<2x8x1xf32> -> vector<2x8x1xf32>
    %357 = vector.broadcast %356 : vector<2x8x1xf32> to vector<2x8x8xf32>
    %358 = arith.mulf %353, %357 : vector<2x8x8xf32>
    %359 = arith.truncf %358 : vector<2x8x8xf32> to vector<2x8x8xbf16>
    "tpu.trace_start"() <{level = 10 : i32, message = "bls,bsd->bld"}> : () -> ()
    %cst_113 = arith.constant dense<0.000000e+00> : vector<2x8x8xf32>
    %360 = tpu.matmul %359, %345, %cst_113 {dimension_numbers = #tpu.dot_dimension_numbers<[2], [1], [1], [2], [0, 0, 0, 1, 1, 2], [0], [0]>} : vector<2x8x8xbf16>, vector<2x8x8xbf16>, vector<2x8x8xf32> -> vector<2x8x8xf32>
    "tpu.trace_stop"() : () -> ()
    %361 = vector.shape_cast %360 : vector<2x8x8xf32> to vector<16x8xf32>
    %362 = vector.extract_strided_slice %300 {offsets = [0, 0, 24], sizes = [2, 8, 8], strides = [1, 1, 1]} : vector<2x8x32xbf16> to vector<2x8x8xbf16>
    %363 = vector.extract_strided_slice %302 {offsets = [0, 0, 24], sizes = [2, 8, 8], strides = [1, 1, 1]} : vector<2x8x32xbf16> to vector<2x8x8xbf16>
    %364 = vector.extract_strided_slice %304 {offsets = [0, 0, 24], sizes = [2, 8, 8], strides = [1, 1, 1]} : vector<2x8x32xbf16> to vector<2x8x8xbf16>
    "tpu.trace_start"() <{level = 10 : i32, message = "bld,bsd->bls"}> : () -> ()
    %cst_114 = arith.constant dense<0.000000e+00> : vector<2x8x8xf32>
    %365 = tpu.matmul %362, %363, %cst_114 {dimension_numbers = #tpu.dot_dimension_numbers<[2], [2], [1], [1], [0, 0, 0, 1, 1, 1], [0], [0]>} : vector<2x8x8xbf16>, vector<2x8x8xbf16>, vector<2x8x8xf32> -> vector<2x8x8xf32>
    "tpu.trace_stop"() : () -> ()
    %cst_115 = arith.constant 0.353553385 : f32
    %366 = vector.broadcast %cst_115 : f32 to vector<2x8x8xf32>
    %367 = arith.mulf %365, %366 : vector<2x8x8xf32>
    %cst_116 = arith.constant dense<0xFF800000> : vector<2x8xf32>
    %368 = vector.multi_reduction <maximumf>, %367, %cst_116 [2] : vector<2x8x8xf32> to vector<2x8xf32>
    %369 = vector.shape_cast %368 : vector<2x8xf32> to vector<2x8x1xf32>
    %370 = vector.broadcast %369 : vector<2x8x1xf32> to vector<2x8x8xf32>
    %371 = arith.subf %367, %370 : vector<2x8x8xf32>
    %372 = math.exp %371 : vector<2x8x8xf32>
    %cst_117 = arith.constant dense<0.000000e+00> : vector<2x8xf32>
    %373 = vector.multi_reduction <add>, %372, %cst_117 [2] : vector<2x8x8xf32> to vector<2x8xf32>
    %374 = vector.shape_cast %373 : vector<2x8xf32> to vector<2x8x1xf32>
    %375 = tpu.reciprocal %374 {approx = true} : vector<2x8x1xf32> -> vector<2x8x1xf32>
    %376 = vector.broadcast %375 : vector<2x8x1xf32> to vector<2x8x8xf32>
    %377 = arith.mulf %372, %376 : vector<2x8x8xf32>
    %378 = arith.truncf %377 : vector<2x8x8xf32> to vector<2x8x8xbf16>
    "tpu.trace_start"() <{level = 10 : i32, message = "bls,bsd->bld"}> : () -> ()
    %cst_118 = arith.constant dense<0.000000e+00> : vector<2x8x8xf32>
    %379 = tpu.matmul %378, %364, %cst_118 {dimension_numbers = #tpu.dot_dimension_numbers<[2], [1], [1], [2], [0, 0, 0, 1, 1, 2], [0], [0]>} : vector<2x8x8xbf16>, vector<2x8x8xbf16>, vector<2x8x8xf32> -> vector<2x8x8xf32>
    "tpu.trace_stop"() : () -> ()
    %380 = vector.shape_cast %379 : vector<2x8x8xf32> to vector<16x8xf32>
    %381 = tpu.concatenate %323, %342, %361, %380 in 1 : vector<16x8xf32>, vector<16x8xf32>, vector<16x8xf32>, vector<16x8xf32> -> vector<16x32xf32>
    %382 = arith.truncf %381 : vector<16x32xf32> to vector<16x32xbf16>
    %cst_119 = arith.constant dense<0.000000e+00> : vector<16x32xf32>
    %383 = tpu.matmul %382, %297, %cst_119 {dimension_numbers = #tpu.dot_dimension_numbers<[1], [0], [0], [1], [0, 0, 1, 1], [], []>} : vector<16x32xbf16>, vector<32x32xbf16>, vector<16x32xf32> -> vector<16x32xf32>
    %384 = vector.broadcast %298 : vector<1x32xf32> to vector<16x32xf32>
    %385 = arith.addf %383, %384 : vector<16x32xf32>
    %386 = arith.addf %287, %385 : vector<16x32xf32>
    %c14 = arith.constant 14 : index
    %c0_120 = arith.constant 0 : index
    %387 = vector.load %arg4[%c14, %c0_120] : memref<22x32xf32, #tpu.memory_space<vmem>>, vector<1x32xf32>
    %c15 = arith.constant 15 : index
    %c0_121 = arith.constant 0 : index
    %388 = vector.load %arg4[%c15, %c0_121] : memref<22x32xf32, #tpu.memory_space<vmem>>, vector<1x32xf32>
    %cst_122 = arith.constant dense<0.000000e+00> : vector<16xf32>
    %389 = vector.multi_reduction <add>, %386, %cst_122 [1] : vector<16x32xf32> to vector<16xf32>
    %390 = vector.shape_cast %389 : vector<16xf32> to vector<16x1xf32>
    %cst_123 = arith.constant 3.200000e+01 : f32
    %391 = vector.broadcast %cst_123 : f32 to vector<16x1xf32>
    %392 = arith.divf %390, %391 : vector<16x1xf32>
    %393 = vector.broadcast %392 : vector<16x1xf32> to vector<16x32xf32>
    %394 = arith.subf %386, %393 : vector<16x32xf32>
    %395 = arith.mulf %394, %394 : vector<16x32xf32>
    %cst_124 = arith.constant dense<0.000000e+00> : vector<16xf32>
    %396 = vector.multi_reduction <add>, %395, %cst_124 [1] : vector<16x32xf32> to vector<16xf32>
    %397 = vector.shape_cast %396 : vector<16xf32> to vector<16x1xf32>
    %cst_125 = arith.constant 3.200000e+01 : f32
    %398 = vector.broadcast %cst_125 : f32 to vector<16x1xf32>
    %399 = arith.divf %397, %398 : vector<16x1xf32>
    %cst_126 = arith.constant 9.99999974E-6 : f32
    %400 = vector.broadcast %cst_126 : f32 to vector<16x1xf32>
    %401 = arith.addf %399, %400 : vector<16x1xf32>
    %402 = math.rsqrt %401 : vector<16x1xf32>
    %403 = vector.broadcast %402 : vector<16x1xf32> to vector<16x32xf32>
    %404 = arith.mulf %394, %403 : vector<16x32xf32>
    %405 = vector.broadcast %387 : vector<1x32xf32> to vector<16x32xf32>
    %406 = arith.mulf %404, %405 : vector<16x32xf32>
    %407 = vector.broadcast %388 : vector<1x32xf32> to vector<16x32xf32>
    %408 = arith.addf %406, %407 : vector<16x32xf32>
    %c0_127 = arith.constant 0 : index
    %c448 = arith.constant 448 : index
    %409 = vector.load %arg2[%c0_127, %c448] : memref<32x768xbf16, #tpu.memory_space<vmem>>, vector<32x32xbf16>
    %410 = arith.truncf %408 : vector<16x32xf32> to vector<16x32xbf16>
    %cst_128 = arith.constant dense<0.000000e+00> : vector<16x32xf32>
    %411 = tpu.matmul %410, %409, %cst_128 {dimension_numbers = #tpu.dot_dimension_numbers<[1], [0], [0], [1], [0, 0, 1, 1], [], []>} : vector<16x32xbf16>, vector<32x32xbf16>, vector<16x32xf32> -> vector<16x32xf32>
    %c11 = arith.constant 11 : index
    %c0_129 = arith.constant 0 : index
    %412 = vector.load %arg4[%c11, %c0_129] : memref<22x32xf32, #tpu.memory_space<vmem>>, vector<1x32xf32>
    %413 = vector.broadcast %412 : vector<1x32xf32> to vector<16x32xf32>
    %414 = arith.addf %411, %413 : vector<16x32xf32>
    %c0_130 = arith.constant 0 : index
    %c480 = arith.constant 480 : index
    %415 = vector.load %arg2[%c0_130, %c480] : memref<32x768xbf16, #tpu.memory_space<vmem>>, vector<32x64xbf16>
    %416 = arith.truncf %3 : vector<16x32xf32> to vector<16x32xbf16>
    %cst_131 = arith.constant dense<0.000000e+00> : vector<16x64xf32>
    %417 = tpu.matmul %416, %415, %cst_131 {dimension_numbers = #tpu.dot_dimension_numbers<[1], [0], [0], [1], [0, 0, 1, 1], [], []>} : vector<16x32xbf16>, vector<32x64xbf16>, vector<16x64xf32> -> vector<16x64xf32>
    %c4_132 = arith.constant 4 : index
    %c0_133 = arith.constant 0 : index
    %418 = vector.load %arg5[%c4_132, %c0_133] : memref<6x96xf32, #tpu.memory_space<vmem>>, vector<1x64xf32>
    %419 = vector.broadcast %418 : vector<1x64xf32> to vector<16x64xf32>
    %420 = arith.addf %417, %419 : vector<16x64xf32>
    %421 = vector.extract_strided_slice %420 {offsets = [0, 0], sizes = [16, 32], strides = [1, 1]} : vector<16x64xf32> to vector<16x32xf32>
    %422 = vector.extract_strided_slice %420 {offsets = [0, 32], sizes = [16, 32], strides = [1, 1]} : vector<16x64xf32> to vector<16x32xf32>
    %c0_134 = arith.constant 0 : index
    %c544 = arith.constant 544 : index
    %423 = vector.load %arg2[%c0_134, %c544] : memref<32x768xbf16, #tpu.memory_space<vmem>>, vector<32x32xbf16>
    %c12 = arith.constant 12 : index
    %c0_135 = arith.constant 0 : index
    %424 = vector.load %arg4[%c12, %c0_135] : memref<22x32xf32, #tpu.memory_space<vmem>>, vector<1x32xf32>
    %425 = vector.shape_cast %414 : vector<16x32xf32> to vector<2x8x32xf32>
    %426 = arith.truncf %425 : vector<2x8x32xf32> to vector<2x8x32xbf16>
    %427 = vector.shape_cast %421 : vector<16x32xf32> to vector<2x8x32xf32>
    %428 = arith.truncf %427 : vector<2x8x32xf32> to vector<2x8x32xbf16>
    %429 = vector.shape_cast %422 : vector<16x32xf32> to vector<2x8x32xf32>
    %430 = arith.truncf %429 : vector<2x8x32xf32> to vector<2x8x32xbf16>
    %431 = vector.extract_strided_slice %426 {offsets = [0, 0, 0], sizes = [2, 8, 8], strides = [1, 1, 1]} : vector<2x8x32xbf16> to vector<2x8x8xbf16>
    %432 = vector.extract_strided_slice %428 {offsets = [0, 0, 0], sizes = [2, 8, 8], strides = [1, 1, 1]} : vector<2x8x32xbf16> to vector<2x8x8xbf16>
    %433 = vector.extract_strided_slice %430 {offsets = [0, 0, 0], sizes = [2, 8, 8], strides = [1, 1, 1]} : vector<2x8x32xbf16> to vector<2x8x8xbf16>
    "tpu.trace_start"() <{level = 10 : i32, message = "bld,bsd->bls"}> : () -> ()
    %cst_136 = arith.constant dense<0.000000e+00> : vector<2x8x8xf32>
    %434 = tpu.matmul %431, %432, %cst_136 {dimension_numbers = #tpu.dot_dimension_numbers<[2], [2], [1], [1], [0, 0, 0, 1, 1, 1], [0], [0]>} : vector<2x8x8xbf16>, vector<2x8x8xbf16>, vector<2x8x8xf32> -> vector<2x8x8xf32>
    "tpu.trace_stop"() : () -> ()
    %cst_137 = arith.constant 0.353553385 : f32
    %435 = vector.broadcast %cst_137 : f32 to vector<2x8x8xf32>
    %436 = arith.mulf %434, %435 : vector<2x8x8xf32>
    %cst_138 = arith.constant dense<0xFF800000> : vector<2x8xf32>
    %437 = vector.multi_reduction <maximumf>, %436, %cst_138 [2] : vector<2x8x8xf32> to vector<2x8xf32>
    %438 = vector.shape_cast %437 : vector<2x8xf32> to vector<2x8x1xf32>
    %439 = vector.broadcast %438 : vector<2x8x1xf32> to vector<2x8x8xf32>
    %440 = arith.subf %436, %439 : vector<2x8x8xf32>
    %441 = math.exp %440 : vector<2x8x8xf32>
    %cst_139 = arith.constant dense<0.000000e+00> : vector<2x8xf32>
    %442 = vector.multi_reduction <add>, %441, %cst_139 [2] : vector<2x8x8xf32> to vector<2x8xf32>
    %443 = vector.shape_cast %442 : vector<2x8xf32> to vector<2x8x1xf32>
    %444 = tpu.reciprocal %443 {approx = true} : vector<2x8x1xf32> -> vector<2x8x1xf32>
    %445 = vector.broadcast %444 : vector<2x8x1xf32> to vector<2x8x8xf32>
    %446 = arith.mulf %441, %445 : vector<2x8x8xf32>
    %447 = arith.truncf %446 : vector<2x8x8xf32> to vector<2x8x8xbf16>
    "tpu.trace_start"() <{level = 10 : i32, message = "bls,bsd->bld"}> : () -> ()
    %cst_140 = arith.constant dense<0.000000e+00> : vector<2x8x8xf32>
    %448 = tpu.matmul %447, %433, %cst_140 {dimension_numbers = #tpu.dot_dimension_numbers<[2], [1], [1], [2], [0, 0, 0, 1, 1, 2], [0], [0]>} : vector<2x8x8xbf16>, vector<2x8x8xbf16>, vector<2x8x8xf32> -> vector<2x8x8xf32>
    "tpu.trace_stop"() : () -> ()
    %449 = vector.shape_cast %448 : vector<2x8x8xf32> to vector<16x8xf32>
    %450 = vector.extract_strided_slice %426 {offsets = [0, 0, 8], sizes = [2, 8, 8], strides = [1, 1, 1]} : vector<2x8x32xbf16> to vector<2x8x8xbf16>
    %451 = vector.extract_strided_slice %428 {offsets = [0, 0, 8], sizes = [2, 8, 8], strides = [1, 1, 1]} : vector<2x8x32xbf16> to vector<2x8x8xbf16>
    %452 = vector.extract_strided_slice %430 {offsets = [0, 0, 8], sizes = [2, 8, 8], strides = [1, 1, 1]} : vector<2x8x32xbf16> to vector<2x8x8xbf16>
    "tpu.trace_start"() <{level = 10 : i32, message = "bld,bsd->bls"}> : () -> ()
    %cst_141 = arith.constant dense<0.000000e+00> : vector<2x8x8xf32>
    %453 = tpu.matmul %450, %451, %cst_141 {dimension_numbers = #tpu.dot_dimension_numbers<[2], [2], [1], [1], [0, 0, 0, 1, 1, 1], [0], [0]>} : vector<2x8x8xbf16>, vector<2x8x8xbf16>, vector<2x8x8xf32> -> vector<2x8x8xf32>
    "tpu.trace_stop"() : () -> ()
    %cst_142 = arith.constant 0.353553385 : f32
    %454 = vector.broadcast %cst_142 : f32 to vector<2x8x8xf32>
    %455 = arith.mulf %453, %454 : vector<2x8x8xf32>
    %cst_143 = arith.constant dense<0xFF800000> : vector<2x8xf32>
    %456 = vector.multi_reduction <maximumf>, %455, %cst_143 [2] : vector<2x8x8xf32> to vector<2x8xf32>
    %457 = vector.shape_cast %456 : vector<2x8xf32> to vector<2x8x1xf32>
    %458 = vector.broadcast %457 : vector<2x8x1xf32> to vector<2x8x8xf32>
    %459 = arith.subf %455, %458 : vector<2x8x8xf32>
    %460 = math.exp %459 : vector<2x8x8xf32>
    %cst_144 = arith.constant dense<0.000000e+00> : vector<2x8xf32>
    %461 = vector.multi_reduction <add>, %460, %cst_144 [2] : vector<2x8x8xf32> to vector<2x8xf32>
    %462 = vector.shape_cast %461 : vector<2x8xf32> to vector<2x8x1xf32>
    %463 = tpu.reciprocal %462 {approx = true} : vector<2x8x1xf32> -> vector<2x8x1xf32>
    %464 = vector.broadcast %463 : vector<2x8x1xf32> to vector<2x8x8xf32>
    %465 = arith.mulf %460, %464 : vector<2x8x8xf32>
    %466 = arith.truncf %465 : vector<2x8x8xf32> to vector<2x8x8xbf16>
    "tpu.trace_start"() <{level = 10 : i32, message = "bls,bsd->bld"}> : () -> ()
    %cst_145 = arith.constant dense<0.000000e+00> : vector<2x8x8xf32>
    %467 = tpu.matmul %466, %452, %cst_145 {dimension_numbers = #tpu.dot_dimension_numbers<[2], [1], [1], [2], [0, 0, 0, 1, 1, 2], [0], [0]>} : vector<2x8x8xbf16>, vector<2x8x8xbf16>, vector<2x8x8xf32> -> vector<2x8x8xf32>
    "tpu.trace_stop"() : () -> ()
    %468 = vector.shape_cast %467 : vector<2x8x8xf32> to vector<16x8xf32>
    %469 = vector.extract_strided_slice %426 {offsets = [0, 0, 16], sizes = [2, 8, 8], strides = [1, 1, 1]} : vector<2x8x32xbf16> to vector<2x8x8xbf16>
    %470 = vector.extract_strided_slice %428 {offsets = [0, 0, 16], sizes = [2, 8, 8], strides = [1, 1, 1]} : vector<2x8x32xbf16> to vector<2x8x8xbf16>
    %471 = vector.extract_strided_slice %430 {offsets = [0, 0, 16], sizes = [2, 8, 8], strides = [1, 1, 1]} : vector<2x8x32xbf16> to vector<2x8x8xbf16>
    "tpu.trace_start"() <{level = 10 : i32, message = "bld,bsd->bls"}> : () -> ()
    %cst_146 = arith.constant dense<0.000000e+00> : vector<2x8x8xf32>
    %472 = tpu.matmul %469, %470, %cst_146 {dimension_numbers = #tpu.dot_dimension_numbers<[2], [2], [1], [1], [0, 0, 0, 1, 1, 1], [0], [0]>} : vector<2x8x8xbf16>, vector<2x8x8xbf16>, vector<2x8x8xf32> -> vector<2x8x8xf32>
    "tpu.trace_stop"() : () -> ()
    %cst_147 = arith.constant 0.353553385 : f32
    %473 = vector.broadcast %cst_147 : f32 to vector<2x8x8xf32>
    %474 = arith.mulf %472, %473 : vector<2x8x8xf32>
    %cst_148 = arith.constant dense<0xFF800000> : vector<2x8xf32>
    %475 = vector.multi_reduction <maximumf>, %474, %cst_148 [2] : vector<2x8x8xf32> to vector<2x8xf32>
    %476 = vector.shape_cast %475 : vector<2x8xf32> to vector<2x8x1xf32>
    %477 = vector.broadcast %476 : vector<2x8x1xf32> to vector<2x8x8xf32>
    %478 = arith.subf %474, %477 : vector<2x8x8xf32>
    %479 = math.exp %478 : vector<2x8x8xf32>
    %cst_149 = arith.constant dense<0.000000e+00> : vector<2x8xf32>
    %480 = vector.multi_reduction <add>, %479, %cst_149 [2] : vector<2x8x8xf32> to vector<2x8xf32>
    %481 = vector.shape_cast %480 : vector<2x8xf32> to vector<2x8x1xf32>
    %482 = tpu.reciprocal %481 {approx = true} : vector<2x8x1xf32> -> vector<2x8x1xf32>
    %483 = vector.broadcast %482 : vector<2x8x1xf32> to vector<2x8x8xf32>
    %484 = arith.mulf %479, %483 : vector<2x8x8xf32>
    %485 = arith.truncf %484 : vector<2x8x8xf32> to vector<2x8x8xbf16>
    "tpu.trace_start"() <{level = 10 : i32, message = "bls,bsd->bld"}> : () -> ()
    %cst_150 = arith.constant dense<0.000000e+00> : vector<2x8x8xf32>
    %486 = tpu.matmul %485, %471, %cst_150 {dimension_numbers = #tpu.dot_dimension_numbers<[2], [1], [1], [2], [0, 0, 0, 1, 1, 2], [0], [0]>} : vector<2x8x8xbf16>, vector<2x8x8xbf16>, vector<2x8x8xf32> -> vector<2x8x8xf32>
    "tpu.trace_stop"() : () -> ()
    %487 = vector.shape_cast %486 : vector<2x8x8xf32> to vector<16x8xf32>
    %488 = vector.extract_strided_slice %426 {offsets = [0, 0, 24], sizes = [2, 8, 8], strides = [1, 1, 1]} : vector<2x8x32xbf16> to vector<2x8x8xbf16>
    %489 = vector.extract_strided_slice %428 {offsets = [0, 0, 24], sizes = [2, 8, 8], strides = [1, 1, 1]} : vector<2x8x32xbf16> to vector<2x8x8xbf16>
    %490 = vector.extract_strided_slice %430 {offsets = [0, 0, 24], sizes = [2, 8, 8], strides = [1, 1, 1]} : vector<2x8x32xbf16> to vector<2x8x8xbf16>
    "tpu.trace_start"() <{level = 10 : i32, message = "bld,bsd->bls"}> : () -> ()
    %cst_151 = arith.constant dense<0.000000e+00> : vector<2x8x8xf32>
    %491 = tpu.matmul %488, %489, %cst_151 {dimension_numbers = #tpu.dot_dimension_numbers<[2], [2], [1], [1], [0, 0, 0, 1, 1, 1], [0], [0]>} : vector<2x8x8xbf16>, vector<2x8x8xbf16>, vector<2x8x8xf32> -> vector<2x8x8xf32>
    "tpu.trace_stop"() : () -> ()
    %cst_152 = arith.constant 0.353553385 : f32
    %492 = vector.broadcast %cst_152 : f32 to vector<2x8x8xf32>
    %493 = arith.mulf %491, %492 : vector<2x8x8xf32>
    %cst_153 = arith.constant dense<0xFF800000> : vector<2x8xf32>
    %494 = vector.multi_reduction <maximumf>, %493, %cst_153 [2] : vector<2x8x8xf32> to vector<2x8xf32>
    %495 = vector.shape_cast %494 : vector<2x8xf32> to vector<2x8x1xf32>
    %496 = vector.broadcast %495 : vector<2x8x1xf32> to vector<2x8x8xf32>
    %497 = arith.subf %493, %496 : vector<2x8x8xf32>
    %498 = math.exp %497 : vector<2x8x8xf32>
    %cst_154 = arith.constant dense<0.000000e+00> : vector<2x8xf32>
    %499 = vector.multi_reduction <add>, %498, %cst_154 [2] : vector<2x8x8xf32> to vector<2x8xf32>
    %500 = vector.shape_cast %499 : vector<2x8xf32> to vector<2x8x1xf32>
    %501 = tpu.reciprocal %500 {approx = true} : vector<2x8x1xf32> -> vector<2x8x1xf32>
    %502 = vector.broadcast %501 : vector<2x8x1xf32> to vector<2x8x8xf32>
    %503 = arith.mulf %498, %502 : vector<2x8x8xf32>
    %504 = arith.truncf %503 : vector<2x8x8xf32> to vector<2x8x8xbf16>
    "tpu.trace_start"() <{level = 10 : i32, message = "bls,bsd->bld"}> : () -> ()
    %cst_155 = arith.constant dense<0.000000e+00> : vector<2x8x8xf32>
    %505 = tpu.matmul %504, %490, %cst_155 {dimension_numbers = #tpu.dot_dimension_numbers<[2], [1], [1], [2], [0, 0, 0, 1, 1, 2], [0], [0]>} : vector<2x8x8xbf16>, vector<2x8x8xbf16>, vector<2x8x8xf32> -> vector<2x8x8xf32>
    "tpu.trace_stop"() : () -> ()
    %506 = vector.shape_cast %505 : vector<2x8x8xf32> to vector<16x8xf32>
    %507 = tpu.concatenate %449, %468, %487, %506 in 1 : vector<16x8xf32>, vector<16x8xf32>, vector<16x8xf32>, vector<16x8xf32> -> vector<16x32xf32>
    %508 = arith.truncf %507 : vector<16x32xf32> to vector<16x32xbf16>
    %cst_156 = arith.constant dense<0.000000e+00> : vector<16x32xf32>
    %509 = tpu.matmul %508, %423, %cst_156 {dimension_numbers = #tpu.dot_dimension_numbers<[1], [0], [0], [1], [0, 0, 1, 1], [], []>} : vector<16x32xbf16>, vector<32x32xbf16>, vector<16x32xf32> -> vector<16x32xf32>
    %510 = vector.broadcast %424 : vector<1x32xf32> to vector<16x32xf32>
    %511 = arith.addf %509, %510 : vector<16x32xf32>
    %512 = arith.addf %408, %511 : vector<16x32xf32>
    %c16 = arith.constant 16 : index
    %c0_157 = arith.constant 0 : index
    %513 = vector.load %arg4[%c16, %c0_157] : memref<22x32xf32, #tpu.memory_space<vmem>>, vector<1x32xf32>
    %c17 = arith.constant 17 : index
    %c0_158 = arith.constant 0 : index
    %514 = vector.load %arg4[%c17, %c0_158] : memref<22x32xf32, #tpu.memory_space<vmem>>, vector<1x32xf32>
    %cst_159 = arith.constant dense<0.000000e+00> : vector<16xf32>
    %515 = vector.multi_reduction <add>, %512, %cst_159 [1] : vector<16x32xf32> to vector<16xf32>
    %516 = vector.shape_cast %515 : vector<16xf32> to vector<16x1xf32>
    %cst_160 = arith.constant 3.200000e+01 : f32
    %517 = vector.broadcast %cst_160 : f32 to vector<16x1xf32>
    %518 = arith.divf %516, %517 : vector<16x1xf32>
    %519 = vector.broadcast %518 : vector<16x1xf32> to vector<16x32xf32>
    %520 = arith.subf %512, %519 : vector<16x32xf32>
    %521 = arith.mulf %520, %520 : vector<16x32xf32>
    %cst_161 = arith.constant dense<0.000000e+00> : vector<16xf32>
    %522 = vector.multi_reduction <add>, %521, %cst_161 [1] : vector<16x32xf32> to vector<16xf32>
    %523 = vector.shape_cast %522 : vector<16xf32> to vector<16x1xf32>
    %cst_162 = arith.constant 3.200000e+01 : f32
    %524 = vector.broadcast %cst_162 : f32 to vector<16x1xf32>
    %525 = arith.divf %523, %524 : vector<16x1xf32>
    %cst_163 = arith.constant 9.99999974E-6 : f32
    %526 = vector.broadcast %cst_163 : f32 to vector<16x1xf32>
    %527 = arith.addf %525, %526 : vector<16x1xf32>
    %528 = math.rsqrt %527 : vector<16x1xf32>
    %529 = vector.broadcast %528 : vector<16x1xf32> to vector<16x32xf32>
    %530 = arith.mulf %520, %529 : vector<16x32xf32>
    %531 = vector.broadcast %513 : vector<1x32xf32> to vector<16x32xf32>
    %532 = arith.mulf %530, %531 : vector<16x32xf32>
    %533 = vector.broadcast %514 : vector<1x32xf32> to vector<16x32xf32>
    %534 = arith.addf %532, %533 : vector<16x32xf32>
    %c0_164 = arith.constant 0 : index
    %c576 = arith.constant 576 : index
    %535 = vector.load %arg2[%c0_164, %c576] : memref<32x768xbf16, #tpu.memory_space<vmem>>, vector<32x64xbf16>
    %536 = arith.truncf %534 : vector<16x32xf32> to vector<16x32xbf16>
    %cst_165 = arith.constant dense<0.000000e+00> : vector<16x64xf32>
    %537 = tpu.matmul %536, %535, %cst_165 {dimension_numbers = #tpu.dot_dimension_numbers<[1], [0], [0], [1], [0, 0, 1, 1], [], []>} : vector<16x32xbf16>, vector<32x64xbf16>, vector<16x64xf32> -> vector<16x64xf32>
    %c5_166 = arith.constant 5 : index
    %c0_167 = arith.constant 0 : index
    %538 = vector.load %arg5[%c5_166, %c0_167] : memref<6x96xf32, #tpu.memory_space<vmem>>, vector<1x64xf32>
    %539 = vector.broadcast %538 : vector<1x64xf32> to vector<16x64xf32>
    %540 = arith.addf %537, %539 : vector<16x64xf32>
    %cst_168 = arith.constant 0.000000e+00 : f32
    %541 = vector.broadcast %cst_168 : f32 to vector<16x64xf32>
    %542 = arith.maximumf %540, %541 : vector<16x64xf32>
    %c0_169 = arith.constant 0 : index
    %c32 = arith.constant 32 : index
    %543 = vector.load %arg3[%c0_169, %c32] : memref<64x64xbf16, #tpu.memory_space<vmem>>, vector<64x32xbf16>
    %544 = arith.truncf %542 : vector<16x64xf32> to vector<16x64xbf16>
    %cst_170 = arith.constant dense<0.000000e+00> : vector<16x32xf32>
    %545 = tpu.matmul %544, %543, %cst_170 {dimension_numbers = #tpu.dot_dimension_numbers<[1], [0], [0], [1], [0, 0, 1, 1], [], []>} : vector<16x64xbf16>, vector<64x32xbf16>, vector<16x32xf32> -> vector<16x32xf32>
    %c13 = arith.constant 13 : index
    %c0_171 = arith.constant 0 : index
    %546 = vector.load %arg4[%c13, %c0_171] : memref<22x32xf32, #tpu.memory_space<vmem>>, vector<1x32xf32>
    %547 = vector.broadcast %546 : vector<1x32xf32> to vector<16x32xf32>
    %548 = arith.addf %545, %547 : vector<16x32xf32>
    %549 = arith.addf %534, %548 : vector<16x32xf32>
    %c18 = arith.constant 18 : index
    %c0_172 = arith.constant 0 : index
    %550 = vector.load %arg4[%c18, %c0_172] : memref<22x32xf32, #tpu.memory_space<vmem>>, vector<1x32xf32>
    %c19 = arith.constant 19 : index
    %c0_173 = arith.constant 0 : index
    %551 = vector.load %arg4[%c19, %c0_173] : memref<22x32xf32, #tpu.memory_space<vmem>>, vector<1x32xf32>
    %cst_174 = arith.constant dense<0.000000e+00> : vector<16xf32>
    %552 = vector.multi_reduction <add>, %549, %cst_174 [1] : vector<16x32xf32> to vector<16xf32>
    %553 = vector.shape_cast %552 : vector<16xf32> to vector<16x1xf32>
    %cst_175 = arith.constant 3.200000e+01 : f32
    %554 = vector.broadcast %cst_175 : f32 to vector<16x1xf32>
    %555 = arith.divf %553, %554 : vector<16x1xf32>
    %556 = vector.broadcast %555 : vector<16x1xf32> to vector<16x32xf32>
    %557 = arith.subf %549, %556 : vector<16x32xf32>
    %558 = arith.mulf %557, %557 : vector<16x32xf32>
    %cst_176 = arith.constant dense<0.000000e+00> : vector<16xf32>
    %559 = vector.multi_reduction <add>, %558, %cst_176 [1] : vector<16x32xf32> to vector<16xf32>
    %560 = vector.shape_cast %559 : vector<16xf32> to vector<16x1xf32>
    %cst_177 = arith.constant 3.200000e+01 : f32
    %561 = vector.broadcast %cst_177 : f32 to vector<16x1xf32>
    %562 = arith.divf %560, %561 : vector<16x1xf32>
    %cst_178 = arith.constant 9.99999974E-6 : f32
    %563 = vector.broadcast %cst_178 : f32 to vector<16x1xf32>
    %564 = arith.addf %562, %563 : vector<16x1xf32>
    %565 = math.rsqrt %564 : vector<16x1xf32>
    %566 = vector.broadcast %565 : vector<16x1xf32> to vector<16x32xf32>
    %567 = arith.mulf %557, %566 : vector<16x32xf32>
    %568 = vector.broadcast %550 : vector<1x32xf32> to vector<16x32xf32>
    %569 = arith.mulf %567, %568 : vector<16x32xf32>
    %570 = vector.broadcast %551 : vector<1x32xf32> to vector<16x32xf32>
    %571 = arith.addf %569, %570 : vector<16x32xf32>
    %c20 = arith.constant 20 : index
    %c0_179 = arith.constant 0 : index
    %572 = vector.load %arg4[%c20, %c0_179] : memref<22x32xf32, #tpu.memory_space<vmem>>, vector<1x32xf32>
    %c21 = arith.constant 21 : index
    %c0_180 = arith.constant 0 : index
    %573 = vector.load %arg4[%c21, %c0_180] : memref<22x32xf32, #tpu.memory_space<vmem>>, vector<1x32xf32>
    %cst_181 = arith.constant dense<0.000000e+00> : vector<16xf32>
    %574 = vector.multi_reduction <add>, %571, %cst_181 [1] : vector<16x32xf32> to vector<16xf32>
    %575 = vector.shape_cast %574 : vector<16xf32> to vector<16x1xf32>
    %cst_182 = arith.constant 3.200000e+01 : f32
    %576 = vector.broadcast %cst_182 : f32 to vector<16x1xf32>
    %577 = arith.divf %575, %576 : vector<16x1xf32>
    %578 = vector.broadcast %577 : vector<16x1xf32> to vector<16x32xf32>
    %579 = arith.subf %571, %578 : vector<16x32xf32>
    %580 = arith.mulf %579, %579 : vector<16x32xf32>
    %cst_183 = arith.constant dense<0.000000e+00> : vector<16xf32>
    %581 = vector.multi_reduction <add>, %580, %cst_183 [1] : vector<16x32xf32> to vector<16xf32>
    %582 = vector.shape_cast %581 : vector<16xf32> to vector<16x1xf32>
    %cst_184 = arith.constant 3.200000e+01 : f32
    %583 = vector.broadcast %cst_184 : f32 to vector<16x1xf32>
    %584 = arith.divf %582, %583 : vector<16x1xf32>
    %cst_185 = arith.constant 9.99999974E-6 : f32
    %585 = vector.broadcast %cst_185 : f32 to vector<16x1xf32>
    %586 = arith.addf %584, %585 : vector<16x1xf32>
    %587 = math.rsqrt %586 : vector<16x1xf32>
    %588 = vector.broadcast %587 : vector<16x1xf32> to vector<16x32xf32>
    %589 = arith.mulf %579, %588 : vector<16x32xf32>
    %590 = vector.broadcast %572 : vector<1x32xf32> to vector<16x32xf32>
    %591 = arith.mulf %589, %590 : vector<16x32xf32>
    %592 = vector.broadcast %573 : vector<1x32xf32> to vector<16x32xf32>
    %593 = arith.addf %591, %592 : vector<16x32xf32>
    %c0_186 = arith.constant 0 : index
    %c640 = arith.constant 640 : index
    %594 = vector.load %arg2[%c0_186, %c640] : memref<32x768xbf16, #tpu.memory_space<vmem>>, vector<32x128xbf16>
    %595 = arith.truncf %593 : vector<16x32xf32> to vector<16x32xbf16>
    %cst_187 = arith.constant dense<0.000000e+00> : vector<16x128xf32>
    %596 = tpu.matmul %595, %594, %cst_187 {dimension_numbers = #tpu.dot_dimension_numbers<[1], [0], [0], [1], [0, 0, 1, 1], [], []>} : vector<16x32xbf16>, vector<32x128xbf16>, vector<16x128xf32> -> vector<16x128xf32>
    %c0_188 = arith.constant 0 : index
    %c0_189 = arith.constant 0 : index
    %597 = vector.load %arg6[%c0_188, %c0_189] : memref<1x128xf32, #tpu.memory_space<vmem>>, vector<1x128xf32>
    %598 = vector.broadcast %597 : vector<1x128xf32> to vector<16x128xf32>
    %599 = arith.addf %596, %598 : vector<16x128xf32>
    %c0_190 = arith.constant 0 : index
    %c0_191 = arith.constant 0 : index
    %600 = vector.load %arg7[%c0_190, %c0_191] : memref<16x128xf32, #tpu.memory_space<vmem>>, vector<16x128xf32>
    tpu.vector_store %arg7[%c0_190, %c0_191], %599 {strides = array<i32>} : memref<16x128xf32, #tpu.memory_space<vmem>>, vector<16x128xf32>,
    return
  }
}

</mosaic_0001>

<bundles_post_ra>
// kernel: _lambda_.1
= control target key start
LH: loop header
LB: loop body
LE: loop exit
PB: predicated region body
PF: predicated region fallthrough
CT: control target
= control target key end

     0   :  { %v6158_v0 = vmov 0.0   ;;  %vm6159_vm0 = vmmov 0   ;;  %vm53_vm1 = vcmask 261120   ;;  %vm104_vm2 = vcmask 64512   ;;  %s6161_s11 = smov 64   ;;  %s6162_s12 = smov 88   ;;  %s7291_s2 = inlined_call_operand.vmem [shape: bf16[32,768], index: 2, kind: input, shape index: {}]   ;;  %s7292_s0 = inlined_call_operand.vmem [shape: f32[2,8,32], index: 0, kind: input, shape index: {}]   ;;  %s7293_s5 = inlined_call_operand.vmem [shape: f32[6,96], index: 5, kind: input, shape index: {}]   ;;  %s7294_s4 = inlined_call_operand.vmem [shape: f32[22,32], index: 4, kind: input, shape index: {}]   ;;  %s7295_s1 = inlined_call_operand.vmem [shape: f32[2,8,32], index: 1, kind: input, shape index: {}]   ;;  %s7296_s3 = inlined_call_operand.vmem [shape: bf16[64,64], index: 3, kind: input, shape index: {}]   ;;  %s7297_s6 = inlined_call_operand.vmem [shape: f32[1,128], index: 6, kind: input, shape index: {}]   ;;  %s7298_s7 = inlined_call_operand.vmem [shape: f32[16,128], index: 7, kind: output, shape index: {}]  }
   0x1   :  { %5377 = vmatprep.subr.bf16.mxu0 %v6158_v0  ;;  %v6219_v1 = vld [vmem:[%s7291_s2] ss:$24 sps:$4 sm:$0xff]   ;;  %5381 = vmatprep.mubr.msk.bf16.mxu0 %vm6159_vm0, %v6158_v0  ;;  %v6230_v2 = vld [vmem:[%s7291_s2 + $0x30] ss:$24 sps:$4 sm:$0xff]   ;;  %vm231_vm3 = vcmask 1043456   ;;  %s6163_s13 = smov 120  }
   0x2   :  { %5385 = vmatprep.subr.bf16.mxu1 %v6158_v0  ;;  %5387 = vmatprep.mubr.msk.bf16.mxu1 %vm6159_vm0, %v6158_v0  ;;  %v6235_v3 = vld [vmem:[%s7292_s0] sm:$0xff]  ;;  %v6240_v4 = vld [vmem:[%s7292_s0 + $0x8] sm:$0xff]  ;;  %s6160_s0 = smov 96   ;;  %s6164_s14 = smov 56   ;;  %vm1015_vm4 = vcmask 130048   ;;  %vm1018_vm5 = vcmask 195584  }
   0x3   :  { %5378 = vmatpush3.bf16.msra.mxu0 %v6219_v1  ;;  %v35_v5 = vpack.c.bf16 %v6240_v4, %v6235_v3  ;;  %v5060_v6 = vld [vmem:[%s7293_s5] ss:$0 sm:$0xff]  ;;  %s6165_s15 = smov 80   ;;  %s6166_s16 = smov 112   ;;  %vm2363_vm6 = vcmask 523264  }
   0x4   :  { %5379 = vmatprep.subr.bf16.mxu0 %v6158_v0  ;;  %s6167_s17 = smov 48   ;;  %s6168_s18 = smov 72  }
   0x5   :  { %s6169_s19 = smov 104   ;;  %s6170_s20 = smov 40  }
   0x6   :  { %s6171_s21 = smov 32   ;;  %s6172_s22 = smov 8  }
   0x7   :  { %5380 = vmatpush3.bf16.msra.mxu0 %v6230_v2  ;;  %s6173_s23 = smov 16   ;;  %s6174_s24 = smov 24  }
   0x8   :  { %5391 = vmatprep.subr.bf16.mxu0 %v6158_v0 }
   0xa   :  { %5382 = vmatmul.mubr.msk.bf16.vlgmr.msra.gmra.mrb[0].mxu0 %vm53_vm1, %v35_v5 }
   0xb   :  { %5393 = vmatprep.mubr.msk.bf16.mxu0 %vm6159_vm0, %v6158_v0 }
  0xdd   :  { %v91_v7 = vpop.f32.mrb[0].mxu0 }
  0xde   :  { %v92_v8 = vadd.f32 %v5060_v6, %v91_v7  ;;  %v5383_v9 = vpop.f32.mrb[1].mxu0 }
  0xdf   :  { %v94_v10 = vpop.f32.mrb[2].mxu0 }
  0xe0   :  { %v6253_v11 = vpack.c.bf16 %v92_v8, %v92_v8  ;;  %v95_v12 = vadd.f32 %v5060_v6, %v94_v10  ;;  %v5384_v13 = vpop.f32.mrb[3].mxu0 }
  0xe2   :  { %102 = vrot.lane.b32.xlu0 %v6253_v11, %s6160_s0  ;;  %v6257_v14 = vpack.c.bf16 %v95_v12, %v95_v12 }
  0xe6   :  { %152 = vrot.lane.b32.xlu0 %v6257_v14, %s6160_s0 }
 0x154   :  { %v103_v15 = vpop.permute.xlu0 %102 }
 0x155   :  { %v109_v16 = vsel %vm104_vm2, %v103_v15, 0 }
 0x156   :  { %5386 = vmatpush3.bf16.xpose.msra.mxu1 %v109_v16 }
 0x157   :  { %5397 = vmatprep.subr.bf16.mxu1 %v6158_v0 }
 0x158   :  { %v153_v17 = vpop.permute.xlu0 %152 }
 0x159   :  { %v158_v18 = vsel %vm104_vm2, %v153_v17, 0 }
 0x15a   :  { %5392 = vmatpush3.bf16.xpose.msra.mxu0 %v158_v18 }
 0x15b   :  { %5403 = vmatprep.subr.bf16.mxu0 %v6158_v0 }
 0x15d   :  { %5388 = vmatmul.mubr.msk.bf16.vlgmr.msra.gmra.mrb[0].mxu1 %vm104_vm2, %v6253_v11 }
 0x15e   :  { %5399 = vmatprep.mubr.msk.bf16.mxu1 %vm6159_vm0, %v6158_v0 }
 0x161   :  { %5394 = vmatmul.mubr.msk.bf16.vlgmr.msra.gmra.mrb[4].mxu0 %vm104_vm2, %v6257_v14 }
 0x162   :  { %5405 = vmatprep.mubr.msk.bf16.mxu0 %vm6159_vm0, %v6158_v0 }
 0x230   :  { %v145_v19 = vpop.f32.mrb[0].mxu1 }
 0x231   :  { %v200_v20 = vmul.f32 0.35355338, %v145_v19  ;;  %v5389_v21 = vpop.f32.mrb[1].mxu1 }
 0x232   :  { %v148_v22 = vpop.f32.mrb[2].mxu1 }
 0x233   :  { %v5390_v23 = vpop.f32.mrb[3].mxu1  ;;  %v202_v24 = vsel %vm104_vm2, %v200_v20, -inf }
 0x234   :  { %203 = vmax.xlane.f32.xlu1 %v202_v24  ;;  %v194_v25 = vpop.f32.mrb[4].mxu0 }
 0x235   :  { %v201_v26 = vmul.f32 0.35355338, %v194_v25  ;;  %v5395_v27 = vpop.f32.mrb[5].mxu0 }
 0x236   :  { %v197_v28 = vpop.f32.mrb[6].mxu0 }
 0x237   :  { %v5396_v29 = vpop.f32.mrb[7].mxu0  ;;  %v205_v30 = vsel %vm104_vm2, %v201_v26, -inf }
 0x238   :  { %206 = vmax.xlane.f32.xlu1 %v205_v30 }
 0x249   :  { %226 = vrot.lane.b32.xlu1 %v6253_v11, %s6161_s11 }
 0x24d   :  { %275 = vrot.lane.b32.xlu1 %v6257_v14, %s6161_s11 }
 0x251   :  { %325 = vrot.lane.b32.xlu1 %v6253_v11, %s6162_s12 }
 0x2c1   :  { %v204_v31 = vpop.xlane.xlu1 %203 }
 0x2c2   :  { %v208_v32 = vsub.f32 %v200_v20, %v204_v31 }
 0x2c4   :  { %v210_v33 = vmul.f32 1.442695, %v208_v32 }
 0x2c5   :  { %v207_v34 = vpop.xlane.xlu1 %206 }
 0x2c6   :  { %6002 = vpow2.f32 %v210_v33  ;;  %v209_v35 = vsub.f32 %v201_v26, %v207_v34 }
 0x2c8   :  { %v212_v36 = vmul.f32 1.442695, %v209_v35 }
 0x2c9   :  { %v227_v37 = vpop.permute.xlu1 %226 }
 0x2ca   :  { %6004 = vpow2.f32 %v212_v36  ;;  %v233_v38 = vsel %vm231_vm3, %v227_v37, 0 }
 0x2cb   :  { %5398 = vmatpush3.bf16.msra.mxu1 %v233_v38 }
 0x2cc   :  { %5409 = vmatprep.subr.bf16.mxu1 %v6158_v0 }
 0x2cd   :  { %v276_v39 = vpop.permute.xlu1 %275 }
 0x2ce   :  { %v281_v40 = vsel %vm231_vm3, %v276_v39, 0 }
 0x2cf   :  { %5404 = vmatpush3.bf16.msra.mxu0 %v281_v40 }
 0x2d0   :  { %v6003_v41 = vpop.eup %6002  ;;  %5415 = vmatprep.subr.bf16.mxu0 %v6158_v0 }
 0x2d1   :  { %v214_v42 = vsel %vm104_vm2, %v6003_v41, 0.0  ;;  %v326_v45 = vpop.permute.xlu1 %325 }
 0x2d2   :  { %215 = vadd.xlane.f32.xlu0 %v214_v42  ;;  %v331_v52 = vsel %vm104_vm2, %v326_v45, 0 }
 0x2d4   :  { %v6005_v43 = vpop.eup %6004 }
 0x2d5   :  { %v217_v44 = vsel %vm104_vm2, %v6005_v43, 0.0 }
 0x2d6   :  { %218 = vadd.xlane.f32.xlu1 %v217_v44 }
 0x2e7   :  { %375 = vrot.lane.b32.xlu1 %v6257_v14, %s6162_s12 }
 0x2e8   :  { %323 = vrot.lane.b32.xlu0 %v6253_v11, %s6163_s13 }
 0x2eb   :  { %373 = vrot.lane.b32.xlu1 %v6257_v14, %s6163_s13 }
 0x35f   :  { %v216_v46 = vpop.xlane.xlu0 %215 }
 0x360   :  { %6006 = vrcp.f32 %v216_v46 }
 0x363   :  { %v219_v47 = vpop.xlane.xlu1 %218  ;;  %v324_v57 = vpop.permute.xlu0 %323 }
 0x364   :  { %6008 = vrcp.f32 %v219_v47 }
 0x367   :  { %v376_v54 = vpop.permute.xlu1 %375 }
 0x368   :  { %v381_v56 = vsel %vm104_vm2, %v376_v54, 0 }
 0x36a   :  { %v6007_v48 = vpop.eup %6006 }
 0x36b   :  { %v222_v49 = vmul.f32 %v6007_v48, %v6003_v41  ;;  %v374_v58 = vpop.permute.xlu1 %373 }
 0x36d   :  { %v224_v50 = vpack.c.bf16 %v222_v49, %v222_v49 }
 0x36e   :  { %v6009_v51 = vpop.eup %6008 }
 0x36f   :  { %5400 = vmatmul.mubr.msk.bf16.vlgmr.msra.gmra.mrb[4].mxu1 %vm104_vm2, %v224_v50  ;;  %v223_v53 = vmul.f32 %v6009_v51, %v6005_v43 }
 0x370   :  { %5410 = vmatpush3.bf16.xpose.msra.mxu1 %v331_v52  ;;  %5411 = vmatprep.mubr.msk.bf16.mxu1 %vm6159_vm0, %v6158_v0 }
 0x371   :  { %v225_v55 = vpack.c.bf16 %v223_v53, %v223_v53  ;;  %5421 = vmatprep.subr.bf16.mxu1 %v6158_v0 }
 0x373   :  { %5406 = vmatmul.mubr.msk.bf16.vlgmr.msra.gmra.mrb[8].mxu0 %vm104_vm2, %v225_v55 }
 0x374   :  { %5416 = vmatpush3.bf16.xpose.msra.mxu0 %v381_v56  ;;  %5417 = vmatprep.mubr.msk.bf16.mxu0 %vm6159_vm0, %v6158_v0 }
 0x375   :  { %5427 = vmatprep.subr.bf16.mxu0 %v6158_v0 }
 0x377   :  { %5412 = vmatmul.mubr.msk.bf16.vlgmr.msra.gmra.mrb[8].mxu1 %vm104_vm2, %v324_v57 }
 0x378   :  { %5423 = vmatprep.mubr.msk.bf16.mxu1 %vm6159_vm0, %v6158_v0 }
 0x37b   :  { %5418 = vmatmul.mubr.msk.bf16.vlgmr.msra.gmra.mrb[12].mxu0 %vm104_vm2, %v374_v58 }
 0x37c   :  { %5429 = vmatprep.mubr.msk.bf16.mxu0 %vm6159_vm0, %v6158_v0 }
 0x442   :  { %v6309_v59 = vpop.f32.mrb[4].mxu1 }
 0x443   :  { %v5401_v60 = vpop.f32.mrb[5].mxu1 }
 0x444   :  { %v272_v61 = vpop.f32.mrb[6].mxu1 }
 0x445   :  { %v5402_v62 = vpop.f32.mrb[7].mxu1 }
 0x446   :  { %v6311_v63 = vpop.f32.mrb[8].mxu0 }
 0x447   :  { %v5407_v5 = vpop.f32.mrb[9].mxu0 }
 0x448   :  { %v320_v6 = vpop.f32.mrb[10].mxu0 }
 0x449   :  { %v5408_v7 = vpop.f32.mrb[11].mxu0 }
 0x44a   :  { %v367_v8 = vpop.f32.mrb[8].mxu1 }
 0x44b   :  { %v423_v9 = vmul.f32 0.35355338, %v367_v8  ;;  %v5413_v10 = vpop.f32.mrb[9].mxu1 }
 0x44c   :  { %v370_v12 = vpop.f32.mrb[10].mxu1 }
 0x44d   :  { %v5414_v13 = vpop.f32.mrb[11].mxu1  ;;  %v425_v15 = vsel %vm104_vm2, %v423_v9, -inf }
 0x44e   :  { %426 = vmax.xlane.f32.xlu1 %v425_v15  ;;  %v417_v16 = vpop.f32.mrb[12].mxu0 }
 0x44f   :  { %v424_v17 = vmul.f32 0.35355338, %v417_v16  ;;  %v5419_v18 = vpop.f32.mrb[13].mxu0 }
 0x450   :  { %v420_v19 = vpop.f32.mrb[14].mxu0 }
 0x451   :  { %v5420_v20 = vpop.f32.mrb[15].mxu0  ;;  %v428_v21 = vsel %vm104_vm2, %v424_v17, -inf }
 0x452   :  { %429 = vmax.xlane.f32.xlu0 %v428_v21 }
 0x45f   :  { %449 = vrot.lane.b32.xlu1 %v6253_v11, %s6164_s14 }
 0x463   :  { %547 = vrot.lane.b32.xlu1 %v6253_v11, %s6165_s15 }
 0x468   :  { %497 = vrot.lane.b32.xlu0 %v6257_v14, %s6164_s14 }
 0x46c   :  { %545 = vrot.lane.b32.xlu0 %v6253_v11, %s6166_s16 }
 0x4db   :  { %v427_v22 = vpop.xlane.xlu1 %426 }
 0x4dc   :  { %v431_v23 = vsub.f32 %v423_v9, %v427_v22 }
 0x4de   :  { %v433_v24 = vmul.f32 1.442695, %v431_v23 }
 0x4df   :  { %v450_v25 = vpop.permute.xlu1 %449  ;;  %v430_v26 = vpop.xlane.xlu0 %429 }
 0x4e0   :  { %6010 = vpow2.f32 %v433_v24  ;;  %v455_v27 = vsel %vm231_vm3, %v450_v25, 0  ;;  %v432_v28 = vsub.f32 %v424_v17, %v430_v26 }
 0x4e1   :  { %5422 = vmatpush3.bf16.msra.mxu1 %v455_v27 }
 0x4e2   :  { %v435_v29 = vmul.f32 1.442695, %v432_v28  ;;  %5433 = vmatprep.subr.bf16.mxu1 %v6158_v0 }
 0x4e3   :  { %v498_v30 = vpop.permute.xlu0 %497  ;;  %v548_v36 = vpop.permute.xlu1 %547 }
 0x4e4   :  { %6012 = vpow2.f32 %v435_v29  ;;  %v503_v31 = vsel %vm231_vm3, %v498_v30, 0  ;;  %v553_v43 = vsel %vm104_vm2, %v548_v36, 0 }
 0x4e5   :  { %5428 = vmatpush3.bf16.msra.mxu0 %v503_v31 }
 0x4e6   :  { %5439 = vmatprep.subr.bf16.mxu0 %v6158_v0 }
 0x4e7   :  { %v546_v48 = vpop.permute.xlu0 %545 }
 0x4ea   :  { %v6011_v32 = vpop.eup %6010 }
 0x4eb   :  { %v437_v33 = vsel %vm104_vm2, %v6011_v32, 0.0 }
 0x4ec   :  { %438 = vadd.xlane.f32.xlu1 %v437_v33 }
 0x4ee   :  { %v6013_v34 = vpop.eup %6012 }
 0x4ef   :  { %v440_v35 = vsel %vm104_vm2, %v6013_v34, 0.0 }
 0x4f0   :  { %441 = vadd.xlane.f32.xlu1 %v440_v35 }
 0x501   :  { %597 = vrot.lane.b32.xlu1 %v6257_v14, %s6165_s15 }
 0x505   :  { %595 = vrot.lane.b32.xlu1 %v6257_v14, %s6166_s16 }
 0x579   :  { %v439_v37 = vpop.xlane.xlu1 %438 }
 0x57a   :  { %6014 = vrcp.f32 %v439_v37 }
 0x57d   :  { %v442_v38 = vpop.xlane.xlu1 %441 }
 0x57e   :  { %6016 = vrcp.f32 %v442_v38 }
 0x581   :  { %v598_v45 = vpop.permute.xlu1 %597 }
 0x582   :  { %v603_v47 = vsel %vm104_vm2, %v598_v45, 0 }
 0x584   :  { %v6015_v39 = vpop.eup %6014 }
 0x585   :  { %v445_v40 = vmul.f32 %v6015_v39, %v6011_v32  ;;  %v596_v49 = vpop.permute.xlu1 %595 }
 0x587   :  { %v447_v41 = vpack.c.bf16 %v445_v40, %v445_v40 }
 0x588   :  { %v6017_v42 = vpop.eup %6016 }
 0x589   :  { %5424 = vmatmul.mubr.msk.bf16.vlgmr.msra.gmra.mrb[12].mxu1 %vm104_vm2, %v447_v41  ;;  %v446_v44 = vmul.f32 %v6017_v42, %v6013_v34 }
 0x58a   :  { %5434 = vmatpush3.bf16.xpose.msra.mxu1 %v553_v43  ;;  %5435 = vmatprep.mubr.msk.bf16.mxu1 %vm6159_vm0, %v6158_v0 }
 0x58b   :  { %v448_v46 = vpack.c.bf16 %v446_v44, %v446_v44  ;;  %5445 = vmatprep.subr.bf16.mxu1 %v6158_v0 }
 0x58d   :  { %5430 = vmatmul.mubr.msk.bf16.vlgmr.msra.gmra.mrb[16].mxu0 %vm104_vm2, %v448_v46 }
 0x58e   :  { %5440 = vmatpush3.bf16.xpose.msra.mxu0 %v603_v47  ;;  %5441 = vmatprep.mubr.msk.bf16.mxu0 %vm6159_vm0, %v6158_v0 }
 0x58f   :  { %5451 = vmatprep.subr.bf16.mxu0 %v6158_v0 }
 0x591   :  { %5436 = vmatmul.mubr.msk.bf16.vlgmr.msra.gmra.mrb[16].mxu1 %vm104_vm2, %v546_v48 }
 0x592   :  { %5447 = vmatprep.mubr.msk.bf16.mxu1 %vm6159_vm0, %v6158_v0 }
 0x595   :  { %5442 = vmatmul.mubr.msk.bf16.vlgmr.msra.gmra.mrb[20].mxu0 %vm104_vm2, %v596_v49 }
 0x596   :  { %5453 = vmatprep.mubr.msk.bf16.mxu0 %vm6159_vm0, %v6158_v0 }
 0x65c   :  { %v6349_v50 = vpop.f32.mrb[12].mxu1 }
 0x65d   :  { %v5425_v51 = vpop.f32.mrb[13].mxu1 }
 0x65e   :  { %v494_v52 = vpop.f32.mrb[14].mxu1 }
 0x65f   :  { %v5426_v53 = vpop.f32.mrb[15].mxu1 }
 0x660   :  { %v6351_v54 = vpop.f32.mrb[16].mxu0 }
 0x661   :  { %v5906_v55 = vpack.i.bf16 %v6351_v54, %v6349_v50  ;;  %v5431_v56 = vpop.f32.mrb[17].mxu0 }
 0x662   :  { %v542_v57 = vpop.f32.mrb[18].mxu0 }
 0x663   :  { %v5432_v58 = vpop.f32.mrb[19].mxu0 }
 0x664   :  { %v589_v60 = vpop.f32.mrb[16].mxu1 }
 0x665   :  { %v645_v61 = vmul.f32 0.35355338, %v589_v60  ;;  %v5437_v62 = vpop.f32.mrb[17].mxu1 }
 0x666   :  { %v592_v5 = vpop.f32.mrb[18].mxu1 }
 0x667   :  { %v5438_v6 = vpop.f32.mrb[19].mxu1  ;;  %v647_v7 = vsel %vm104_vm2, %v645_v61, -inf }
 0x668   :  { %648 = vmax.xlane.f32.xlu0 %v647_v7  ;;  %v639_v8 = vpop.f32.mrb[20].mxu0 }
 0x669   :  { %v646_v9 = vmul.f32 0.35355338, %v639_v8  ;;  %v5443_v10 = vpop.f32.mrb[21].mxu0 }
 0x66a   :  { %v642_v12 = vpop.f32.mrb[22].mxu0 }
 0x66b   :  { %v5444_v13 = vpop.f32.mrb[23].mxu0  ;;  %v650_v15 = vsel %vm104_vm2, %v646_v9, -inf }
 0x66c   :  { %651 = vmax.xlane.f32.xlu1 %v650_v15 }
 0x67d   :  { %671 = vrot.lane.b32.xlu1 %v6253_v11, %s6167_s17 }
 0x681   :  { %769 = vrot.lane.b32.xlu1 %v6253_v11, %s6168_s18 }
 0x685   :  { %819 = vrot.lane.b32.xlu1 %v6257_v14, %s6168_s18 }
 0x689   :  { %817 = vrot.lane.b32.xlu1 %v6257_v14, %s6169_s19 }
 0x6f5   :  { %v649_v16 = vpop.xlane.xlu0 %648 }
 0x6f6   :  { %v653_v17 = vsub.f32 %v645_v61, %v649_v16 }
 0x6f8   :  { %v655_v18 = vmul.f32 1.442695, %v653_v17 }
 0x6f9   :  { %v652_v19 = vpop.xlane.xlu1 %651 }
 0x6fa   :  { %6018 = vpow2.f32 %v655_v18  ;;  %v654_v20 = vsub.f32 %v646_v9, %v652_v19 }
 0x6fc   :  { %v657_v21 = vmul.f32 1.442695, %v654_v20 }
 0x6fd   :  { %v672_v22 = vpop.permute.xlu1 %671 }
 0x6fe   :  { %6020 = vpow2.f32 %v657_v21  ;;  %v677_v23 = vsel %vm231_vm3, %v672_v22, 0 }
 0x6ff   :  { %5446 = vmatpush3.bf16.msra.mxu1 %v677_v23 }
 0x700   :  { %5457 = vmatprep.subr.bf16.mxu1 %v6158_v0 }
 0x701   :  { %v770_v33 = vpop.permute.xlu1 %769 }
 0x702   :  { %v775_v37 = vsel %vm104_vm2, %v770_v33, 0 }
 0x704   :  { %v6019_v24 = vpop.eup %6018 }
 0x705   :  { %v659_v25 = vsel %vm104_vm2, %v6019_v24, 0.0  ;;  %v820_v39 = vpop.permute.xlu1 %819 }
 0x706   :  { %660 = vadd.xlane.f32.xlu0 %v659_v25  ;;  %v825_v41 = vsel %vm104_vm2, %v820_v39, 0 }
 0x708   :  { %v6021_v26 = vpop.eup %6020 }
 0x709   :  { %v662_v27 = vsel %vm104_vm2, %v6021_v26, 0.0  ;;  %v818_v43 = vpop.permute.xlu1 %817 }
 0x70a   :  { %663 = vadd.xlane.f32.xlu0 %v662_v27 }
 0x720   :  { %719 = vrot.lane.b32.xlu0 %v6257_v14, %s6167_s17 }
 0x724   :  { %767 = vrot.lane.b32.xlu0 %v6253_v11, %s6169_s19 }
 0x793   :  { %v661_v28 = vpop.xlane.xlu0 %660 }
 0x794   :  { %6022 = vrcp.f32 %v661_v28 }
 0x797   :  { %v664_v29 = vpop.xlane.xlu0 %663 }
 0x798   :  { %6024 = vrcp.f32 %v664_v29 }
 0x79b   :  { %v720_v30 = vpop.permute.xlu0 %719 }
 0x79c   :  { %v725_v31 = vsel %vm231_vm3, %v720_v30, 0 }
 0x79d   :  { %5452 = vmatpush3.bf16.msra.mxu0 %v725_v31 }
 0x79e   :  { %v6023_v32 = vpop.eup %6022  ;;  %5463 = vmatprep.subr.bf16.mxu0 %v6158_v0 }
 0x79f   :  { %v667_v34 = vmul.f32 %v6023_v32, %v6019_v24  ;;  %v768_v42 = vpop.permute.xlu0 %767 }
 0x7a1   :  { %v669_v35 = vpack.c.bf16 %v667_v34, %v667_v34 }
 0x7a2   :  { %v6025_v36 = vpop.eup %6024 }
 0x7a3   :  { %5448 = vmatmul.mubr.msk.bf16.vlgmr.msra.gmra.mrb[20].mxu1 %vm104_vm2, %v669_v35  ;;  %v668_v38 = vmul.f32 %v6025_v36, %v6021_v26 }
 0x7a4   :  { %5458 = vmatpush3.bf16.xpose.msra.mxu1 %v775_v37  ;;  %5459 = vmatprep.mubr.msk.bf16.mxu1 %vm6159_vm0, %v6158_v0 }
 0x7a5   :  { %v670_v40 = vpack.c.bf16 %v668_v38, %v668_v38  ;;  %5469 = vmatprep.subr.bf16.mxu1 %v6158_v0 }
 0x7a7   :  { %5454 = vmatmul.mubr.msk.bf16.vlgmr.msra.gmra.mrb[24].mxu0 %vm104_vm2, %v670_v40 }
 0x7a8   :  { %5464 = vmatpush3.bf16.xpose.msra.mxu0 %v825_v41  ;;  %5465 = vmatprep.mubr.msk.bf16.mxu0 %vm6159_vm0, %v6158_v0 }
 0x7a9   :  { %5475 = vmatprep.subr.bf16.mxu0 %v6158_v0 }
 0x7ab   :  { %5460 = vmatmul.mubr.msk.bf16.vlgmr.msra.gmra.mrb[24].mxu1 %vm104_vm2, %v768_v42 }
 0x7ac   :  { %5471 = vmatprep.mubr.msk.bf16.mxu1 %vm6159_vm0, %v6158_v0 }
 0x7af   :  { %5466 = vmatmul.mubr.msk.bf16.vlgmr.msra.gmra.mrb[28].mxu0 %vm104_vm2, %v818_v43 }
 0x7b0   :  { %5477 = vmatprep.mubr.msk.bf16.mxu0 %vm6159_vm0, %v6158_v0 }
 0x876   :  { %v713_v44 = vpop.f32.mrb[20].mxu1 }
 0x877   :  { %v5449_v45 = vpop.f32.mrb[21].mxu1 }
 0x878   :  { %v716_v46 = vpop.f32.mrb[22].mxu1 }
 0x879   :  { %v5450_v47 = vpop.f32.mrb[23].mxu1 }
 0x87a   :  { %v761_v48 = vpop.f32.mrb[24].mxu0 }
 0x87b   :  { %v5911_v49 = vpack.i.bf16 %v761_v48, %v713_v44  ;;  %v5455_v51 = vpop.f32.mrb[25].mxu0 }
 0x87c   :  { %v764_v52 = vpop.f32.mrb[26].mxu0 }
 0x87d   :  { %v5456_v53 = vpop.f32.mrb[27].mxu0 }
 0x87e   :  { %v811_v56 = vpop.f32.mrb[24].mxu1 }
 0x87f   :  { %v867_v57 = vmul.f32 0.35355338, %v811_v56  ;;  %v5461_v58 = vpop.f32.mrb[25].mxu1 }
 0x880   :  { %v814_v60 = vpop.f32.mrb[26].mxu1 }
 0x881   :  { %v5462_v61 = vpop.f32.mrb[27].mxu1  ;;  %v869_v62 = vsel %vm104_vm2, %v867_v57, -inf }
 0x882   :  { %870 = vmax.xlane.f32.xlu0 %v869_v62  ;;  %v861_v5 = vpop.f32.mrb[28].mxu0 }
 0x883   :  { %v868_v6 = vmul.f32 0.35355338, %v861_v5  ;;  %v5467_v7 = vpop.f32.mrb[29].mxu0 }
 0x884   :  { %v864_v8 = vpop.f32.mrb[30].mxu0 }
 0x885   :  { %v5468_v9 = vpop.f32.mrb[31].mxu0  ;;  %v872_v10 = vsel %vm104_vm2, %v868_v6, -inf }
 0x886   :  { %873 = vmax.xlane.f32.xlu1 %v872_v10  ;;  %v6442_v10 = vld [vmem:[%s7291_s2 + $0x4] ss:$24 sps:$4 sm:$0xff]  }
 0x897   :  { %893 = vrot.lane.b32.xlu1 %v6253_v11, %s6170_s20 }
 0x89b   :  { %1026 = vrot.lane.b32.xlu1 %v6219_v1, %s6171_s21 }
 0x89f   :  { %5907 = vrot.lane.b32.xlu1 %v5906_v55, %s6172_s22 }
 0x90f   :  { %v871_v12 = vpop.xlane.xlu0 %870 }
 0x910   :  { %v875_v13 = vsub.f32 %v867_v57, %v871_v12 }
 0x912   :  { %v877_v15 = vmul.f32 1.442695, %v875_v13 }
 0x913   :  { %v874_v16 = vpop.xlane.xlu1 %873 }
 0x914   :  { %6026 = vpow2.f32 %v877_v15  ;;  %v876_v17 = vsub.f32 %v868_v6, %v874_v16 }
 0x916   :  { %v879_v18 = vmul.f32 1.442695, %v876_v17 }
 0x917   :  { %v894_v19 = vpop.permute.xlu1 %893 }
 0x918   :  { %6028 = vpow2.f32 %v879_v18  ;;  %v899_v11 = vsel %vm231_vm3, %v894_v19, 0 }
 0x919   :  { %5470 = vmatpush3.bf16.msra.mxu1 %v899_v11 }
 0x91a   :  { %5481 = vmatprep.subr.bf16.mxu1 %v6158_v0 }
 0x91b   :  { %v1027_v27 = vpop.permute.xlu1 %1026 }
 0x91e   :  { %v6027_v1 = vpop.eup %6026 }
 0x91f   :  { %v881_v20 = vsel %vm104_vm2, %v6027_v1, 0.0  ;;  %v5908_v40 = vpop.permute.xlu1 %5907 }
 0x920   :  { %882 = vadd.xlane.f32.xlu0 %v881_v20  ;;  %v5910_v41 = vunpack.i.h.bf16 %v5908_v40  ;;  %v5909_v42 = vunpack.i.l.bf16 %v5908_v40 }
 0x922   :  { %v6029_v50 = vpop.eup %6028  ;;  %v1014_v46 = vsel %vm104_vm2, %v6311_v63, %v5910_v41  ;;  %v1013_v47 = vsel %vm104_vm2, %v6309_v59, %v5909_v42  ;;  %v5080_v59 = vld [vmem:[%s7294_s4] ss:$0 sm:$0xff] }
 0x923   :  { %v884_v54 = vsel %vm104_vm2, %v6029_v50, 0.0 }
 0x924   :  { %885 = vadd.xlane.f32.xlu0 %v884_v54 }
 0x93a   :  { %941 = vrot.lane.b32.xlu0 %v6257_v14, %s6170_s20 }
 0x93e   :  { %5912 = vrot.lane.b32.xlu0 %v5911_v49, %s6173_s23 }
 0x942   :  { %1028 = vrot.lane.b32.xlu0 %v6230_v2, %s6171_s21 }
 0x9ad   :  { %v883_v55 = vpop.xlane.xlu0 %882 }
 0x9ae   :  { %6030 = vrcp.f32 %v883_v55 }
 0x9b1   :  { %v886_v21 = vpop.xlane.xlu0 %885 }
 0x9b2   :  { %6032 = vrcp.f32 %v886_v21 }
 0x9b5   :  { %v942_v22 = vpop.permute.xlu0 %941 }
 0x9b6   :  { %v947_v23 = vsel %vm231_vm3, %v942_v22, 0 }
 0x9b7   :  { %5476 = vmatpush3.bf16.msra.mxu0 %v947_v23 }
 0x9b8   :  { %v6031_v24 = vpop.eup %6030  ;;  %5489 = vmatprep.subr.bf16.mxu0 %v6158_v0 }
 0x9b9   :  { %v889_v25 = vmul.f32 %v6031_v24, %v6027_v1  ;;  %v5913_v29 = vpop.permute.xlu0 %5912  ;;  %v29_v24 = vld [vmem:[%s7295_s1] sm:$0xff] }
 0x9ba   :  { %v5915_v43 = vunpack.i.h.bf16 %v5913_v29  ;;  %v5914_v44 = vunpack.i.l.bf16 %v5913_v29 }
 0x9bb   :  { %v891_v26 = vpack.c.bf16 %v889_v25, %v889_v25  ;;  %v30_v25 = vld [vmem:[%s7295_s1 + $0x8] sm:$0xff] }
 0x9bc   :  { %v6033_v14 = vpop.eup %6032  ;;  %v1016_v51 = vsel %vm1015_vm4, %v1013_v47, %v5914_v44  ;;  %v1017_v52 = vsel %vm1015_vm4, %v1014_v46, %v5915_v43 }
 0x9bd   :  { %5472 = vmatmul.mubr.msk.bf16.vlgmr.msra.gmra.mrb[28].mxu1 %vm104_vm2, %v891_v26  ;;  %v890_v28 = vmul.f32 %v6033_v14, %v6029_v50  ;;  %v1029_v30 = vpop.permute.xlu0 %1028  ;;  %v6466_v14 = vpack.c.bf16 %v30_v25, %v29_v24 }
 0x9be   :  { %5482 = vmatpush3.bf16.msra.mxu1 %v1027_v27  ;;  %5485 = vmatprep.mubr.msk.bf16.mxu1 %vm6159_vm0, %v6158_v0 }
 0x9bf   :  { %v892_v2 = vpack.c.bf16 %v890_v28, %v890_v28  ;;  %5483 = vmatprep.subr.bf16.mxu1 %v6158_v0  ;;  %v5082_v28 = vld [vmem:[%s7294_s4 + $0x4] ss:$0 sm:$0xff] }
 0x9c1   :  { %5478 = vmatmul.mubr.msk.bf16.vlgmr.msra.gmra.mrb[32].mxu0 %vm104_vm2, %v892_v2 }
 0x9c2   :  { %5493 = vmatprep.mubr.msk.bf16.mxu0 %vm6159_vm0, %v6158_v0  ;;  %5484 = vmatpush3.bf16.msra.mxu1 %v1029_v30 }
 0x9c3   :  { %5497 = vmatprep.subr.bf16.mxu1 %v6158_v0  ;;  %5490 = vmatpush3.bf16.msra.mxu0 %v6442_v10 }
 0x9c4   :  { %5491 = vmatprep.subr.bf16.mxu0 %v6158_v0 }
 0xa90   :  { %v935_v31 = vpop.f32.mrb[28].mxu1 }
 0xa91   :  { %v5473_v32 = vpop.f32.mrb[29].mxu1 }
 0xa92   :  { %v938_v33 = vpop.f32.mrb[30].mxu1  ;;  %v5083_v32 = vld [vmem:[%s7294_s4 + $0x5] ss:$0 sm:$0xff] }
 0xa93   :  { %v5474_v34 = vpop.f32.mrb[31].mxu1 }
 0xa94   :  { %v983_v35 = vpop.f32.mrb[32].mxu0 }
 0xa95   :  { %v5916_v36 = vpack.i.bf16 %v983_v35, %v935_v31  ;;  %v5479_v37 = vpop.f32.mrb[33].mxu0 }
 0xa96   :  { %v986_v38 = vpop.f32.mrb[34].mxu0  ;;  %v5088_v37 = vld [vmem:[%s7293_s5 + $0x1] ss:$0 sm:$0xff] }
 0xa97   :  { %5917 = vrot.lane.b32.xlu1 %v5916_v36, %s6174_s24  ;;  %v5480_v39 = vpop.f32.mrb[35].mxu0 }
 0xb09   :  { %v5918_v45 = vpop.permute.xlu1 %5917 }
 0xb0a   :  { %v5920_v48 = vunpack.i.h.bf16 %v5918_v45  ;;  %v5919_v49 = vunpack.i.l.bf16 %v5918_v45 }
 0xb0c   :  { %v1020_v53 = vsel %vm1018_vm5, %v1017_v52, %v5920_v48  ;;  %v1019_v56 = vsel %vm1018_vm5, %v1016_v51, %v5919_v49  ;;  %v5084_v48 = vld [vmem:[%s7294_s4 + $0x1] ss:$0 sm:$0xff] }
 0xb0d   :  { %v1021_v57 = vpack.c.bf16 %v1020_v53, %v1019_v56 }
 0xb0f   :  { %5486 = vmatmul.mubr.msk.bf16.vlgmr.msra.gmra.mrb[32].mxu1 %vm53_vm1, %v1021_v57 }
 0xb10   :  { %5501 = vmatprep.mubr.msk.bf16.mxu1 %vm6159_vm0, %v6158_v0 }
 0xbe2   :  { %v1069_v63 = vpop.f32.mrb[32].mxu1 }
 0xbe3   :  { %v1070_v58 = vadd.f32 %v5080_v59, %v1069_v63  ;;  %v5487_v60 = vpop.f32.mrb[33].mxu1 }
 0xbe4   :  { %v1072_v61 = vpop.f32.mrb[34].mxu1 }
 0xbe5   :  { %v1073_v62 = vadd.f32 %v5080_v59, %v1072_v61  ;;  %v5488_v5 = vpop.f32.mrb[35].mxu1  ;;  %v1076_v6 = vadd.f32 %v1070_v58, %v6235_v3  ;;  %v6449_v3 = vld [vmem:[%s7291_s2 + $0x34] ss:$24 sps:$4 sm:$0xff]  }
 0xbe6   :  { %5492 = vmatpush3.bf16.msra.mxu0 %v6449_v3 }
 0xbe7   :  { %v1080_v7 = vsel %vm53_vm1, %v1076_v6, 0.0  ;;  %v1077_v8 = vadd.f32 %v1073_v62, %v6240_v4  ;;  %5505 = vmatprep.subr.bf16.mxu0 %v6158_v0 }
 0xbe8   :  { %1081 = vadd.xlane.f32.xlu1 %v1080_v7 }
 0xbe9   :  { %v1083_v9 = vsel %vm53_vm1, %v1077_v8, 0.0 }
 0xbea   :  { %1084 = vadd.xlane.f32.xlu0 %v1083_v9 }
 0xc75   :  { %v1082_v4 = vpop.xlane.xlu1 %1081 }
 0xc76   :  { %v1087_v12 = vmul.f32 0.03125, %v1082_v4 }
 0xc77   :  { %v1085_v13 = vpop.xlane.xlu0 %1084 }
 0xc78   :  { %v1089_v15 = vsub.f32 %v1076_v6, %v1087_v12  ;;  %v1088_v16 = vmul.f32 0.03125, %v1085_v13 }
 0xc7a   :  { %v1090_v17 = vsub.f32 %v1077_v8, %v1088_v16  ;;  %v1091_v18 = vmul.f32 %v1089_v15, %v1089_v15 }
 0xc7c   :  { %v1093_v19 = vsel %vm53_vm1, %v1091_v18, 0.0  ;;  %v1092_v11 = vmul.f32 %v1090_v17, %v1090_v17 }
 0xc7d   :  { %1094 = vadd.xlane.f32.xlu0 %v1093_v19 }
 0xc7e   :  { %v1096_v1 = vsel %vm53_vm1, %v1092_v11, 0.0 }
 0xc7f   :  { %1097 = vadd.xlane.f32.xlu1 %v1096_v1 }
 0xc90   :  { %1193 = vrot.lane.b32.xlu1 %v6449_v3, %s6160_s0 }
 0xc93   :  { %1191 = vrot.lane.b32.xlu0 %v6442_v10, %s6160_s0 }
 0xd0a   :  { %v1095_v20 = vpop.xlane.xlu0 %1094 }
 0xd0b   :  { %v1099_v50 = vmul.f32 0.03125, %v1095_v20 }
 0xd0c   :  { %v1098_v54 = vpop.xlane.xlu1 %1097 }
 0xd0d   :  { %v1101_v55 = vadd.f32 1e-05, %v1099_v50  ;;  %v1100_v21 = vmul.f32 0.03125, %v1098_v54 }
 0xd0e   :  { %v1192_v22 = vpop.permute.xlu0 %1191 }
 0xd0f   :  { %6034 = vrsqrt.f32 %v1101_v55  ;;  %v1102_v23 = vadd.f32 1e-05, %v1100_v21  ;;  %5498 = vmatpush3.bf16.msra.mxu1 %v1192_v22 }
 0xd10   :  { %v1194_v26 = vpop.permute.xlu1 %1193  ;;  %5499 = vmatprep.subr.bf16.mxu1 %v6158_v0 }
 0xd11   :  { %6036 = vrsqrt.f32 %v1102_v23 }
 0xd13   :  { %5500 = vmatpush3.bf16.msra.mxu1 %v1194_v26 }
 0xd14   :  { %5511 = vmatprep.subr.bf16.mxu1 %v6158_v0 }
 0xd16   :  { %5502 = vmatmul.mubr.msk.bf16.vlgmr.msra.gmra.mrb[36].mxu1 %vm53_vm1, %v6466_v14 }
 0xd17   :  { %5513 = vmatprep.mubr.msk.bf16.mxu1 %vm6159_vm0, %v6158_v0 }
 0xd19   :  { %v6035_v27 = vpop.eup %6034 }
 0xd1a   :  { %v1105_v2 = vmul.f32 %v6035_v27, %v1089_v15 }
 0xd1b   :  { %v6037_v29 = vpop.eup %6036 }
 0xd1c   :  { %v1111_v30 = vmul.f32 %v5082_v28, %v1105_v2  ;;  %v1106_v31 = vmul.f32 %v6037_v29, %v1090_v17 }
 0xd1e   :  { %v1112_v33 = vmul.f32 %v5082_v28, %v1106_v31  ;;  %v6479_v34 = vadd.f32 %v5083_v32, %v1111_v30 }
 0xd20   :  { %v6481_v35 = vadd.f32 %v5083_v32, %v1112_v33 }
 0xd22   :  { %v1123_v36 = vpack.c.bf16 %v6481_v35, %v6479_v34 }
 0xd24   :  { %5494 = vmatmul.mubr.msk.bf16.vlgmr.msra.gmra.mrb[36].mxu0 %vm53_vm1, %v1123_v36 }
 0xd25   :  { %5507 = vmatprep.mubr.msk.bf16.mxu0 %vm6159_vm0, %v6158_v0 }
 0xde9   :  { %v1234_v38 = vpop.f32.mrb[36].mxu1 }
 0xdea   :  { %v1235_v39 = vadd.f32 %v5088_v37, %v1234_v38  ;;  %v5503_v40 = vpop.f32.mrb[37].mxu1 }
 0xdeb   :  { %v1237_v41 = vpop.f32.mrb[38].mxu1 }
 0xdec   :  { %v6491_v42 = vpack.c.bf16 %v1235_v39, %v1235_v39  ;;  %v1238_v43 = vadd.f32 %v5088_v37, %v1237_v41  ;;  %v5504_v44 = vpop.f32.mrb[39].mxu1 }
 0xdee   :  { %v6493_v45 = vpack.c.bf16 %v1238_v43, %v1238_v43  ;;  %v1250_v46 = vsel %vm104_vm2, %v6491_v42, 0 }
 0xdef   :  { %5506 = vmatpush3.bf16.xpose.msra.mxu0 %v1250_v46 }
 0xdf0   :  { %v1296_v47 = vsel %vm104_vm2, %v6493_v45, 0  ;;  %5517 = vmatprep.subr.bf16.mxu0 %v6158_v0 }
 0xdf1   :  { %5512 = vmatpush3.bf16.xpose.msra.mxu1 %v1296_v47 }
 0xdf2   :  { %5523 = vmatprep.subr.bf16.mxu1 %v6158_v0 }
 0xdf7   :  { %v1178_v49 = vpop.f32.mrb[36].mxu0 }
 0xdf8   :  { %v1179_v51 = vadd.f32 %v5084_v48, %v1178_v49  ;;  %v5495_v52 = vpop.f32.mrb[37].mxu0 }
 0xdf9   :  { %v1181_v53 = vpop.f32.mrb[38].mxu0 }
 0xdfa   :  { %v6504_v56 = vpack.c.bf16 %v1179_v51, %v1179_v51  ;;  %v1182_v57 = vadd.f32 %v5084_v48, %v1181_v53  ;;  %v5496_v59 = vpop.f32.mrb[39].mxu0 }
 0xdfc   :  { %v6506_v63 = vpack.c.bf16 %v1182_v57, %v1182_v57  ;;  %5508 = vmatmul.mubr.msk.bf16.vlgmr.msra.gmra.mrb[40].mxu0 %vm104_vm2, %v6504_v56 }
 0xdfd   :  { %5519 = vmatprep.mubr.msk.bf16.mxu0 %vm6159_vm0, %v6158_v0 }
 0xdfe   :  { %5514 = vmatmul.mubr.msk.bf16.vlgmr.msra.gmra.mrb[40].mxu1 %vm104_vm2, %v6506_v63 }
 0xdff   :  { %5525 = vmatprep.mubr.msk.bf16.mxu1 %vm6159_vm0, %v6158_v0 }
 0xecf   :  { %v1286_v58 = vpop.f32.mrb[40].mxu0 }
 0xed0   :  { %v1338_v60 = vmul.f32 0.35355338, %v1286_v58  ;;  %v5509_v61 = vpop.f32.mrb[41].mxu0 }
 0xed1   :  { %v1289_v62 = vpop.f32.mrb[42].mxu0  ;;  %v1332_v5 = vpop.f32.mrb[40].mxu1 }
 0xed2   :  { %v1339_v6 = vmul.f32 0.35355338, %v1332_v5  ;;  %v5510_v7 = vpop.f32.mrb[43].mxu0  ;;  %v5515_v8 = vpop.f32.mrb[41].mxu1  ;;  %v1340_v9 = vsel %vm104_vm2, %v1338_v60, -inf }
 0xed3   :  { %v1335_v4 = vpop.f32.mrb[42].mxu1  ;;  %1341 = vmax.xlane.f32.xlu1 %v1340_v9 }
 0xed4   :  { %v5516_v12 = vpop.f32.mrb[43].mxu1  ;;  %v1343_v13 = vsel %vm104_vm2, %v1339_v6, -inf }
 0xed5   :  { %1344 = vmax.xlane.f32.xlu0 %v1343_v13 }
 0xee4   :  { %1414 = vrot.lane.b32.xlu1 %v6493_v45, %s6160_s0 }
 0xeeb   :  { %1365 = vrot.lane.b32.xlu0 %v6491_v42, %s6160_s0 }
 0xf60   :  { %v1342_v15 = vpop.xlane.xlu1 %1341 }
 0xf61   :  { %v1346_v16 = vsub.f32 %v1338_v60, %v1342_v15 }
 0xf62   :  { %v1345_v17 = vpop.xlane.xlu0 %1344 }
 0xf63   :  { %v1348_v18 = vmul.f32 1.442695, %v1346_v16  ;;  %v1347_v19 = vsub.f32 %v1339_v6, %v1345_v17 }
 0xf64   :  { %v1415_v11 = vpop.permute.xlu1 %1414 }
 0xf65   :  { %6038 = vpow2.f32 %v1348_v18  ;;  %v1350_v1 = vmul.f32 1.442695, %v1347_v19  ;;  %v1420_v20 = vsel %vm231_vm3, %v1415_v11, 0 }
 0xf66   :  { %v1366_v50 = vpop.permute.xlu0 %1365  ;;  %5524 = vmatpush3.bf16.msra.mxu1 %v1420_v20 }
 0xf67   :  { %6040 = vpow2.f32 %v1350_v1  ;;  %v1371_v54 = vsel %vm231_vm3, %v1366_v50, 0  ;;  %5535 = vmatprep.subr.bf16.mxu1 %v6158_v0 }
 0xf68   :  { %5518 = vmatpush3.bf16.msra.mxu0 %v1371_v54 }
 0xf69   :  { %5529 = vmatprep.subr.bf16.mxu0 %v6158_v0 }
 0xf6f   :  { %v6039_v55 = vpop.eup %6038 }
 0xf70   :  { %v1352_v21 = vsel %vm104_vm2, %v6039_v55, 0.0 }
 0xf71   :  { %v6041_v22 = vpop.eup %6040  ;;  %1353 = vadd.xlane.f32.xlu0 %v1352_v21 }
 0xf72   :  { %v1355_v23 = vsel %vm104_vm2, %v6041_v22, 0.0 }
 0xf73   :  { %1356 = vadd.xlane.f32.xlu1 %v1355_v23 }
 0xf84   :  { %1465 = vrot.lane.b32.xlu1 %v6491_v42, %s6163_s13 }
 0xf87   :  { %1516 = vrot.lane.b32.xlu0 %v6493_v45, %s6163_s13 }
 0xf88   :  { %1463 = vrot.lane.b32.xlu1 %v6504_v56, %s6163_s13 }
 0xf8b   :  { %1514 = vrot.lane.b32.xlu0 %v6506_v63, %s6163_s13 }
 0xffe   :  { %v1354_v24 = vpop.xlane.xlu0 %1353 }
 0xfff   :  { %6042 = vrcp.f32 %v1354_v24 }
0x1000   :  { %v1357_v25 = vpop.xlane.xlu1 %1356 }
0x1001   :  { %6044 = vrcp.f32 %v1357_v25 }
0x1002   :  { %v1517_v31 = vpop.permute.xlu0 %1516 }
0x1003   :  { %v1522_v36 = vsel %vm104_vm2, %v1517_v31, 0 }
0x1004   :  { %v1466_v2 = vpop.permute.xlu1 %1465 }
0x1005   :  { %v1471_v32 = vsel %vm104_vm2, %v1466_v2, 0 }
0x1006   :  { %v1515_v38 = vpop.permute.xlu0 %1514 }
0x1008   :  { %v1464_v37 = vpop.permute.xlu1 %1463 }
0x1009   :  { %v6043_v26 = vpop.eup %6042 }
0x100a   :  { %v1360_v27 = vmul.f32 %v6043_v26, %v6039_v55 }
0x100b   :  { %v6045_v28 = vpop.eup %6044 }
0x100c   :  { %v1362_v29 = vpack.c.bf16 %v1360_v27, %v1360_v27  ;;  %v1361_v30 = vmul.f32 %v6045_v28, %v6041_v22 }
0x100e   :  { %5520 = vmatmul.mubr.msk.bf16.vlgmr.msra.gmra.mrb[44].mxu0 %vm104_vm2, %v1362_v29  ;;  %v1363_v33 = vpack.c.bf16 %v1361_v30, %v1361_v30 }
0x100f   :  { %5530 = vmatpush3.bf16.xpose.msra.mxu0 %v1471_v32  ;;  %5531 = vmatprep.mubr.msk.bf16.mxu0 %vm6159_vm0, %v6158_v0 }
0x1010   :  { %5526 = vmatmul.mubr.msk.bf16.vlgmr.msra.gmra.mrb[44].mxu1 %vm104_vm2, %v1363_v33  ;;  %5541 = vmatprep.subr.bf16.mxu0 %v6158_v0 }
0x1011   :  { %5536 = vmatpush3.bf16.xpose.msra.mxu1 %v1522_v36  ;;  %5537 = vmatprep.mubr.msk.bf16.mxu1 %vm6159_vm0, %v6158_v0 }
0x1012   :  { %5547 = vmatprep.subr.bf16.mxu1 %v6158_v0 }
0x1016   :  { %5532 = vmatmul.mubr.msk.bf16.vlgmr.msra.gmra.mrb[48].mxu0 %vm104_vm2, %v1464_v37 }
0x1017   :  { %5543 = vmatprep.mubr.msk.bf16.mxu0 %vm6159_vm0, %v6158_v0 }
0x1018   :  { %5538 = vmatmul.mubr.msk.bf16.vlgmr.msra.gmra.mrb[48].mxu1 %vm104_vm2, %v1515_v38 }
0x1019   :  { %5549 = vmatprep.mubr.msk.bf16.mxu1 %vm6159_vm0, %v6158_v0 }
0x10e1   :  { %v6552_v39 = vpop.f32.mrb[44].mxu0 }
0x10e2   :  { %v5521_v40 = vpop.f32.mrb[45].mxu0 }
0x10e3   :  { %v1410_v41 = vpop.f32.mrb[46].mxu0  ;;  %v6554_v43 = vpop.f32.mrb[44].mxu1 }
0x10e4   :  { %v5522_v44 = vpop.f32.mrb[47].mxu0  ;;  %v5527_v46 = vpop.f32.mrb[45].mxu1 }
0x10e5   :  { %v1459_v47 = vpop.f32.mrb[46].mxu1 }
0x10e6   :  { %v5528_v48 = vpop.f32.mrb[47].mxu1 }
0x10e9   :  { %v1507_v49 = vpop.f32.mrb[48].mxu0 }
0x10ea   :  { %v1564_v51 = vmul.f32 0.35355338, %v1507_v49  ;;  %v5533_v52 = vpop.f32.mrb[49].mxu0 }
0x10eb   :  { %v1510_v53 = vpop.f32.mrb[50].mxu0  ;;  %v1558_v57 = vpop.f32.mrb[48].mxu1 }
0x10ec   :  { %v1565_v59 = vmul.f32 0.35355338, %v1558_v57  ;;  %v5534_v58 = vpop.f32.mrb[51].mxu0  ;;  %v5539_v60 = vpop.f32.mrb[49].mxu1  ;;  %v1566_v61 = vsel %vm104_vm2, %v1564_v51, -inf }
0x10ed   :  { %v1561_v62 = vpop.f32.mrb[50].mxu1  ;;  %1567 = vmax.xlane.f32.xlu1 %v1566_v61 }
0x10ee   :  { %v5540_v5 = vpop.f32.mrb[51].mxu1  ;;  %v1569_v6 = vsel %vm104_vm2, %v1565_v59, -inf }
0x10ef   :  { %1570 = vmax.xlane.f32.xlu0 %v1569_v6 }
0x10fe   :  { %1638 = vrot.lane.b32.xlu1 %v6493_v45, %s6162_s12 }
0x1105   :  { %1590 = vrot.lane.b32.xlu0 %v6491_v42, %s6162_s12 }
0x117a   :  { %v1568_v7 = vpop.xlane.xlu1 %1567 }
0x117b   :  { %v1572_v8 = vsub.f32 %v1564_v51, %v1568_v7 }
0x117c   :  { %v1571_v9 = vpop.xlane.xlu0 %1570 }
0x117d   :  { %v1574_v4 = vmul.f32 1.442695, %v1572_v8  ;;  %v1573_v12 = vsub.f32 %v1565_v59, %v1571_v9 }
0x117e   :  { %v1639_v13 = vpop.permute.xlu1 %1638 }
0x117f   :  { %6046 = vpow2.f32 %v1574_v4  ;;  %v1576_v15 = vmul.f32 1.442695, %v1573_v12  ;;  %v1644_v16 = vsel %vm231_vm3, %v1639_v13, 0 }
0x1180   :  { %v1591_v17 = vpop.permute.xlu0 %1590  ;;  %5548 = vmatpush3.bf16.msra.mxu1 %v1644_v16 }
0x1181   :  { %6048 = vpow2.f32 %v1576_v15  ;;  %v1596_v18 = vsel %vm231_vm3, %v1591_v17, 0  ;;  %5559 = vmatprep.subr.bf16.mxu1 %v6158_v0 }
0x1182   :  { %5542 = vmatpush3.bf16.msra.mxu0 %v1596_v18 }
0x1183   :  { %5553 = vmatprep.subr.bf16.mxu0 %v6158_v0 }
0x1189   :  { %v6047_v19 = vpop.eup %6046 }
0x118a   :  { %v1578_v11 = vsel %vm104_vm2, %v6047_v19, 0.0 }
0x118b   :  { %v6049_v1 = vpop.eup %6048  ;;  %1579 = vadd.xlane.f32.xlu0 %v1578_v11 }
0x118c   :  { %v1581_v20 = vsel %vm104_vm2, %v6049_v1, 0.0 }
0x118d   :  { %1582 = vadd.xlane.f32.xlu1 %v1581_v20 }
0x119e   :  { %1688 = vrot.lane.b32.xlu1 %v6491_v42, %s6166_s16 }
0x11a1   :  { %1738 = vrot.lane.b32.xlu0 %v6493_v45, %s6166_s16 }
0x11a2   :  { %1686 = vrot.lane.b32.xlu1 %v6504_v56, %s6166_s16 }
0x11a5   :  { %1736 = vrot.lane.b32.xlu0 %v6506_v63, %s6166_s16 }
0x1218   :  { %v1580_v50 = vpop.xlane.xlu0 %1579 }
0x1219   :  { %6050 = vrcp.f32 %v1580_v50 }
0x121a   :  { %v1583_v54 = vpop.xlane.xlu1 %1582 }
0x121b   :  { %6052 = vrcp.f32 %v1583_v54 }
0x121c   :  { %v1739_v26 = vpop.permute.xlu0 %1738 }
0x121d   :  { %v1744_v2 = vsel %vm104_vm2, %v1739_v26, 0 }
0x121e   :  { %v1689_v23 = vpop.permute.xlu1 %1688 }
0x121f   :  { %v1694_v27 = vsel %vm104_vm2, %v1689_v23, 0 }
0x1220   :  { %v1737_v30 = vpop.permute.xlu0 %1736 }
0x1222   :  { %v1687_v29 = vpop.permute.xlu1 %1686 }
0x1223   :  { %v6051_v55 = vpop.eup %6050 }
0x1224   :  { %v1586_v21 = vmul.f32 %v6051_v55, %v6047_v19 }
0x1225   :  { %v6053_v22 = vpop.eup %6052 }
0x1226   :  { %v1588_v24 = vpack.c.bf16 %v1586_v21, %v1586_v21  ;;  %v1587_v25 = vmul.f32 %v6053_v22, %v6049_v1 }
0x1228   :  { %5544 = vmatmul.mubr.msk.bf16.vlgmr.msra.gmra.mrb[52].mxu0 %vm104_vm2, %v1588_v24  ;;  %v1589_v28 = vpack.c.bf16 %v1587_v25, %v1587_v25 }
0x1229   :  { %5554 = vmatpush3.bf16.xpose.msra.mxu0 %v1694_v27  ;;  %5555 = vmatprep.mubr.msk.bf16.mxu0 %vm6159_vm0, %v6158_v0 }
0x122a   :  { %5550 = vmatmul.mubr.msk.bf16.vlgmr.msra.gmra.mrb[52].mxu1 %vm104_vm2, %v1589_v28  ;;  %5565 = vmatprep.subr.bf16.mxu0 %v6158_v0 }
0x122b   :  { %5560 = vmatpush3.bf16.xpose.msra.mxu1 %v1744_v2  ;;  %5561 = vmatprep.mubr.msk.bf16.mxu1 %vm6159_vm0, %v6158_v0 }
0x122c   :  { %5571 = vmatprep.subr.bf16.mxu1 %v6158_v0 }
0x1230   :  { %5556 = vmatmul.mubr.msk.bf16.vlgmr.msra.gmra.mrb[56].mxu0 %vm104_vm2, %v1687_v29 }
0x1231   :  { %5567 = vmatprep.mubr.msk.bf16.mxu0 %vm6159_vm0, %v6158_v0 }
0x1232   :  { %5562 = vmatmul.mubr.msk.bf16.vlgmr.msra.gmra.mrb[56].mxu1 %vm104_vm2, %v1737_v30 }
0x1233   :  { %5573 = vmatprep.mubr.msk.bf16.mxu1 %vm6159_vm0, %v6158_v0 }
0x12fb   :  { %v6592_v31 = vpop.f32.mrb[52].mxu0 }
0x12fc   :  { %v5545_v32 = vpop.f32.mrb[53].mxu0 }
0x12fd   :  { %v1635_v33 = vpop.f32.mrb[54].mxu0  ;;  %v6594_v36 = vpop.f32.mrb[52].mxu1 }
0x12fe   :  { %v5921_v37 = vpack.i.bf16 %v6594_v36, %v6592_v31  ;;  %v5546_v38 = vpop.f32.mrb[55].mxu0  ;;  %v5551_v40 = vpop.f32.mrb[53].mxu1 }
0x12ff   :  { %v1683_v41 = vpop.f32.mrb[54].mxu1 }
0x1300   :  { %v5552_v44 = vpop.f32.mrb[55].mxu1 }
0x1303   :  { %v1730_v46 = vpop.f32.mrb[56].mxu0 }
0x1304   :  { %v1786_v47 = vmul.f32 0.35355338, %v1730_v46  ;;  %v5557_v48 = vpop.f32.mrb[57].mxu0 }
0x1305   :  { %v1733_v49 = vpop.f32.mrb[58].mxu0  ;;  %v1780_v51 = vpop.f32.mrb[56].mxu1 }
0x1306   :  { %v1787_v52 = vmul.f32 0.35355338, %v1780_v51  ;;  %v5558_v53 = vpop.f32.mrb[59].mxu0  ;;  %v5563_v57 = vpop.f32.mrb[57].mxu1  ;;  %v1788_v59 = vsel %vm104_vm2, %v1786_v47, -inf }
0x1307   :  { %v1783_v58 = vpop.f32.mrb[58].mxu1  ;;  %1789 = vmax.xlane.f32.xlu1 %v1788_v59 }
0x1308   :  { %v5564_v60 = vpop.f32.mrb[59].mxu1  ;;  %v1791_v61 = vsel %vm104_vm2, %v1787_v52, -inf }
0x1309   :  { %1792 = vmax.xlane.f32.xlu0 %v1791_v61 }
0x1318   :  { %1860 = vrot.lane.b32.xlu1 %v6493_v45, %s6165_s15 }
0x131f   :  { %1812 = vrot.lane.b32.xlu0 %v6491_v42, %s6165_s15 }
0x1394   :  { %v1790_v62 = vpop.xlane.xlu1 %1789 }
0x1395   :  { %v1794_v5 = vsub.f32 %v1786_v47, %v1790_v62 }
0x1396   :  { %v1793_v6 = vpop.xlane.xlu0 %1792 }
0x1397   :  { %v1796_v7 = vmul.f32 1.442695, %v1794_v5  ;;  %v1795_v8 = vsub.f32 %v1787_v52, %v1793_v6 }
0x1398   :  { %v1861_v9 = vpop.permute.xlu1 %1860 }
0x1399   :  { %6054 = vpow2.f32 %v1796_v7  ;;  %v1798_v4 = vmul.f32 1.442695, %v1795_v8  ;;  %v1866_v12 = vsel %vm231_vm3, %v1861_v9, 0 }
0x139a   :  { %v1813_v13 = vpop.permute.xlu0 %1812  ;;  %5572 = vmatpush3.bf16.msra.mxu1 %v1866_v12 }
0x139b   :  { %6056 = vpow2.f32 %v1798_v4  ;;  %v1818_v15 = vsel %vm231_vm3, %v1813_v13, 0  ;;  %5583 = vmatprep.subr.bf16.mxu1 %v6158_v0 }
0x139c   :  { %5566 = vmatpush3.bf16.msra.mxu0 %v1818_v15 }
0x139d   :  { %5577 = vmatprep.subr.bf16.mxu0 %v6158_v0 }
0x13a3   :  { %v6055_v16 = vpop.eup %6054 }
0x13a4   :  { %v1800_v17 = vsel %vm104_vm2, %v6055_v16, 0.0 }
0x13a5   :  { %v6057_v18 = vpop.eup %6056  ;;  %1801 = vadd.xlane.f32.xlu0 %v1800_v17 }
0x13a6   :  { %v1803_v19 = vsel %vm104_vm2, %v6057_v18, 0.0 }
0x13a7   :  { %1804 = vadd.xlane.f32.xlu1 %v1803_v19 }
0x13b8   :  { %1910 = vrot.lane.b32.xlu1 %v6491_v42, %s6169_s19 }
0x13bb   :  { %1960 = vrot.lane.b32.xlu0 %v6493_v45, %s6169_s19 }
0x13bc   :  { %1908 = vrot.lane.b32.xlu1 %v6504_v56, %s6169_s19 }
0x13bf   :  { %1958 = vrot.lane.b32.xlu0 %v6506_v63, %s6169_s19 }
0x1432   :  { %v1802_v11 = vpop.xlane.xlu0 %1801 }
0x1433   :  { %6058 = vrcp.f32 %v1802_v11 }
0x1434   :  { %v1805_v1 = vpop.xlane.xlu1 %1804 }
0x1435   :  { %6060 = vrcp.f32 %v1805_v1 }
0x1436   :  { %v1961_v23 = vpop.permute.xlu0 %1960 }
0x1437   :  { %v1966_v56 = vsel %vm104_vm2, %v1961_v23, 0 }
0x1438   :  { %v1911_v55 = vpop.permute.xlu1 %1910 }
0x1439   :  { %v1916_v24 = vsel %vm104_vm2, %v1911_v55, 0 }
0x143a   :  { %v1959_v26 = vpop.permute.xlu0 %1958 }
0x143c   :  { %v1909_v63 = vpop.permute.xlu1 %1908 }
0x143d   :  { %v6059_v20 = vpop.eup %6058 }
0x143e   :  { %v1808_v50 = vmul.f32 %v6059_v20, %v6055_v16 }
0x143f   :  { %v6061_v54 = vpop.eup %6060 }
0x1440   :  { %v1810_v21 = vpack.c.bf16 %v1808_v50, %v1808_v50  ;;  %v1809_v22 = vmul.f32 %v6061_v54, %v6057_v18 }
0x1442   :  { %5568 = vmatmul.mubr.msk.bf16.vlgmr.msra.gmra.mrb[60].mxu0 %vm104_vm2, %v1810_v21  ;;  %v1811_v25 = vpack.c.bf16 %v1809_v22, %v1809_v22 }
0x1443   :  { %5578 = vmatpush3.bf16.xpose.msra.mxu0 %v1916_v24  ;;  %5579 = vmatprep.mubr.msk.bf16.mxu0 %vm6159_vm0, %v6158_v0 }
0x1444   :  { %5574 = vmatmul.mubr.msk.bf16.vlgmr.msra.gmra.mrb[60].mxu1 %vm104_vm2, %v1811_v25  ;;  %5589 = vmatprep.subr.bf16.mxu0 %v6158_v0 }
0x1445   :  { %5584 = vmatpush3.bf16.xpose.msra.mxu1 %v1966_v56  ;;  %5585 = vmatprep.mubr.msk.bf16.mxu1 %vm6159_vm0, %v6158_v0 }
0x1446   :  { %5595 = vmatprep.subr.bf16.mxu1 %v6158_v0 }
0x144a   :  { %5580 = vmatmul.mubr.msk.bf16.vlgmr.msra.gmra.mrb[64].mxu0 %vm104_vm2, %v1909_v63 }
0x144b   :  { %5591 = vmatprep.mubr.msk.bf16.mxu0 %vm6159_vm0, %v6158_v0 }
0x144c   :  { %5586 = vmatmul.mubr.msk.bf16.vlgmr.msra.gmra.mrb[64].mxu1 %vm104_vm2, %v1959_v26 }
0x144d   :  { %5597 = vmatprep.mubr.msk.bf16.mxu1 %vm6159_vm0, %v6158_v0 }
0x1515   :  { %v1854_v27 = vpop.f32.mrb[60].mxu0 }
0x1516   :  { %v5569_v28 = vpop.f32.mrb[61].mxu0 }
0x1517   :  { %v1857_v2 = vpop.f32.mrb[62].mxu0  ;;  %v1902_v29 = vpop.f32.mrb[60].mxu1 }
0x1518   :  { %v5926_v30 = vpack.i.bf16 %v1902_v29, %v1854_v27  ;;  %v5570_v32 = vpop.f32.mrb[63].mxu0  ;;  %v5575_v33 = vpop.f32.mrb[61].mxu1 }
0x1519   :  { %v1905_v38 = vpop.f32.mrb[62].mxu1 }
0x151a   :  { %v5576_v40 = vpop.f32.mrb[63].mxu1 }
0x151d   :  { %v1952_v41 = vpop.f32.mrb[64].mxu0 }
0x151e   :  { %v2008_v44 = vmul.f32 0.35355338, %v1952_v41  ;;  %v5581_v46 = vpop.f32.mrb[65].mxu0 }
0x151f   :  { %v1955_v47 = vpop.f32.mrb[66].mxu0  ;;  %v2002_v48 = vpop.f32.mrb[64].mxu1 }
0x1520   :  { %v2009_v49 = vmul.f32 0.35355338, %v2002_v48  ;;  %v5582_v51 = vpop.f32.mrb[67].mxu0  ;;  %v5587_v52 = vpop.f32.mrb[65].mxu1  ;;  %v2010_v53 = vsel %vm104_vm2, %v2008_v44, -inf }
0x1521   :  { %v2005_v57 = vpop.f32.mrb[66].mxu1  ;;  %2011 = vmax.xlane.f32.xlu1 %v2010_v53 }
0x1522   :  { %v5588_v59 = vpop.f32.mrb[67].mxu1  ;;  %v2013_v58 = vsel %vm104_vm2, %v2009_v49, -inf }
0x1523   :  { %2014 = vmax.xlane.f32.xlu0 %v2013_v58 }
0x15ae   :  { %v2012_v60 = vpop.xlane.xlu1 %2011 }
0x15af   :  { %v2016_v61 = vsub.f32 %v2008_v44, %v2012_v60 }
0x15b0   :  { %v2015_v62 = vpop.xlane.xlu0 %2014 }
0x15b1   :  { %v2018_v5 = vmul.f32 1.442695, %v2016_v61  ;;  %v2017_v6 = vsub.f32 %v2009_v49, %v2015_v62 }
0x15b3   :  { %6062 = vpow2.f32 %v2018_v5  ;;  %v2020_v7 = vmul.f32 1.442695, %v2017_v6 }
0x15b5   :  { %6064 = vpow2.f32 %v2020_v7 }
0x15bd   :  { %v6063_v8 = vpop.eup %6062 }
0x15be   :  { %v2022_v9 = vsel %vm104_vm2, %v6063_v8, 0.0 }
0x15bf   :  { %v6065_v4 = vpop.eup %6064  ;;  %2023 = vadd.xlane.f32.xlu0 %v2022_v9 }
0x15c0   :  { %v2025_v12 = vsel %vm104_vm2, %v6065_v4, 0.0 }
0x15c1   :  { %2026 = vadd.xlane.f32.xlu1 %v2025_v12  ;;  %v5971_v12 = vld [vmem:[%s7291_s2 + $0x38] ss:$24 sps:$4 sm:$0xff]  }
0x15d2   :  { %2082 = vrot.lane.b32.xlu1 %v6493_v45, %s6168_s18 }
0x15d5   :  { %2034 = vrot.lane.b32.xlu0 %v6491_v42, %s6168_s18 }
0x15d6   :  { %2165 = vrot.lane.b32.xlu1 %v6442_v10, %s6171_s21 }
0x15d9   :  { %5922 = vrot.lane.b32.xlu0 %v5921_v37, %s6172_s22 }
0x15da   :  { %5927 = vrot.lane.b32.xlu1 %v5926_v30, %s6173_s23 }
0x15de   :  { %2167 = vrot.lane.b32.xlu1 %v6449_v3, %s6171_s21 }
0x164c   :  { %v2024_v13 = vpop.xlane.xlu0 %2023 }
0x164d   :  { %6066 = vrcp.f32 %v2024_v13  ;;  %v5972_v13 = vld [vmem:[%s7296_s3] sm:$0xff]  }
0x164e   :  { %v2027_v15 = vpop.xlane.xlu1 %2026 }
0x164f   :  { %6068 = vrcp.f32 %v2027_v15  ;;  %v5973_v15 = vld [vmem:[%s7296_s3 + $0x8] sm:$0xff]  }
0x1650   :  { %v2035_v45 = vpop.permute.xlu0 %2034 }
0x1651   :  { %v2040_v42 = vsel %vm231_vm3, %v2035_v45, 0 }
0x1652   :  { %5590 = vmatpush3.bf16.msra.mxu0 %v2040_v42  ;;  %v2083_v16 = vpop.permute.xlu1 %2082 }
0x1653   :  { %v2088_v10 = vsel %vm231_vm3, %v2083_v16, 0  ;;  %5601 = vmatprep.subr.bf16.mxu0 %v6158_v0 }
0x1654   :  { %5596 = vmatpush3.bf16.msra.mxu1 %v2088_v10  ;;  %v5923_v56 = vpop.permute.xlu0 %5922 }
0x1655   :  { %5609 = vmatprep.subr.bf16.mxu1 %v6158_v0  ;;  %v5925_v63 = vunpack.i.h.bf16 %v5923_v56  ;;  %v5924_v26 = vunpack.i.l.bf16 %v5923_v56 }
0x1656   :  { %v2166_v18 = vpop.permute.xlu1 %2165 }
0x1657   :  { %v6067_v31 = vpop.eup %6066  ;;  %v2155_v29 = vsel %vm104_vm2, %v6554_v43, %v5925_v63  ;;  %v2154_v30 = vsel %vm104_vm2, %v6552_v39, %v5924_v26  ;;  %v5106_v39 = vld [vmem:[%s7294_s4 + $0x2] ss:$0 sm:$0xff] }
0x1658   :  { %v2030_v36 = vmul.f32 %v6067_v31, %v6063_v8 }
0x1659   :  { %v6069_v37 = vpop.eup %6068 }
0x165a   :  { %v2032_v3 = vpack.c.bf16 %v2030_v36, %v2030_v36  ;;  %v2031_v17 = vmul.f32 %v6069_v37, %v6065_v4  ;;  %v5928_v11 = vpop.permute.xlu1 %5927 }
0x165b   :  { %v5930_v27 = vunpack.i.h.bf16 %v5928_v11  ;;  %v5929_v28 = vunpack.i.l.bf16 %v5928_v11 }
0x165c   :  { %5592 = vmatmul.mubr.msk.bf16.vlgmr.msra.gmra.mrb[68].mxu0 %vm104_vm2, %v2032_v3  ;;  %v2033_v19 = vpack.c.bf16 %v2031_v17, %v2031_v17  ;;  %v5108_v17 = vld [vmem:[%s7294_s4 + $0x6] ss:$0 sm:$0xff] }
0x165d   :  { %5602 = vmatpush3.bf16.msra.mxu0 %v2166_v18  ;;  %5605 = vmatprep.mubr.msk.bf16.mxu0 %vm6159_vm0, %v6158_v0  ;;  %v2157_v38 = vsel %vm1015_vm4, %v2155_v29, %v5930_v27  ;;  %v2156_v40 = vsel %vm1015_vm4, %v2154_v30, %v5929_v28  ;;  %v5114_v30 = vld [vmem:[%s7294_s4 + $0x3] ss:$0 sm:$0xff] }
0x165e   :  { %5598 = vmatmul.mubr.msk.bf16.vlgmr.msra.gmra.mrb[68].mxu1 %vm104_vm2, %v2033_v19  ;;  %5603 = vmatprep.subr.bf16.mxu0 %v6158_v0  ;;  %v2168_v1 = vpop.permute.xlu1 %2167 }
0x165f   :  { %5613 = vmatprep.mubr.msk.bf16.mxu1 %vm6159_vm0, %v6158_v0 }
0x1661   :  { %5604 = vmatpush3.bf16.msra.mxu0 %v2168_v1  ;;  %v5109_v1 = vld [vmem:[%s7294_s4 + $0x7] ss:$0 sm:$0xff] }
0x1662   :  { %5617 = vmatprep.subr.bf16.mxu0 %v6158_v0 }
0x172f   :  { %v2076_v20 = vpop.f32.mrb[68].mxu0 }
0x1730   :  { %v5593_v50 = vpop.f32.mrb[69].mxu0 }
0x1731   :  { %v2079_v54 = vpop.f32.mrb[70].mxu0  ;;  %v2124_v55 = vpop.f32.mrb[68].mxu1 }
0x1732   :  { %v5931_v21 = vpack.i.bf16 %v2124_v55, %v2076_v20  ;;  %v5594_v22 = vpop.f32.mrb[71].mxu0  ;;  %v5599_v23 = vpop.f32.mrb[69].mxu1 }
0x1733   :  { %v2127_v24 = vpop.f32.mrb[70].mxu1  ;;  %v5975_v22 = vld [vmem:[%s7296_s3 + $0x18] sm:$0xff]   ;;  %v5110_v23 = vld [vmem:[%s7293_s5 + $0x2] ss:$0 sm:$0xff] }
0x1734   :  { %v5600_v25 = vpop.f32.mrb[71].mxu1  ;;  %5932 = vrot.lane.b32.xlu0 %v5931_v21, %s6174_s24  ;;  %v5974_v21 = vld [vmem:[%s7296_s3 + $0x10] sm:$0xff]  }
0x17a6   :  { %v5933_v2 = vpop.permute.xlu0 %5932 }
0x17a7   :  { %v5935_v32 = vunpack.i.h.bf16 %v5933_v2  ;;  %v5934_v33 = vunpack.i.l.bf16 %v5933_v2 }
0x17a9   :  { %v2159_v41 = vsel %vm1018_vm5, %v2157_v38, %v5935_v32  ;;  %v2158_v44 = vsel %vm1018_vm5, %v2156_v40, %v5934_v33 }
0x17aa   :  { %v2160_v46 = vpack.c.bf16 %v2159_v41, %v2158_v44 }
0x17ac   :  { %5606 = vmatmul.mubr.msk.bf16.vlgmr.msra.gmra.mrb[72].mxu0 %vm53_vm1, %v2160_v46 }
0x17ad   :  { %5625 = vmatprep.mubr.msk.bf16.mxu0 %vm6159_vm0, %v6158_v0  ;;  %5618 = vmatpush3.bf16.msra.mxu0 %v5972_v13 }
0x17ae   :  { %5619 = vmatprep.subr.bf16.mxu0 %v6158_v0 }
0x17b1   :  { %5620 = vmatpush3.bf16.msra.mxu0 %v5973_v15 }
0x17b2   :  { %5621 = vmatprep.subr.bf16.mxu0 %v6158_v0 }
0x17b5   :  { %5622 = vmatpush3.bf16.msra.mxu0 %v5974_v21 }
0x17b6   :  { %5623 = vmatprep.subr.bf16.mxu0 %v6158_v0 }
0x17b9   :  { %5624 = vmatpush3.bf16.msra.mxu0 %v5975_v22 }
0x17ba   :  { %5643 = vmatprep.subr.bf16.mxu0 %v6158_v0 }
0x187f   :  { %v2208_v43 = vpop.f32.mrb[72].mxu0 }
0x1880   :  { %v2209_v47 = vadd.f32 %v5106_v39, %v2208_v43  ;;  %v5607_v48 = vpop.f32.mrb[73].mxu0 }
0x1881   :  { %v2211_v49 = vpop.f32.mrb[74].mxu0  ;;  %v5976_v48 = vld [vmem:[%s7291_s2 + $0x8] ss:$24 sps:$4 sm:$0xff]  }
0x1882   :  { %v2212_v51 = vadd.f32 %v5106_v39, %v2211_v49  ;;  %v5608_v52 = vpop.f32.mrb[75].mxu0  ;;  %v2215_v53 = vadd.f32 %v2209_v47, %v6479_v34 }
0x1884   :  { %v2216_v57 = vadd.f32 %v2212_v51, %v6481_v35  ;;  %v2219_v59 = vsel %vm53_vm1, %v2215_v53, 0.0  ;;  %v5970_v35 = vld [vmem:[%s7291_s2 + $0x8] ss:$24 sps:$4 sm:$0xff]  }
0x1885   :  { %2220 = vadd.xlane.f32.xlu0 %v2219_v59  ;;  %5610 = vmatpush3.bf16.msra.mxu1 %v5970_v35 }
0x1886   :  { %v2222_v58 = vsel %vm53_vm1, %v2216_v57, 0.0  ;;  %5611 = vmatprep.subr.bf16.mxu1 %v6158_v0 }
0x1887   :  { %2223 = vadd.xlane.f32.xlu1 %v2222_v58 }
0x1889   :  { %5612 = vmatpush3.bf16.msra.mxu1 %v5971_v12 }
0x188a   :  { %5629 = vmatprep.subr.bf16.mxu1 %v6158_v0 }
0x1912   :  { %v2221_v60 = vpop.xlane.xlu0 %2220 }
0x1913   :  { %v2225_v61 = vmul.f32 0.03125, %v2221_v60 }
0x1914   :  { %v2224_v62 = vpop.xlane.xlu1 %2223 }
0x1915   :  { %v2227_v5 = vsub.f32 %v2215_v53, %v2225_v61  ;;  %v2226_v6 = vmul.f32 0.03125, %v2224_v62 }
0x1917   :  { %v2228_v7 = vsub.f32 %v2216_v57, %v2226_v6  ;;  %v2229_v8 = vmul.f32 %v2227_v5, %v2227_v5  ;;  %v5981_v6 = vld [vmem:[%s7291_s2 + $0x3c] ss:$24 sps:$4 sm:$0xff]  }
0x1919   :  { %v2231_v9 = vsel %vm53_vm1, %v2229_v8, 0.0  ;;  %v2230_v4 = vmul.f32 %v2228_v7, %v2228_v7 }
0x191a   :  { %2232 = vadd.xlane.f32.xlu0 %v2231_v9 }
0x191b   :  { %v2234_v34 = vsel %vm53_vm1, %v2230_v4, 0.0 }
0x191e   :  { %2235 = vadd.xlane.f32.xlu0 %v2234_v34 }
0x19a7   :  { %v2233_v45 = vpop.xlane.xlu0 %2232 }
0x19a8   :  { %v2237_v42 = vmul.f32 0.03125, %v2233_v45 }
0x19aa   :  { %v2239_v16 = vadd.f32 1e-05, %v2237_v42 }
0x19ab   :  { %v2236_v10 = vpop.xlane.xlu0 %2235 }
0x19ac   :  { %6070 = vrsqrt.f32 %v2239_v16  ;;  %v2238_v31 = vmul.f32 0.03125, %v2236_v10 }
0x19ae   :  { %v2240_v36 = vadd.f32 1e-05, %v2238_v31 }
0x19b0   :  { %6072 = vrsqrt.f32 %v2240_v36  ;;  %v5120_v36 = vld [vmem:[%s7294_s4 + $0x8] ss:$0 sm:$0xff] }
0x19b6   :  { %v6071_v37 = vpop.eup %6070 }
0x19b7   :  { %v2243_v3 = vmul.f32 %v6071_v37, %v2227_v5  ;;  %v5979_v5 = vld [vmem:[%s7291_s2 + $0x38] ss:$24 sps:$4 sm:$0xff]  }
0x19b9   :  { %v2249_v19 = vmul.f32 %v5108_v17, %v2243_v3 }
0x19ba   :  { %v6073_v18 = vpop.eup %6072 }
0x19bb   :  { %v2244_v11 = vmul.f32 %v6073_v18, %v2228_v7  ;;  %v2255_v50 = vadd.f32 %v5109_v1, %v2249_v19  ;;  %v5978_v7 = vld [vmem:[%s7291_s2 + $0xc] ss:$24 sps:$4 sm:$0xff]   ;;  %v5121_v19 = vld [vmem:[%s7294_s4 + $0x9] ss:$0 sm:$0xff] }
0x19bd   :  { %v2250_v20 = vmul.f32 %v5108_v17, %v2244_v11 }
0x19bf   :  { %v2256_v54 = vadd.f32 %v5109_v1, %v2250_v20 }
0x19c1   :  { %v2261_v55 = vpack.c.bf16 %v2256_v54, %v2255_v50 }
0x19c3   :  { %5614 = vmatmul.mubr.msk.bf16.vlgmr.msra.gmra.mrb[72].mxu1 %vm53_vm1, %v2261_v55 }
0x19c4   :  { %5633 = vmatprep.mubr.msk.bf16.mxu1 %vm6159_vm0, %v6158_v0 }
0x1a96   :  { %v2316_v24 = vpop.f32.mrb[72].mxu1 }
0x1a97   :  { %v2317_v25 = vadd.f32 %v5110_v23, %v2316_v24  ;;  %v5615_v56 = vpop.f32.mrb[73].mxu1 }
0x1a98   :  { %v2319_v63 = vpop.f32.mrb[74].mxu1 }
0x1a99   :  { %v2320_v26 = vadd.f32 %v5110_v23, %v2319_v63  ;;  %v5616_v27 = vpop.f32.mrb[75].mxu1  ;;  %v2323_v28 = vmax.f32 %v2317_v25, 0.0 }
0x1a9b   :  { %v2324_v2 = vmax.f32 %v2320_v26, 0.0 }
0x1a9d   :  { %v2333_v29 = vpack.c.bf16 %v2324_v2, %v2323_v28 }
0x1a9f   :  { %5626 = vmatmul.mubr.msk.bf16.vlgmr.msra.gmra.mrb[76].mxu0 %vm2363_vm6, %v2333_v29 }
0x1aa0   :  { %5645 = vmatprep.mubr.msk.bf16.mxu0 %vm6159_vm0, %v6158_v0 }
0x1b72   :  { %v2401_v32 = vpop.f32.mrb[76].mxu0 }
0x1b73   :  { %v2402_v33 = vadd.f32 %v5114_v30, %v2401_v32  ;;  %v5627_v38 = vpop.f32.mrb[77].mxu0 }
0x1b74   :  { %v2404_v40 = vpop.f32.mrb[78].mxu0 }
0x1b75   :  { %v2408_v41 = vadd.f32 %v2402_v33, %v2255_v50  ;;  %v2405_v44 = vadd.f32 %v5114_v30, %v2404_v40  ;;  %v5628_v46 = vpop.f32.mrb[79].mxu0 }
0x1b77   :  { %v2412_v39 = vsel %vm53_vm1, %v2408_v41, 0.0  ;;  %v2409_v43 = vadd.f32 %v2405_v44, %v2256_v54  ;;  %v5122_v54 = vld [vmem:[%s7293_s5 + $0x3] ss:$0 sm:$0xff] }
0x1b78   :  { %2413 = vadd.xlane.f32.xlu1 %v2412_v39 }
0x1b79   :  { %v2415_v47 = vsel %vm53_vm1, %v2409_v43, 0.0 }
0x1b7a   :  { %2416 = vadd.xlane.f32.xlu0 %v2415_v47 }
0x1b89   :  { %2476 = vrot.lane.b32.xlu1 %v5976_v48, %s6161_s11 }
0x1c05   :  { %v2414_v49 = vpop.xlane.xlu1 %2413 }
0x1c06   :  { %v2418_v51 = vmul.f32 0.03125, %v2414_v49 }
0x1c07   :  { %v2417_v52 = vpop.xlane.xlu0 %2416 }
0x1c08   :  { %v2420_v53 = vsub.f32 %v2408_v41, %v2418_v51  ;;  %v2419_v57 = vmul.f32 0.03125, %v2417_v52 }
0x1c09   :  { %v2477_v8 = vpop.permute.xlu1 %2476 }
0x1c0a   :  { %v2421_v59 = vsub.f32 %v2409_v43, %v2419_v57  ;;  %v2422_v58 = vmul.f32 %v2420_v53, %v2420_v53 }
0x1c0c   :  { %v2424_v60 = vsel %vm53_vm1, %v2422_v58, 0.0  ;;  %v2423_v61 = vmul.f32 %v2421_v59, %v2421_v59 }
0x1c0d   :  { %2425 = vadd.xlane.f32.xlu1 %v2424_v60 }
0x1c0e   :  { %v2427_v62 = vsel %vm53_vm1, %v2423_v61, 0.0 }
0x1c0f   :  { %2428 = vadd.xlane.f32.xlu0 %v2427_v62 }
0x1c1e   :  { %2480 = vrot.lane.b32.xlu1 %v5979_v5, %s6161_s11 }
0x1c22   :  { %2482 = vrot.lane.b32.xlu1 %v5981_v6, %s6161_s11 }
0x1c25   :  { %2478 = vrot.lane.b32.xlu0 %v5978_v7, %s6161_s11 }
0x1c9a   :  { %v2426_v9 = vpop.xlane.xlu1 %2425 }
0x1c9b   :  { %v2430_v4 = vmul.f32 0.03125, %v2426_v9 }
0x1c9c   :  { %v2429_v34 = vpop.xlane.xlu0 %2428 }
0x1c9d   :  { %v2432_v35 = vadd.f32 1e-05, %v2430_v4  ;;  %v2431_v12 = vmul.f32 0.03125, %v2429_v34 }
0x1c9e   :  { %v2481_v13 = vpop.permute.xlu1 %2480 }
0x1c9f   :  { %6074 = vrsqrt.f32 %v2432_v35  ;;  %v2433_v15 = vadd.f32 1e-05, %v2431_v12 }
0x1ca0   :  { %v2479_v45 = vpop.permute.xlu0 %2478 }
0x1ca1   :  { %6076 = vrsqrt.f32 %v2433_v15  ;;  %v2485_v42 = vsel %vm2363_vm6, %v2477_v8, %v2479_v45 }
0x1ca2   :  { %5630 = vmatpush3.bf16.msra.mxu1 %v2485_v42  ;;  %v2483_v16 = vpop.permute.xlu1 %2482 }
0x1ca3   :  { %v2486_v10 = vsel %vm2363_vm6, %v2481_v13, %v2483_v16  ;;  %5631 = vmatprep.subr.bf16.mxu1 %v6158_v0 }
0x1ca6   :  { %5632 = vmatpush3.bf16.msra.mxu1 %v2486_v10 }
0x1ca7   :  { %5637 = vmatprep.subr.bf16.mxu1 %v6158_v0 }
0x1ca9   :  { %v6075_v31 = vpop.eup %6074 }
0x1caa   :  { %v2436_v37 = vmul.f32 %v6075_v31, %v2420_v53 }
0x1cab   :  { %v6077_v3 = vpop.eup %6076 }
0x1cac   :  { %v2442_v17 = vmul.f32 %v5120_v36, %v2436_v37  ;;  %v2437_v18 = vmul.f32 %v6077_v3, %v2421_v59 }
0x1cae   :  { %v2443_v11 = vmul.f32 %v5120_v36, %v2437_v18  ;;  %v6756_v1 = vadd.f32 %v5121_v19, %v2442_v17 }
0x1cb0   :  { %v6758_v20 = vadd.f32 %v5121_v19, %v2443_v11 }
0x1cb2   :  { %v2454_v50 = vpack.c.bf16 %v6758_v20, %v6756_v1 }
0x1cb4   :  { %5634 = vmatmul.mubr.msk.bf16.vlgmr.msra.gmra.mrb[76].mxu1 %vm53_vm1, %v2454_v50 }
0x1cb5   :  { %5639 = vmatprep.mubr.msk.bf16.mxu1 %vm6159_vm0, %v6158_v0 }
0x1d87   :  { %v2526_v55 = vpop.f32.mrb[76].mxu1 }
0x1d88   :  { %v2527_v21 = vadd.f32 %v5122_v54, %v2526_v55  ;;  %v5635_v22 = vpop.f32.mrb[77].mxu1 }
0x1d89   :  { %v2529_v23 = vpop.f32.mrb[78].mxu1 }
0x1d8a   :  { %v6768_v24 = vpack.c.bf16 %v2527_v21, %v2527_v21  ;;  %v2530_v25 = vadd.f32 %v5122_v54, %v2529_v23  ;;  %v5636_v56 = vpop.f32.mrb[79].mxu1 }
0x1d8c   :  { %v6770_v63 = vpack.c.bf16 %v2530_v25, %v2530_v25  ;;  %2541 = vrot.lane.b32.xlu0 %v6768_v24, %s6160_s0 }
0x1d8e   :  { %2590 = vrot.lane.b32.xlu1 %v6770_v63, %s6160_s0 }
0x1dfe   :  { %v2542_v26 = vpop.permute.xlu0 %2541 }
0x1dff   :  { %v2547_v27 = vsel %vm104_vm2, %v2542_v26, 0 }
0x1e00   :  { %5638 = vmatpush3.bf16.xpose.msra.mxu1 %v2547_v27  ;;  %v2591_v28 = vpop.permute.xlu1 %2590 }
0x1e01   :  { %v2596_v2 = vsel %vm104_vm2, %v2591_v28, 0  ;;  %5649 = vmatprep.subr.bf16.mxu1 %v6158_v0 }
0x1e02   :  { %5644 = vmatpush3.bf16.xpose.msra.mxu0 %v2596_v2 }
0x1e03   :  { %5655 = vmatprep.subr.bf16.mxu0 %v6158_v0 }
0x1e07   :  { %5640 = vmatmul.mubr.msk.bf16.vlgmr.msra.gmra.mrb[80].mxu1 %vm104_vm2, %v6768_v24 }
0x1e08   :  { %5651 = vmatprep.mubr.msk.bf16.mxu1 %vm6159_vm0, %v6158_v0 }
0x1e09   :  { %5646 = vmatmul.mubr.msk.bf16.vlgmr.msra.gmra.mrb[80].mxu0 %vm104_vm2, %v6770_v63 }
0x1e0a   :  { %5657 = vmatprep.mubr.msk.bf16.mxu0 %vm6159_vm0, %v6158_v0 }
0x1eda   :  { %v2583_v29 = vpop.f32.mrb[80].mxu1 }
0x1edb   :  { %v2638_v30 = vmul.f32 0.35355338, %v2583_v29  ;;  %v5641_v32 = vpop.f32.mrb[81].mxu1 }
0x1edc   :  { %v2586_v33 = vpop.f32.mrb[82].mxu1  ;;  %v2632_v38 = vpop.f32.mrb[80].mxu0 }
0x1edd   :  { %v2639_v40 = vmul.f32 0.35355338, %v2632_v38  ;;  %v5642_v41 = vpop.f32.mrb[83].mxu1  ;;  %v5647_v44 = vpop.f32.mrb[81].mxu0  ;;  %v2640_v46 = vsel %vm104_vm2, %v2638_v30, -inf }
0x1ede   :  { %2641 = vmax.xlane.f32.xlu0 %v2640_v46  ;;  %v2635_v39 = vpop.f32.mrb[82].mxu0 }
0x1edf   :  { %v5648_v43 = vpop.f32.mrb[83].mxu0  ;;  %v2643_v47 = vsel %vm104_vm2, %v2639_v40, -inf }
0x1ee0   :  { %2644 = vmax.xlane.f32.xlu1 %v2643_v47 }
0x1ef1   :  { %2664 = vrot.lane.b32.xlu1 %v6768_v24, %s6161_s11 }
0x1ef5   :  { %2762 = vrot.lane.b32.xlu1 %v6768_v24, %s6162_s12 }
0x1ef9   :  { %2812 = vrot.lane.b32.xlu1 %v6770_v63, %s6162_s12 }
0x1efd   :  { %2810 = vrot.lane.b32.xlu1 %v6770_v63, %s6163_s13 }
0x1f6b   :  { %v2642_v48 = vpop.xlane.xlu0 %2641 }
0x1f6c   :  { %v2646_v49 = vsub.f32 %v2638_v30, %v2642_v48 }
0x1f6d   :  { %v2645_v51 = vpop.xlane.xlu1 %2644 }
0x1f6e   :  { %v2648_v52 = vmul.f32 1.442695, %v2646_v49  ;;  %v2647_v53 = vsub.f32 %v2639_v40, %v2645_v51 }
0x1f70   :  { %6078 = vpow2.f32 %v2648_v52  ;;  %v2650_v57 = vmul.f32 1.442695, %v2647_v53 }
0x1f71   :  { %v2665_v59 = vpop.permute.xlu1 %2664 }
0x1f72   :  { %6080 = vpow2.f32 %v2650_v57  ;;  %v2670_v58 = vsel %vm231_vm3, %v2665_v59, 0 }
0x1f73   :  { %5650 = vmatpush3.bf16.msra.mxu1 %v2670_v58 }
0x1f74   :  { %5661 = vmatprep.subr.bf16.mxu1 %v6158_v0 }
0x1f75   :  { %v2763_v34 = vpop.permute.xlu1 %2762 }
0x1f76   :  { %v2768_v15 = vsel %vm104_vm2, %v2763_v34, 0 }
0x1f79   :  { %v2813_v42 = vpop.permute.xlu1 %2812 }
0x1f7a   :  { %v6079_v60 = vpop.eup %6078  ;;  %v2818_v10 = vsel %vm104_vm2, %v2813_v42, 0 }
0x1f7b   :  { %v2652_v61 = vsel %vm104_vm2, %v6079_v60, 0.0 }
0x1f7c   :  { %v6081_v62 = vpop.eup %6080  ;;  %2653 = vadd.xlane.f32.xlu0 %v2652_v61 }
0x1f7d   :  { %v2655_v5 = vsel %vm104_vm2, %v6081_v62, 0.0  ;;  %v2811_v36 = vpop.permute.xlu1 %2810 }
0x1f80   :  { %2656 = vadd.xlane.f32.xlu0 %v2655_v5 }
0x1f96   :  { %2712 = vrot.lane.b32.xlu0 %v6770_v63, %s6161_s11 }
0x1f9a   :  { %2760 = vrot.lane.b32.xlu0 %v6768_v24, %s6163_s13 }
0x2009   :  { %v2654_v6 = vpop.xlane.xlu0 %2653 }
0x200a   :  { %6082 = vrcp.f32 %v2654_v6 }
0x200d   :  { %v2657_v7 = vpop.xlane.xlu0 %2656 }
0x200e   :  { %6084 = vrcp.f32 %v2657_v7 }
0x2011   :  { %v2713_v8 = vpop.permute.xlu0 %2712 }
0x2012   :  { %v2718_v9 = vsel %vm231_vm3, %v2713_v8, 0 }
0x2013   :  { %5656 = vmatpush3.bf16.msra.mxu0 %v2718_v9 }
0x2014   :  { %v6083_v4 = vpop.eup %6082  ;;  %5667 = vmatprep.subr.bf16.mxu0 %v6158_v0 }
0x2015   :  { %v2660_v35 = vmul.f32 %v6083_v4, %v6079_v60  ;;  %v2761_v31 = vpop.permute.xlu0 %2760 }
0x2017   :  { %v2662_v12 = vpack.c.bf16 %v2660_v35, %v2660_v35 }
0x2018   :  { %v6085_v13 = vpop.eup %6084 }
0x2019   :  { %5652 = vmatmul.mubr.msk.bf16.vlgmr.msra.gmra.mrb[84].mxu1 %vm104_vm2, %v2662_v12  ;;  %v2661_v45 = vmul.f32 %v6085_v13, %v6081_v62 }
0x201a   :  { %5662 = vmatpush3.bf16.xpose.msra.mxu1 %v2768_v15  ;;  %5663 = vmatprep.mubr.msk.bf16.mxu1 %vm6159_vm0, %v6158_v0 }
0x201b   :  { %v2663_v16 = vpack.c.bf16 %v2661_v45, %v2661_v45  ;;  %5673 = vmatprep.subr.bf16.mxu1 %v6158_v0 }
0x201d   :  { %5658 = vmatmul.mubr.msk.bf16.vlgmr.msra.gmra.mrb[84].mxu0 %vm104_vm2, %v2663_v16 }
0x201e   :  { %5668 = vmatpush3.bf16.xpose.msra.mxu0 %v2818_v10  ;;  %5669 = vmatprep.mubr.msk.bf16.mxu0 %vm6159_vm0, %v6158_v0 }
0x201f   :  { %5679 = vmatprep.subr.bf16.mxu0 %v6158_v0 }
0x2021   :  { %5664 = vmatmul.mubr.msk.bf16.vlgmr.msra.gmra.mrb[88].mxu1 %vm104_vm2, %v2761_v31 }
0x2022   :  { %5675 = vmatprep.mubr.msk.bf16.mxu1 %vm6159_vm0, %v6158_v0 }
0x2025   :  { %5670 = vmatmul.mubr.msk.bf16.vlgmr.msra.gmra.mrb[88].mxu0 %vm104_vm2, %v2811_v36 }
0x2026   :  { %5681 = vmatprep.mubr.msk.bf16.mxu0 %vm6159_vm0, %v6158_v0 }
0x20ec   :  { %v6824_v37 = vpop.f32.mrb[84].mxu1 }
0x20ed   :  { %v5653_v3 = vpop.f32.mrb[85].mxu1 }
0x20ee   :  { %v2709_v17 = vpop.f32.mrb[86].mxu1 }
0x20ef   :  { %v5654_v18 = vpop.f32.mrb[87].mxu1 }
0x20f0   :  { %v6826_v19 = vpop.f32.mrb[84].mxu0 }
0x20f1   :  { %v5659_v11 = vpop.f32.mrb[85].mxu0 }
0x20f2   :  { %v2757_v50 = vpop.f32.mrb[86].mxu0 }
0x20f3   :  { %v5660_v54 = vpop.f32.mrb[87].mxu0 }
0x20f4   :  { %v2804_v55 = vpop.f32.mrb[88].mxu1 }
0x20f5   :  { %v2860_v21 = vmul.f32 0.35355338, %v2804_v55  ;;  %v5665_v22 = vpop.f32.mrb[89].mxu1 }
0x20f6   :  { %v2807_v23 = vpop.f32.mrb[90].mxu1 }
0x20f7   :  { %v5666_v25 = vpop.f32.mrb[91].mxu1  ;;  %v2862_v56 = vsel %vm104_vm2, %v2860_v21, -inf }
0x20f8   :  { %2863 = vmax.xlane.f32.xlu0 %v2862_v56  ;;  %v2854_v26 = vpop.f32.mrb[88].mxu0 }
0x20f9   :  { %v2861_v27 = vmul.f32 0.35355338, %v2854_v26  ;;  %v5671_v28 = vpop.f32.mrb[89].mxu0 }
0x20fa   :  { %v2857_v2 = vpop.f32.mrb[90].mxu0 }
0x20fb   :  { %v5672_v29 = vpop.f32.mrb[91].mxu0  ;;  %v2865_v30 = vsel %vm104_vm2, %v2861_v27, -inf }
0x20fc   :  { %2866 = vmax.xlane.f32.xlu1 %v2865_v30 }
0x210d   :  { %2886 = vrot.lane.b32.xlu1 %v6768_v24, %s6164_s14 }
0x2111   :  { %2984 = vrot.lane.b32.xlu1 %v6768_v24, %s6165_s15 }
0x2115   :  { %3034 = vrot.lane.b32.xlu1 %v6770_v63, %s6165_s15 }
0x2119   :  { %3032 = vrot.lane.b32.xlu1 %v6770_v63, %s6166_s16 }
0x2185   :  { %v2864_v32 = vpop.xlane.xlu0 %2863 }
0x2186   :  { %v2868_v33 = vsub.f32 %v2860_v21, %v2864_v32 }
0x2188   :  { %v2870_v38 = vmul.f32 1.442695, %v2868_v33 }
0x2189   :  { %v2867_v40 = vpop.xlane.xlu1 %2866 }
0x218a   :  { %6086 = vpow2.f32 %v2870_v38  ;;  %v2869_v41 = vsub.f32 %v2861_v27, %v2867_v40 }
0x218c   :  { %v2872_v44 = vmul.f32 1.442695, %v2869_v41 }
0x218d   :  { %v2887_v46 = vpop.permute.xlu1 %2886 }
0x218e   :  { %6088 = vpow2.f32 %v2872_v44  ;;  %v2892_v39 = vsel %vm231_vm3, %v2887_v46, 0 }
0x218f   :  { %5674 = vmatpush3.bf16.msra.mxu1 %v2892_v39 }
0x2190   :  { %5685 = vmatprep.subr.bf16.mxu1 %v6158_v0 }
0x2191   :  { %v2985_v58 = vpop.permute.xlu1 %2984 }
0x2192   :  { %v2990_v5 = vsel %vm104_vm2, %v2985_v58, 0 }
0x2194   :  { %v6087_v43 = vpop.eup %6086 }
0x2195   :  { %v2874_v47 = vsel %vm104_vm2, %v6087_v43, 0.0  ;;  %v3035_v7 = vpop.permute.xlu1 %3034 }
0x2196   :  { %2875 = vadd.xlane.f32.xlu0 %v2874_v47  ;;  %v3040_v9 = vsel %vm104_vm2, %v3035_v7, 0 }
0x2198   :  { %v6089_v48 = vpop.eup %6088 }
0x2199   :  { %v2877_v49 = vsel %vm104_vm2, %v6089_v48, 0.0  ;;  %v3033_v34 = vpop.permute.xlu1 %3032 }
0x219a   :  { %2878 = vadd.xlane.f32.xlu0 %v2877_v49 }
0x21b0   :  { %2934 = vrot.lane.b32.xlu0 %v6770_v63, %s6164_s14 }
0x21b4   :  { %2982 = vrot.lane.b32.xlu0 %v6768_v24, %s6166_s16 }
0x2223   :  { %v2876_v51 = vpop.xlane.xlu0 %2875 }
0x2224   :  { %6090 = vrcp.f32 %v2876_v51 }
0x2227   :  { %v2879_v52 = vpop.xlane.xlu0 %2878 }
0x2228   :  { %6092 = vrcp.f32 %v2879_v52 }
0x222b   :  { %v2935_v53 = vpop.permute.xlu0 %2934 }
0x222c   :  { %v2940_v57 = vsel %vm231_vm3, %v2935_v53, 0 }
0x222d   :  { %5680 = vmatpush3.bf16.msra.mxu0 %v2940_v57 }
0x222e   :  { %v6091_v59 = vpop.eup %6090  ;;  %5691 = vmatprep.subr.bf16.mxu0 %v6158_v0 }
0x222f   :  { %v2882_v60 = vmul.f32 %v6091_v59, %v6087_v43  ;;  %v2983_v4 = vpop.permute.xlu0 %2982 }
0x2231   :  { %v2884_v61 = vpack.c.bf16 %v2882_v60, %v2882_v60 }
0x2232   :  { %v6093_v62 = vpop.eup %6092 }
0x2233   :  { %v2883_v6 = vmul.f32 %v6093_v62, %v6089_v48  ;;  %5676 = vmatmul.mubr.msk.bf16.vlgmr.msra.gmra.mrb[92].mxu1 %vm104_vm2, %v2884_v61 }
0x2234   :  { %5686 = vmatpush3.bf16.xpose.msra.mxu1 %v2990_v5  ;;  %5687 = vmatprep.mubr.msk.bf16.mxu1 %vm6159_vm0, %v6158_v0 }
0x2235   :  { %v2885_v8 = vpack.c.bf16 %v2883_v6, %v2883_v6  ;;  %5697 = vmatprep.subr.bf16.mxu1 %v6158_v0 }
0x2237   :  { %5682 = vmatmul.mubr.msk.bf16.vlgmr.msra.gmra.mrb[92].mxu0 %vm104_vm2, %v2885_v8 }
0x2238   :  { %5692 = vmatpush3.bf16.xpose.msra.mxu0 %v3040_v9  ;;  %5693 = vmatprep.mubr.msk.bf16.mxu0 %vm6159_vm0, %v6158_v0 }
0x2239   :  { %5703 = vmatprep.subr.bf16.mxu0 %v6158_v0 }
0x223b   :  { %5688 = vmatmul.mubr.msk.bf16.vlgmr.msra.gmra.mrb[96].mxu1 %vm104_vm2, %v2983_v4 }
0x223c   :  { %5699 = vmatprep.mubr.msk.bf16.mxu1 %vm6159_vm0, %v6158_v0 }
0x223f   :  { %5694 = vmatmul.mubr.msk.bf16.vlgmr.msra.gmra.mrb[96].mxu0 %vm104_vm2, %v3033_v34 }
0x2240   :  { %5705 = vmatprep.mubr.msk.bf16.mxu0 %vm6159_vm0, %v6158_v0 }
0x2306   :  { %v6864_v35 = vpop.f32.mrb[92].mxu1 }
0x2307   :  { %v5677_v12 = vpop.f32.mrb[93].mxu1 }
0x2308   :  { %v2931_v13 = vpop.f32.mrb[94].mxu1 }
0x2309   :  { %v5678_v15 = vpop.f32.mrb[95].mxu1 }
0x230a   :  { %v6866_v45 = vpop.f32.mrb[92].mxu0 }
0x230b   :  { %v5936_v42 = vpack.i.bf16 %v6866_v45, %v6864_v35  ;;  %v5683_v16 = vpop.f32.mrb[93].mxu0 }
0x230c   :  { %v2979_v10 = vpop.f32.mrb[94].mxu0 }
0x230d   :  { %v5684_v31 = vpop.f32.mrb[95].mxu0 }
0x230e   :  { %v3026_v36 = vpop.f32.mrb[96].mxu1 }
0x230f   :  { %v3082_v3 = vmul.f32 0.35355338, %v3026_v36  ;;  %v5689_v17 = vpop.f32.mrb[97].mxu1 }
0x2310   :  { %v3029_v18 = vpop.f32.mrb[98].mxu1 }
0x2311   :  { %v5690_v11 = vpop.f32.mrb[99].mxu1  ;;  %v3084_v50 = vsel %vm104_vm2, %v3082_v3, -inf }
0x2312   :  { %3085 = vmax.xlane.f32.xlu0 %v3084_v50  ;;  %v3076_v54 = vpop.f32.mrb[96].mxu0 }
0x2313   :  { %v3083_v55 = vmul.f32 0.35355338, %v3076_v54  ;;  %v5695_v21 = vpop.f32.mrb[97].mxu0 }
0x2314   :  { %v3079_v22 = vpop.f32.mrb[98].mxu0  ;;  %v5982_v21 = vld [vmem:[%s7291_s2 + $0xc] ss:$24 sps:$4 sm:$0xff]  }
0x2315   :  { %v5696_v23 = vpop.f32.mrb[99].mxu0  ;;  %v3087_v25 = vsel %vm104_vm2, %v3083_v55, -inf }
0x2316   :  { %3088 = vmax.xlane.f32.xlu1 %v3087_v25 }
0x2327   :  { %3108 = vrot.lane.b32.xlu1 %v6768_v24, %s6167_s17 }
0x232b   :  { %3206 = vrot.lane.b32.xlu1 %v6768_v24, %s6168_s18 }
0x232f   :  { %3256 = vrot.lane.b32.xlu1 %v6770_v63, %s6168_s18 }
0x2333   :  { %3254 = vrot.lane.b32.xlu1 %v6770_v63, %s6169_s19 }
0x239f   :  { %v3086_v56 = vpop.xlane.xlu0 %3085 }
0x23a0   :  { %v3090_v26 = vsub.f32 %v3082_v3, %v3086_v56 }
0x23a2   :  { %v3092_v27 = vmul.f32 1.442695, %v3090_v26 }
0x23a3   :  { %v3089_v28 = vpop.xlane.xlu1 %3088 }
0x23a4   :  { %6094 = vpow2.f32 %v3092_v27  ;;  %v3091_v2 = vsub.f32 %v3083_v55, %v3089_v28 }
0x23a6   :  { %v3094_v29 = vmul.f32 1.442695, %v3091_v2 }
0x23a7   :  { %v3109_v30 = vpop.permute.xlu1 %3108 }
0x23a8   :  { %6096 = vpow2.f32 %v3094_v29  ;;  %v3114_v32 = vsel %vm231_vm3, %v3109_v30, 0 }
0x23a9   :  { %5698 = vmatpush3.bf16.msra.mxu1 %v3114_v32 }
0x23aa   :  { %5709 = vmatprep.subr.bf16.mxu1 %v6158_v0 }
0x23ab   :  { %v3207_v48 = vpop.permute.xlu1 %3206 }
0x23ac   :  { %v3212_v53 = vsel %vm104_vm2, %v3207_v48, 0 }
0x23ae   :  { %v6095_v33 = vpop.eup %6094 }
0x23af   :  { %v3096_v38 = vsel %vm104_vm2, %v6095_v33, 0.0  ;;  %v3257_v59 = vpop.permute.xlu1 %3256 }
0x23b0   :  { %3097 = vadd.xlane.f32.xlu0 %v3096_v38  ;;  %v3262_v60 = vsel %vm104_vm2, %v3257_v59, 0 }
0x23b2   :  { %v6097_v40 = vpop.eup %6096 }
0x23b3   :  { %v3099_v41 = vsel %vm104_vm2, %v6097_v40, 0.0  ;;  %v3255_v62 = vpop.permute.xlu1 %3254 }
0x23b4   :  { %3100 = vadd.xlane.f32.xlu0 %v3099_v41 }
0x23ca   :  { %3156 = vrot.lane.b32.xlu0 %v6770_v63, %s6167_s17 }
0x23ce   :  { %3204 = vrot.lane.b32.xlu0 %v6768_v24, %s6169_s19 }
0x243d   :  { %v3098_v44 = vpop.xlane.xlu0 %3097 }
0x243e   :  { %6098 = vrcp.f32 %v3098_v44 }
0x2441   :  { %v3101_v46 = vpop.xlane.xlu0 %3100 }
0x2442   :  { %6100 = vrcp.f32 %v3101_v46 }
0x2445   :  { %v3157_v39 = vpop.permute.xlu0 %3156 }
0x2446   :  { %v3162_v43 = vsel %vm231_vm3, %v3157_v39, 0 }
0x2447   :  { %5704 = vmatpush3.bf16.msra.mxu0 %v3162_v43  ;;  %v5983_v43 = vld [vmem:[%s7291_s2 + $0x3c] ss:$24 sps:$4 sm:$0xff]  }
0x2448   :  { %v6099_v47 = vpop.eup %6098  ;;  %5715 = vmatprep.subr.bf16.mxu0 %v6158_v0 }
0x2449   :  { %v3104_v49 = vmul.f32 %v6099_v47, %v6095_v33  ;;  %v3205_v61 = vpop.permute.xlu0 %3204 }
0x244b   :  { %v3106_v51 = vpack.c.bf16 %v3104_v49, %v3104_v49 }
0x244c   :  { %v6101_v52 = vpop.eup %6100 }
0x244d   :  { %v3105_v57 = vmul.f32 %v6101_v52, %v6097_v40  ;;  %5700 = vmatmul.mubr.msk.bf16.vlgmr.msra.gmra.mrb[100].mxu1 %vm104_vm2, %v3106_v51 }
0x244e   :  { %5710 = vmatpush3.bf16.xpose.msra.mxu1 %v3212_v53  ;;  %5711 = vmatprep.mubr.msk.bf16.mxu1 %vm6159_vm0, %v6158_v0 }
0x244f   :  { %v3107_v58 = vpack.c.bf16 %v3105_v57, %v3105_v57  ;;  %5721 = vmatprep.subr.bf16.mxu1 %v6158_v0 }
0x2451   :  { %5706 = vmatmul.mubr.msk.bf16.vlgmr.msra.gmra.mrb[100].mxu0 %vm104_vm2, %v3107_v58 }
0x2452   :  { %5716 = vmatpush3.bf16.xpose.msra.mxu0 %v3262_v60  ;;  %5717 = vmatprep.mubr.msk.bf16.mxu0 %vm6159_vm0, %v6158_v0 }
0x2453   :  { %5727 = vmatprep.subr.bf16.mxu0 %v6158_v0 }
0x2455   :  { %5712 = vmatmul.mubr.msk.bf16.vlgmr.msra.gmra.mrb[104].mxu1 %vm104_vm2, %v3205_v61 }
0x2456   :  { %5723 = vmatprep.mubr.msk.bf16.mxu1 %vm6159_vm0, %v6158_v0 }
0x2459   :  { %5718 = vmatmul.mubr.msk.bf16.vlgmr.msra.gmra.mrb[104].mxu0 %vm104_vm2, %v3255_v62 }
0x245a   :  { %5729 = vmatprep.mubr.msk.bf16.mxu0 %vm6159_vm0, %v6158_v0 }
0x2520   :  { %v3150_v5 = vpop.f32.mrb[100].mxu1 }
0x2521   :  { %v5701_v6 = vpop.f32.mrb[101].mxu1 }
0x2522   :  { %v3153_v7 = vpop.f32.mrb[102].mxu1 }
0x2523   :  { %v5702_v8 = vpop.f32.mrb[103].mxu1 }
0x2524   :  { %v3198_v9 = vpop.f32.mrb[100].mxu0 }
0x2525   :  { %v5941_v4 = vpack.i.bf16 %v3198_v9, %v3150_v5  ;;  %v5707_v34 = vpop.f32.mrb[101].mxu0 }
0x2526   :  { %v3201_v12 = vpop.f32.mrb[102].mxu0 }
0x2527   :  { %v5708_v13 = vpop.f32.mrb[103].mxu0 }
0x2528   :  { %v3248_v15 = vpop.f32.mrb[104].mxu1 }
0x2529   :  { %v3304_v16 = vmul.f32 0.35355338, %v3248_v15  ;;  %v5713_v10 = vpop.f32.mrb[105].mxu1 }
0x252a   :  { %v3251_v31 = vpop.f32.mrb[106].mxu1 }
0x252b   :  { %v5714_v36 = vpop.f32.mrb[107].mxu1  ;;  %v3306_v3 = vsel %vm104_vm2, %v3304_v16, -inf }
0x252c   :  { %3307 = vmax.xlane.f32.xlu0 %v3306_v3  ;;  %v3298_v17 = vpop.f32.mrb[104].mxu0 }
0x252d   :  { %v3305_v18 = vmul.f32 0.35355338, %v3298_v17  ;;  %v5719_v11 = vpop.f32.mrb[105].mxu0 }
0x252e   :  { %v3301_v50 = vpop.f32.mrb[106].mxu0 }
0x252f   :  { %v5720_v54 = vpop.f32.mrb[107].mxu0  ;;  %v3309_v55 = vsel %vm104_vm2, %v3305_v18, -inf }
0x2530   :  { %3310 = vmax.xlane.f32.xlu1 %v3309_v55 }
0x2541   :  { %3330 = vrot.lane.b32.xlu1 %v6768_v24, %s6170_s20 }
0x2545   :  { %3471 = vrot.lane.b32.xlu1 %v5982_v21, %s6160_s0 }
0x2549   :  { %5937 = vrot.lane.b32.xlu1 %v5936_v42, %s6172_s22 }
0x25b9   :  { %v3308_v22 = vpop.xlane.xlu0 %3307 }
0x25ba   :  { %v3312_v23 = vsub.f32 %v3304_v16, %v3308_v22 }
0x25bc   :  { %v3314_v25 = vmul.f32 1.442695, %v3312_v23  ;;  %v5984_v23 = vld [vmem:[%s7291_s2 + $0x10] ss:$24 sps:$4 sm:$0xff]  }
0x25bd   :  { %v3311_v56 = vpop.xlane.xlu1 %3310 }
0x25be   :  { %6102 = vpow2.f32 %v3314_v25  ;;  %v3313_v26 = vsub.f32 %v3305_v18, %v3311_v56 }
0x25c0   :  { %v3316_v27 = vmul.f32 1.442695, %v3313_v26 }
0x25c1   :  { %v3331_v28 = vpop.permute.xlu1 %3330 }
0x25c2   :  { %6104 = vpow2.f32 %v3316_v27  ;;  %v3336_v24 = vsel %vm231_vm3, %v3331_v28, 0 }
0x25c3   :  { %5722 = vmatpush3.bf16.msra.mxu1 %v3336_v24 }
0x25c4   :  { %5733 = vmatprep.subr.bf16.mxu1 %v6158_v0 }
0x25c5   :  { %v3472_v46 = vpop.permute.xlu1 %3471 }
0x25c8   :  { %v6103_v2 = vpop.eup %6102 }
0x25c9   :  { %v3318_v29 = vsel %vm104_vm2, %v6103_v2, 0.0  ;;  %v5938_v62 = vpop.permute.xlu1 %5937 }
0x25ca   :  { %3319 = vadd.xlane.f32.xlu0 %v3318_v29  ;;  %v5940_v5 = vunpack.i.h.bf16 %v5938_v62  ;;  %v5939_v6 = vunpack.i.l.bf16 %v5938_v62  ;;  %v5149_v62 = vld [vmem:[%s7294_s4 + $0xf] ss:$0 sm:$0xff] }
0x25cc   :  { %v6105_v35 = vpop.eup %6104  ;;  %v3450_v34 = vsel %vm104_vm2, %v6824_v37, %v5939_v6  ;;  %v5144_v37 = vld [vmem:[%s7294_s4 + $0xa] ss:$0 sm:$0xff] }
0x25cd   :  { %v3321_v45 = vsel %vm104_vm2, %v6105_v35, 0.0 }
0x25ce   :  { %3322 = vadd.xlane.f32.xlu0 %v3321_v45 }
0x25e4   :  { %3378 = vrot.lane.b32.xlu0 %v6770_v63, %s6170_s20 }
0x25e8   :  { %5942 = vrot.lane.b32.xlu0 %v5941_v4, %s6173_s23  ;;  %v3451_v4 = vsel %vm104_vm2, %v6826_v19, %v5940_v5 }
0x25ec   :  { %3473 = vrot.lane.b32.xlu0 %v5983_v43, %s6160_s0 }
0x2657   :  { %v3320_v42 = vpop.xlane.xlu0 %3319 }
0x2658   :  { %6106 = vrcp.f32 %v3320_v42 }
0x265b   :  { %v3323_v30 = vpop.xlane.xlu0 %3322 }
0x265c   :  { %6108 = vrcp.f32 %v3323_v30 }
0x265f   :  { %v3379_v32 = vpop.permute.xlu0 %3378 }
0x2660   :  { %v3384_v33 = vsel %vm231_vm3, %v3379_v32, 0 }
0x2661   :  { %5728 = vmatpush3.bf16.msra.mxu0 %v3384_v33  ;;  %v5990_v33 = vld [vmem:[%s7291_s2 + $0xc] ss:$24 sps:$4 sm:$0xff]  }
0x2662   :  { %v6107_v38 = vpop.eup %6106  ;;  %5741 = vmatprep.subr.bf16.mxu0 %v6158_v0 }
0x2663   :  { %v3326_v40 = vmul.f32 %v6107_v38, %v6103_v2  ;;  %v5943_v47 = vpop.permute.xlu0 %5942  ;;  %v5989_v38 = vld [vmem:[%s7291_s2 + $0x40] ss:$24 sps:$4 sm:$0xff]  }
0x2664   :  { %v5945_v7 = vunpack.i.h.bf16 %v5943_v47  ;;  %v5944_v8 = vunpack.i.l.bf16 %v5943_v47 }
0x2665   :  { %v3328_v41 = vpack.c.bf16 %v3326_v40, %v3326_v40  ;;  %v5991_v40 = vld [vmem:[%s7291_s2 + $0x3c] ss:$24 sps:$4 sm:$0xff]  }
0x2666   :  { %v6109_v44 = vpop.eup %6108  ;;  %v3452_v15 = vsel %vm1015_vm4, %v3450_v34, %v5944_v8  ;;  %v3453_v16 = vsel %vm1015_vm4, %v3451_v4, %v5945_v7  ;;  %v5154_v8 = vld [vmem:[%s7293_s5 + $0x4] ss:$0 sm:$0xff] }
0x2667   :  { %v3327_v39 = vmul.f32 %v6109_v44, %v6105_v35  ;;  %5724 = vmatmul.mubr.msk.bf16.vlgmr.msra.gmra.mrb[108].mxu1 %vm104_vm2, %v3328_v41  ;;  %v3474_v48 = vpop.permute.xlu0 %3473 }
0x2668   :  { %5734 = vmatpush3.bf16.msra.mxu1 %v3472_v46  ;;  %5737 = vmatprep.mubr.msk.bf16.mxu1 %vm6159_vm0, %v6158_v0 }
0x2669   :  { %v3329_v63 = vpack.c.bf16 %v3327_v39, %v3327_v39  ;;  %5735 = vmatprep.subr.bf16.mxu1 %v6158_v0 }
0x266b   :  { %5730 = vmatmul.mubr.msk.bf16.vlgmr.msra.gmra.mrb[108].mxu0 %vm104_vm2, %v3329_v63 }
0x266c   :  { %5745 = vmatprep.mubr.msk.bf16.mxu0 %vm6159_vm0, %v6158_v0  ;;  %5736 = vmatpush3.bf16.msra.mxu1 %v3474_v48 }
0x266d   :  { %5749 = vmatprep.subr.bf16.mxu1 %v6158_v0 }
0x273a   :  { %v3372_v49 = vpop.f32.mrb[108].mxu1 }
0x273b   :  { %v5725_v51 = vpop.f32.mrb[109].mxu1 }
0x273c   :  { %v3375_v52 = vpop.f32.mrb[110].mxu1 }
0x273d   :  { %v5726_v53 = vpop.f32.mrb[111].mxu1 }
0x273e   :  { %v3420_v57 = vpop.f32.mrb[108].mxu0 }
0x273f   :  { %v5946_v59 = vpack.i.bf16 %v3420_v57, %v3372_v49  ;;  %v5731_v58 = vpop.f32.mrb[109].mxu0  ;;  %v5148_v57 = vld [vmem:[%s7294_s4 + $0xe] ss:$0 sm:$0xff] }
0x2740   :  { %v3423_v60 = vpop.f32.mrb[110].mxu0 }
0x2741   :  { %5947 = vrot.lane.b32.xlu1 %v5946_v59, %s6174_s24  ;;  %v5732_v61 = vpop.f32.mrb[111].mxu0 }
0x27b3   :  { %v5948_v9 = vpop.permute.xlu1 %5947 }
0x27b4   :  { %v5950_v12 = vunpack.i.h.bf16 %v5948_v9  ;;  %v5949_v13 = vunpack.i.l.bf16 %v5948_v9 }
0x27b6   :  { %v3455_v10 = vsel %vm1018_vm5, %v3453_v16, %v5950_v12  ;;  %v3454_v31 = vsel %vm1018_vm5, %v3452_v15, %v5949_v13 }
0x27b7   :  { %v3456_v36 = vpack.c.bf16 %v3455_v10, %v3454_v31 }
0x27b9   :  { %5738 = vmatmul.mubr.msk.bf16.vlgmr.msra.gmra.mrb[112].mxu1 %vm53_vm1, %v3456_v36 }
0x27ba   :  { %5753 = vmatprep.mubr.msk.bf16.mxu1 %vm6159_vm0, %v6158_v0 }
0x288c   :  { %v3514_v19 = vpop.f32.mrb[112].mxu1 }
0x288d   :  { %v3515_v3 = vadd.f32 %v5144_v37, %v3514_v19  ;;  %v5739_v17 = vpop.f32.mrb[113].mxu1 }
0x288e   :  { %v3517_v18 = vpop.f32.mrb[114].mxu1 }
0x288f   :  { %v3521_v11 = vadd.f32 %v3515_v3, %v6756_v1  ;;  %v3518_v50 = vadd.f32 %v5144_v37, %v3517_v18  ;;  %v5740_v54 = vpop.f32.mrb[115].mxu1  ;;  %v5987_v1 = vld [vmem:[%s7291_s2 + $0x3c] ss:$24 sps:$4 sm:$0xff]   ;;  %v5150_v37 = vld [vmem:[%s7294_s4 + $0xb] ss:$0 sm:$0xff] }
0x2891   :  { %v3522_v55 = vadd.f32 %v3518_v50, %v6758_v20  ;;  %v3525_v21 = vsel %vm53_vm1, %v3521_v11, 0.0  ;;  %v5986_v20 = vld [vmem:[%s7291_s2 + $0xc] ss:$24 sps:$4 sm:$0xff]  }
0x2892   :  { %3526 = vadd.xlane.f32.xlu1 %v3525_v21 }
0x2893   :  { %v3528_v22 = vsel %vm53_vm1, %v3522_v55, 0.0 }
0x2894   :  { %3529 = vadd.xlane.f32.xlu0 %v3528_v22 }
0x28a3   :  { %3660 = vrot.lane.b32.xlu1 %v5984_v23, %s6171_s21 }
0x28a7   :  { %3662 = vrot.lane.b32.xlu1 %v5987_v1, %s6171_s21 }
0x28aa   :  { %3658 = vrot.lane.b32.xlu0 %v5986_v20, %s6171_s21 }
0x291f   :  { %v3527_v25 = vpop.xlane.xlu1 %3526 }
0x2920   :  { %v3531_v56 = vmul.f32 0.03125, %v3527_v25 }
0x2921   :  { %v3530_v26 = vpop.xlane.xlu0 %3529 }
0x2922   :  { %v3533_v27 = vsub.f32 %v3521_v11, %v3531_v56  ;;  %v3532_v28 = vmul.f32 0.03125, %v3530_v26 }
0x2923   :  { %v3661_v24 = vpop.permute.xlu1 %3660 }
0x2924   :  { %v3534_v2 = vsub.f32 %v3522_v55, %v3532_v28  ;;  %v3535_v29 = vmul.f32 %v3533_v27, %v3533_v27 }
0x2925   :  { %v3659_v35 = vpop.permute.xlu0 %3658 }
0x2926   :  { %v3537_v45 = vsel %vm53_vm1, %v3535_v29, 0.0  ;;  %v3536_v42 = vmul.f32 %v3534_v2, %v3534_v2  ;;  %v3667_v30 = vsel %vm53_vm1, %v3659_v35, %v3661_v24 }
0x2927   :  { %3538 = vadd.xlane.f32.xlu0 %v3537_v45  ;;  %5750 = vmatpush3.bf16.msra.mxu1 %v3667_v30  ;;  %v3663_v41 = vpop.permute.xlu1 %3662 }
0x2928   :  { %v3540_v32 = vsel %vm53_vm1, %v3536_v42, 0.0  ;;  %5751 = vmatprep.subr.bf16.mxu1 %v6158_v0 }
0x2929   :  { %3541 = vadd.xlane.f32.xlu1 %v3540_v32 }
0x293a   :  { %3583 = vrot.lane.b32.xlu1 %v5990_v33, %s6161_s11 }
0x293d   :  { %3664 = vrot.lane.b32.xlu0 %v5989_v38, %s6171_s21 }
0x2941   :  { %3585 = vrot.lane.b32.xlu0 %v5991_v40, %s6161_s11 }
0x29b4   :  { %v3539_v44 = vpop.xlane.xlu0 %3538 }
0x29b5   :  { %v3543_v46 = vmul.f32 0.03125, %v3539_v44 }
0x29b6   :  { %v3542_v39 = vpop.xlane.xlu1 %3541 }
0x29b7   :  { %v3545_v63 = vadd.f32 1e-05, %v3543_v46  ;;  %v3544_v43 = vmul.f32 0.03125, %v3542_v39 }
0x29b8   :  { %v3665_v47 = vpop.permute.xlu0 %3664 }
0x29b9   :  { %6110 = vrsqrt.f32 %v3545_v63  ;;  %v3546_v48 = vadd.f32 1e-05, %v3544_v43  ;;  %v3668_v49 = vsel %vm53_vm1, %v3663_v41, %v3665_v47 }
0x29ba   :  { %5752 = vmatpush3.bf16.msra.mxu1 %v3668_v49  ;;  %v3584_v51 = vpop.permute.xlu1 %3583 }
0x29bb   :  { %6112 = vrsqrt.f32 %v3546_v48  ;;  %5742 = vmatpush3.bf16.msra.mxu0 %v3584_v51  ;;  %5763 = vmatprep.subr.bf16.mxu1 %v6158_v0 }
0x29bc   :  { %5743 = vmatprep.subr.bf16.mxu0 %v6158_v0  ;;  %v3586_v52 = vpop.permute.xlu0 %3585 }
0x29bd   :  { %5754 = vmatmul.mubr.msk.bf16.vlgmr.msra.gmra.mrb[116].mxu1 %vm53_vm1, %v6466_v14 }
0x29be   :  { %5765 = vmatprep.mubr.msk.bf16.mxu1 %vm6159_vm0, %v6158_v0 }
0x29bf   :  { %5744 = vmatpush3.bf16.msra.mxu0 %v3586_v52 }
0x29c0   :  { %5757 = vmatprep.subr.bf16.mxu0 %v6158_v0 }
0x29c3   :  { %v6111_v53 = vpop.eup %6110 }
0x29c4   :  { %v3549_v59 = vmul.f32 %v6111_v53, %v3533_v27 }
0x29c5   :  { %v6113_v58 = vpop.eup %6112 }
0x29c6   :  { %v3555_v60 = vmul.f32 %v5148_v57, %v3549_v59  ;;  %v3550_v61 = vmul.f32 %v6113_v58, %v3534_v2 }
0x29c8   :  { %v3556_v14 = vmul.f32 %v5148_v57, %v3550_v61  ;;  %v7000_v5 = vadd.f32 %v5149_v62, %v3555_v60 }
0x29ca   :  { %v7002_v6 = vadd.f32 %v5149_v62, %v3556_v14 }
0x29cc   :  { %v3567_v7 = vpack.c.bf16 %v7002_v6, %v7000_v5 }
0x29ce   :  { %5746 = vmatmul.mubr.msk.bf16.vlgmr.msra.gmra.mrb[112].mxu0 %vm53_vm1, %v3567_v7 }
0x29cf   :  { %5759 = vmatprep.mubr.msk.bf16.mxu0 %vm6159_vm0, %v6158_v0 }
0x2a90   :  { %v3705_v9 = vpop.f32.mrb[116].mxu1 }
0x2a91   :  { %v3706_v4 = vadd.f32 %v5154_v8, %v3705_v9  ;;  %v5755_v34 = vpop.f32.mrb[117].mxu1 }
0x2a92   :  { %v3708_v12 = vpop.f32.mrb[118].mxu1 }
0x2a93   :  { %v7012_v13 = vpack.c.bf16 %v3706_v4, %v3706_v4  ;;  %v3709_v15 = vadd.f32 %v5154_v8, %v3708_v12  ;;  %v5756_v16 = vpop.f32.mrb[119].mxu1 }
0x2a95   :  { %v7014_v10 = vpack.c.bf16 %v3709_v15, %v3709_v15  ;;  %v3725_v31 = vsel %vm104_vm2, %v7012_v13, 0 }
0x2a96   :  { %5758 = vmatpush3.bf16.xpose.msra.mxu0 %v3725_v31 }
0x2a97   :  { %v3771_v36 = vsel %vm104_vm2, %v7014_v10, 0  ;;  %5769 = vmatprep.subr.bf16.mxu0 %v6158_v0 }
0x2a98   :  { %5764 = vmatpush3.bf16.xpose.msra.mxu1 %v3771_v36 }
0x2a99   :  { %5775 = vmatprep.subr.bf16.mxu1 %v6158_v0 }
0x2aa1   :  { %v3626_v19 = vpop.f32.mrb[112].mxu0 }
0x2aa2   :  { %v3627_v3 = vadd.f32 %v5150_v37, %v3626_v19  ;;  %v5747_v17 = vpop.f32.mrb[113].mxu0 }
0x2aa3   :  { %v3629_v18 = vpop.f32.mrb[114].mxu0 }
0x2aa4   :  { %v7025_v11 = vpack.c.bf16 %v3627_v3, %v3627_v3  ;;  %v3630_v50 = vadd.f32 %v5150_v37, %v3629_v18  ;;  %v5748_v54 = vpop.f32.mrb[115].mxu0 }
0x2aa6   :  { %v7027_v55 = vpack.c.bf16 %v3630_v50, %v3630_v50  ;;  %5760 = vmatmul.mubr.msk.bf16.vlgmr.msra.gmra.mrb[116].mxu0 %vm104_vm2, %v7025_v11 }
0x2aa7   :  { %5771 = vmatprep.mubr.msk.bf16.mxu0 %vm6159_vm0, %v6158_v0 }
0x2aa8   :  { %5766 = vmatmul.mubr.msk.bf16.vlgmr.msra.gmra.mrb[120].mxu1 %vm104_vm2, %v7027_v55 }
0x2aa9   :  { %5777 = vmatprep.mubr.msk.bf16.mxu1 %vm6159_vm0, %v6158_v0 }
0x2b79   :  { %v3761_v21 = vpop.f32.mrb[116].mxu0 }
0x2b7a   :  { %v3813_v22 = vmul.f32 0.35355338, %v3761_v21  ;;  %v5761_v23 = vpop.f32.mrb[117].mxu0 }
0x2b7b   :  { %v3764_v1 = vpop.f32.mrb[118].mxu0  ;;  %v3807_v20 = vpop.f32.mrb[120].mxu1 }
0x2b7c   :  { %v3814_v25 = vmul.f32 0.35355338, %v3807_v20  ;;  %v5762_v56 = vpop.f32.mrb[119].mxu0  ;;  %v5767_v26 = vpop.f32.mrb[121].mxu1  ;;  %v3815_v27 = vsel %vm104_vm2, %v3813_v22, -inf }
0x2b7d   :  { %v3810_v28 = vpop.f32.mrb[122].mxu1  ;;  %3816 = vmax.xlane.f32.xlu1 %v3815_v27 }
0x2b7e   :  { %v5768_v24 = vpop.f32.mrb[123].mxu1  ;;  %v3818_v2 = vsel %vm104_vm2, %v3814_v25, -inf }
0x2b7f   :  { %3819 = vmax.xlane.f32.xlu0 %v3818_v2 }
0x2b8e   :  { %3889 = vrot.lane.b32.xlu1 %v7014_v10, %s6160_s0 }
0x2b95   :  { %3840 = vrot.lane.b32.xlu0 %v7012_v13, %s6160_s0 }
0x2c0a   :  { %v3817_v29 = vpop.xlane.xlu1 %3816 }
0x2c0b   :  { %v3821_v35 = vsub.f32 %v3813_v22, %v3817_v29 }
0x2c0c   :  { %v3820_v45 = vpop.xlane.xlu0 %3819 }
0x2c0d   :  { %v3823_v42 = vmul.f32 1.442695, %v3821_v35  ;;  %v3822_v30 = vsub.f32 %v3814_v25, %v3820_v45 }
0x2c0e   :  { %v3890_v32 = vpop.permute.xlu1 %3889 }
0x2c0f   :  { %6114 = vpow2.f32 %v3823_v42  ;;  %v3825_v33 = vmul.f32 1.442695, %v3822_v30  ;;  %v3895_v38 = vsel %vm231_vm3, %v3890_v32, 0 }
0x2c10   :  { %v3841_v40 = vpop.permute.xlu0 %3840  ;;  %5776 = vmatpush3.bf16.msra.mxu1 %v3895_v38 }
0x2c11   :  { %6116 = vpow2.f32 %v3825_v33  ;;  %v3846_v41 = vsel %vm231_vm3, %v3841_v40, 0  ;;  %5787 = vmatprep.subr.bf16.mxu1 %v6158_v0 }
0x2c12   :  { %5770 = vmatpush3.bf16.msra.mxu0 %v3846_v41 }
0x2c13   :  { %5781 = vmatprep.subr.bf16.mxu0 %v6158_v0 }
0x2c19   :  { %v6115_v44 = vpop.eup %6114 }
0x2c1a   :  { %v3827_v46 = vsel %vm104_vm2, %v6115_v44, 0.0 }
0x2c1b   :  { %v6117_v39 = vpop.eup %6116  ;;  %3828 = vadd.xlane.f32.xlu0 %v3827_v46 }
0x2c1c   :  { %v3830_v63 = vsel %vm104_vm2, %v6117_v39, 0.0 }
0x2c1d   :  { %3831 = vadd.xlane.f32.xlu1 %v3830_v63 }
0x2c2e   :  { %3940 = vrot.lane.b32.xlu1 %v7012_v13, %s6163_s13 }
0x2c31   :  { %3991 = vrot.lane.b32.xlu0 %v7014_v10, %s6163_s13 }
0x2c32   :  { %3938 = vrot.lane.b32.xlu1 %v7025_v11, %s6163_s13 }
0x2c35   :  { %3989 = vrot.lane.b32.xlu0 %v7027_v55, %s6163_s13 }
0x2ca8   :  { %v3829_v43 = vpop.xlane.xlu0 %3828 }
0x2ca9   :  { %6118 = vrcp.f32 %v3829_v43 }
0x2caa   :  { %v3832_v47 = vpop.xlane.xlu1 %3831 }
0x2cab   :  { %6120 = vrcp.f32 %v3832_v47 }
0x2cac   :  { %v3992_v59 = vpop.permute.xlu0 %3991 }
0x2cad   :  { %v3997_v61 = vsel %vm104_vm2, %v3992_v59, 0 }
0x2cae   :  { %v3941_v52 = vpop.permute.xlu1 %3940 }
0x2caf   :  { %v3946_v58 = vsel %vm104_vm2, %v3941_v52, 0 }
0x2cb0   :  { %v3990_v14 = vpop.permute.xlu0 %3989 }
0x2cb2   :  { %v3939_v62 = vpop.permute.xlu1 %3938 }
0x2cb3   :  { %v6119_v48 = vpop.eup %6118 }
0x2cb4   :  { %v3835_v49 = vmul.f32 %v6119_v48, %v6115_v44 }
0x2cb5   :  { %v6121_v51 = vpop.eup %6120 }
0x2cb6   :  { %v3836_v53 = vmul.f32 %v6121_v51, %v6117_v39  ;;  %v3837_v57 = vpack.c.bf16 %v3835_v49, %v3835_v49 }
0x2cb8   :  { %5772 = vmatmul.mubr.msk.bf16.vlgmr.msra.gmra.mrb[120].mxu0 %vm104_vm2, %v3837_v57  ;;  %v3838_v60 = vpack.c.bf16 %v3836_v53, %v3836_v53 }
0x2cb9   :  { %5782 = vmatpush3.bf16.xpose.msra.mxu0 %v3946_v58  ;;  %5783 = vmatprep.mubr.msk.bf16.mxu0 %vm6159_vm0, %v6158_v0 }
0x2cba   :  { %5778 = vmatmul.mubr.msk.bf16.vlgmr.msra.gmra.mrb[124].mxu1 %vm104_vm2, %v3838_v60  ;;  %5793 = vmatprep.subr.bf16.mxu0 %v6158_v0 }
0x2cbb   :  { %5788 = vmatpush3.bf16.xpose.msra.mxu1 %v3997_v61  ;;  %5789 = vmatprep.mubr.msk.bf16.mxu1 %vm6159_vm0, %v6158_v0 }
0x2cbc   :  { %5799 = vmatprep.subr.bf16.mxu1 %v6158_v0 }
0x2cc0   :  { %5784 = vmatmul.mubr.msk.bf16.vlgmr.msra.gmra.mrb[124].mxu0 %vm104_vm2, %v3939_v62 }
0x2cc1   :  { %5795 = vmatprep.mubr.msk.bf16.mxu0 %vm6159_vm0, %v6158_v0 }
0x2cc2   :  { %5790 = vmatmul.mubr.msk.bf16.vlgmr.msra.gmra.mrb[128].mxu1 %vm104_vm2, %v3990_v14 }
0x2cc3   :  { %5801 = vmatprep.mubr.msk.bf16.mxu1 %vm6159_vm0, %v6158_v0 }
0x2d8b   :  { %v7073_v7 = vpop.f32.mrb[120].mxu0 }
0x2d8c   :  { %v5773_v8 = vpop.f32.mrb[121].mxu0 }
0x2d8d   :  { %v3885_v9 = vpop.f32.mrb[122].mxu0  ;;  %v7075_v4 = vpop.f32.mrb[124].mxu1 }
0x2d8e   :  { %v5774_v34 = vpop.f32.mrb[123].mxu0  ;;  %v5779_v12 = vpop.f32.mrb[125].mxu1 }
0x2d8f   :  { %v3934_v15 = vpop.f32.mrb[126].mxu1 }
0x2d90   :  { %v5780_v16 = vpop.f32.mrb[127].mxu1 }
0x2d93   :  { %v3982_v31 = vpop.f32.mrb[124].mxu0 }
0x2d94   :  { %v4039_v36 = vmul.f32 0.35355338, %v3982_v31  ;;  %v5785_v37 = vpop.f32.mrb[125].mxu0 }
0x2d95   :  { %v3985_v19 = vpop.f32.mrb[126].mxu0  ;;  %v4033_v3 = vpop.f32.mrb[128].mxu1 }
0x2d96   :  { %v4040_v17 = vmul.f32 0.35355338, %v4033_v3  ;;  %v5786_v18 = vpop.f32.mrb[127].mxu0  ;;  %v5791_v50 = vpop.f32.mrb[129].mxu1  ;;  %v4041_v54 = vsel %vm104_vm2, %v4039_v36, -inf }
0x2d97   :  { %v4036_v21 = vpop.f32.mrb[130].mxu1  ;;  %4042 = vmax.xlane.f32.xlu1 %v4041_v54 }
0x2d98   :  { %v5792_v22 = vpop.f32.mrb[131].mxu1  ;;  %v4044_v23 = vsel %vm104_vm2, %v4040_v17, -inf }
0x2d99   :  { %4045 = vmax.xlane.f32.xlu0 %v4044_v23 }
0x2da8   :  { %4113 = vrot.lane.b32.xlu1 %v7014_v10, %s6162_s12 }
0x2daf   :  { %4065 = vrot.lane.b32.xlu0 %v7012_v13, %s6162_s12 }
0x2e24   :  { %v4043_v1 = vpop.xlane.xlu1 %4042 }
0x2e25   :  { %v4047_v20 = vsub.f32 %v4039_v36, %v4043_v1 }
0x2e26   :  { %v4046_v25 = vpop.xlane.xlu0 %4045 }
0x2e27   :  { %v4049_v56 = vmul.f32 1.442695, %v4047_v20  ;;  %v4048_v26 = vsub.f32 %v4040_v17, %v4046_v25 }
0x2e28   :  { %v4114_v27 = vpop.permute.xlu1 %4113 }
0x2e29   :  { %6122 = vpow2.f32 %v4049_v56  ;;  %v4051_v28 = vmul.f32 1.442695, %v4048_v26  ;;  %v4119_v24 = vsel %vm231_vm3, %v4114_v27, 0 }
0x2e2a   :  { %v4066_v2 = vpop.permute.xlu0 %4065  ;;  %5800 = vmatpush3.bf16.msra.mxu1 %v4119_v24 }
0x2e2b   :  { %6124 = vpow2.f32 %v4051_v28  ;;  %v4071_v29 = vsel %vm231_vm3, %v4066_v2, 0  ;;  %5811 = vmatprep.subr.bf16.mxu1 %v6158_v0 }
0x2e2c   :  { %5794 = vmatpush3.bf16.msra.mxu0 %v4071_v29 }
0x2e2d   :  { %5805 = vmatprep.subr.bf16.mxu0 %v6158_v0 }
0x2e33   :  { %v6123_v35 = vpop.eup %6122 }
0x2e34   :  { %v4053_v45 = vsel %vm104_vm2, %v6123_v35, 0.0 }
0x2e35   :  { %v6125_v42 = vpop.eup %6124  ;;  %4054 = vadd.xlane.f32.xlu0 %v4053_v45 }
0x2e36   :  { %v4056_v30 = vsel %vm104_vm2, %v6125_v42, 0.0 }
0x2e37   :  { %4057 = vadd.xlane.f32.xlu1 %v4056_v30 }
0x2e48   :  { %4163 = vrot.lane.b32.xlu1 %v7012_v13, %s6166_s16 }
0x2e4b   :  { %4213 = vrot.lane.b32.xlu0 %v7014_v10, %s6166_s16 }
0x2e4c   :  { %4161 = vrot.lane.b32.xlu1 %v7025_v11, %s6166_s16 }
0x2e4f   :  { %4211 = vrot.lane.b32.xlu0 %v7027_v55, %s6166_s16 }
0x2ec2   :  { %v4055_v32 = vpop.xlane.xlu0 %4054 }
0x2ec3   :  { %6126 = vrcp.f32 %v4055_v32 }
0x2ec4   :  { %v4058_v33 = vpop.xlane.xlu1 %4057 }
0x2ec5   :  { %6128 = vrcp.f32 %v4058_v33 }
0x2ec6   :  { %v4214_v63 = vpop.permute.xlu0 %4213 }
0x2ec7   :  { %v4219_v48 = vsel %vm104_vm2, %v4214_v63, 0 }
0x2ec8   :  { %v4164_v44 = vpop.permute.xlu1 %4163 }
0x2ec9   :  { %v4169_v43 = vsel %vm104_vm2, %v4164_v44, 0 }
0x2eca   :  { %v4212_v51 = vpop.permute.xlu0 %4211 }
0x2ecc   :  { %v4162_v49 = vpop.permute.xlu1 %4161 }
0x2ecd   :  { %v6127_v38 = vpop.eup %6126 }
0x2ece   :  { %v4061_v40 = vmul.f32 %v6127_v38, %v6123_v35 }
0x2ecf   :  { %v6129_v41 = vpop.eup %6128 }
0x2ed0   :  { %v4062_v46 = vmul.f32 %v6129_v41, %v6125_v42  ;;  %v4063_v39 = vpack.c.bf16 %v4061_v40, %v4061_v40 }
0x2ed2   :  { %5796 = vmatmul.mubr.msk.bf16.vlgmr.msra.gmra.mrb[128].mxu0 %vm104_vm2, %v4063_v39  ;;  %v4064_v47 = vpack.c.bf16 %v4062_v46, %v4062_v46 }
0x2ed3   :  { %5806 = vmatpush3.bf16.xpose.msra.mxu0 %v4169_v43  ;;  %5807 = vmatprep.mubr.msk.bf16.mxu0 %vm6159_vm0, %v6158_v0 }
0x2ed4   :  { %5802 = vmatmul.mubr.msk.bf16.vlgmr.msra.gmra.mrb[132].mxu1 %vm104_vm2, %v4064_v47  ;;  %5817 = vmatprep.subr.bf16.mxu0 %v6158_v0 }
0x2ed5   :  { %5812 = vmatpush3.bf16.xpose.msra.mxu1 %v4219_v48  ;;  %5813 = vmatprep.mubr.msk.bf16.mxu1 %vm6159_vm0, %v6158_v0 }
0x2ed6   :  { %5823 = vmatprep.subr.bf16.mxu1 %v6158_v0 }
0x2eda   :  { %5808 = vmatmul.mubr.msk.bf16.vlgmr.msra.gmra.mrb[132].mxu0 %vm104_vm2, %v4162_v49 }
0x2edb   :  { %5819 = vmatprep.mubr.msk.bf16.mxu0 %vm6159_vm0, %v6158_v0 }
0x2edc   :  { %5814 = vmatmul.mubr.msk.bf16.vlgmr.msra.gmra.mrb[136].mxu1 %vm104_vm2, %v4212_v51 }
0x2edd   :  { %5825 = vmatprep.mubr.msk.bf16.mxu1 %vm6159_vm0, %v6158_v0 }
0x2fa5   :  { %v7113_v52 = vpop.f32.mrb[128].mxu0 }
0x2fa6   :  { %v5797_v53 = vpop.f32.mrb[129].mxu0 }
0x2fa7   :  { %v4110_v57 = vpop.f32.mrb[130].mxu0  ;;  %v7115_v59 = vpop.f32.mrb[132].mxu1 }
0x2fa8   :  { %v5951_v58 = vpack.i.bf16 %v7115_v59, %v7113_v52  ;;  %v5798_v60 = vpop.f32.mrb[131].mxu0  ;;  %v5803_v61 = vpop.f32.mrb[133].mxu1 }
0x2fa9   :  { %v4158_v62 = vpop.f32.mrb[134].mxu1 }
0x2faa   :  { %v5804_v14 = vpop.f32.mrb[135].mxu1 }
0x2fad   :  { %v4205_v8 = vpop.f32.mrb[132].mxu0 }
0x2fae   :  { %v4261_v9 = vmul.f32 0.35355338, %v4205_v8  ;;  %v5809_v34 = vpop.f32.mrb[133].mxu0 }
0x2faf   :  { %v4208_v12 = vpop.f32.mrb[134].mxu0  ;;  %v4255_v15 = vpop.f32.mrb[136].mxu1 }
0x2fb0   :  { %v4262_v16 = vmul.f32 0.35355338, %v4255_v15  ;;  %v5810_v31 = vpop.f32.mrb[135].mxu0  ;;  %v5815_v36 = vpop.f32.mrb[137].mxu1  ;;  %v4263_v37 = vsel %vm104_vm2, %v4261_v9, -inf }
0x2fb1   :  { %v4258_v19 = vpop.f32.mrb[138].mxu1  ;;  %4264 = vmax.xlane.f32.xlu1 %v4263_v37 }
0x2fb2   :  { %v5816_v3 = vpop.f32.mrb[139].mxu1  ;;  %v4266_v17 = vsel %vm104_vm2, %v4262_v16, -inf }
0x2fb3   :  { %4267 = vmax.xlane.f32.xlu0 %v4266_v17 }
0x2fc2   :  { %4335 = vrot.lane.b32.xlu1 %v7014_v10, %s6165_s15 }
0x2fc9   :  { %4287 = vrot.lane.b32.xlu0 %v7012_v13, %s6165_s15 }
0x303e   :  { %v4265_v18 = vpop.xlane.xlu1 %4264 }
0x303f   :  { %v4269_v50 = vsub.f32 %v4261_v9, %v4265_v18 }
0x3040   :  { %v4268_v54 = vpop.xlane.xlu0 %4267 }
0x3041   :  { %v4271_v21 = vmul.f32 1.442695, %v4269_v50  ;;  %v4270_v22 = vsub.f32 %v4262_v16, %v4268_v54 }
0x3042   :  { %v4336_v23 = vpop.permute.xlu1 %4335 }
0x3043   :  { %6130 = vpow2.f32 %v4271_v21  ;;  %v4273_v1 = vmul.f32 1.442695, %v4270_v22  ;;  %v4341_v20 = vsel %vm231_vm3, %v4336_v23, 0  ;;  %v5992_v23 = vld [vmem:[%s7291_s2 + $0x10] ss:$24 sps:$4 sm:$0xff]  }
0x3044   :  { %v4288_v25 = vpop.permute.xlu0 %4287  ;;  %5824 = vmatpush3.bf16.msra.mxu1 %v4341_v20 }
0x3045   :  { %6132 = vpow2.f32 %v4273_v1  ;;  %v4293_v56 = vsel %vm231_vm3, %v4288_v25, 0  ;;  %5835 = vmatprep.subr.bf16.mxu1 %v6158_v0 }
0x3046   :  { %5818 = vmatpush3.bf16.msra.mxu0 %v4293_v56 }
0x3047   :  { %5829 = vmatprep.subr.bf16.mxu0 %v6158_v0 }
0x304d   :  { %v6131_v26 = vpop.eup %6130 }
0x304e   :  { %v4275_v27 = vsel %vm104_vm2, %v6131_v26, 0.0 }
0x304f   :  { %v6133_v28 = vpop.eup %6132  ;;  %4276 = vadd.xlane.f32.xlu0 %v4275_v27 }
0x3050   :  { %v4278_v24 = vsel %vm104_vm2, %v6133_v28, 0.0 }
0x3051   :  { %4279 = vadd.xlane.f32.xlu1 %v4278_v24 }
0x3062   :  { %4385 = vrot.lane.b32.xlu1 %v7012_v13, %s6169_s19 }
0x3065   :  { %4435 = vrot.lane.b32.xlu0 %v7014_v10, %s6169_s19 }
0x3066   :  { %4383 = vrot.lane.b32.xlu1 %v7025_v11, %s6169_s19 }
0x3069   :  { %4433 = vrot.lane.b32.xlu0 %v7027_v55, %s6169_s19 }
0x30dc   :  { %v4277_v2 = vpop.xlane.xlu0 %4276 }
0x30dd   :  { %6134 = vrcp.f32 %v4277_v2  ;;  %v5993_v2 = vld [vmem:[%s7291_s2 + $0x40] ss:$24 sps:$4 sm:$0xff]  }
0x30de   :  { %v4280_v29 = vpop.xlane.xlu1 %4279 }
0x30df   :  { %6136 = vrcp.f32 %v4280_v29 }
0x30e0   :  { %v4436_v38 = vpop.permute.xlu0 %4435 }
0x30e1   :  { %v4441_v11 = vsel %vm104_vm2, %v4436_v38, 0 }
0x30e2   :  { %v4386_v30 = vpop.permute.xlu1 %4385 }
0x30e3   :  { %v4391_v40 = vsel %vm104_vm2, %v4386_v30, 0 }
0x30e4   :  { %v4434_v44 = vpop.permute.xlu0 %4433 }
0x30e6   :  { %v4384_v55 = vpop.permute.xlu1 %4383 }
0x30e7   :  { %v6135_v35 = vpop.eup %6134 }
0x30e8   :  { %v4283_v45 = vmul.f32 %v6135_v35, %v6131_v26 }
0x30e9   :  { %v6137_v42 = vpop.eup %6136 }
0x30ea   :  { %v4284_v32 = vmul.f32 %v6137_v42, %v6133_v28  ;;  %v4285_v33 = vpack.c.bf16 %v4283_v45, %v4283_v45 }
0x30ec   :  { %5820 = vmatmul.mubr.msk.bf16.vlgmr.msra.gmra.mrb[136].mxu0 %vm104_vm2, %v4285_v33  ;;  %v4286_v41 = vpack.c.bf16 %v4284_v32, %v4284_v32 }
0x30ed   :  { %5830 = vmatpush3.bf16.xpose.msra.mxu0 %v4391_v40  ;;  %5831 = vmatprep.mubr.msk.bf16.mxu0 %vm6159_vm0, %v6158_v0 }
0x30ee   :  { %5826 = vmatmul.mubr.msk.bf16.vlgmr.msra.gmra.mrb[140].mxu1 %vm104_vm2, %v4286_v41  ;;  %5841 = vmatprep.subr.bf16.mxu0 %v6158_v0 }
0x30ef   :  { %5836 = vmatpush3.bf16.xpose.msra.mxu1 %v4441_v11  ;;  %5837 = vmatprep.mubr.msk.bf16.mxu1 %vm6159_vm0, %v6158_v0 }
0x30f0   :  { %5847 = vmatprep.subr.bf16.mxu1 %v6158_v0 }
0x30f4   :  { %5832 = vmatmul.mubr.msk.bf16.vlgmr.msra.gmra.mrb[140].mxu0 %vm104_vm2, %v4384_v55 }
0x30f5   :  { %5843 = vmatprep.mubr.msk.bf16.mxu0 %vm6159_vm0, %v6158_v0 }
0x30f6   :  { %5838 = vmatmul.mubr.msk.bf16.vlgmr.msra.gmra.mrb[144].mxu1 %vm104_vm2, %v4434_v44 }
0x30f7   :  { %5849 = vmatprep.mubr.msk.bf16.mxu1 %vm6159_vm0, %v6158_v0 }
0x31bf   :  { %v4329_v46 = vpop.f32.mrb[136].mxu0 }
0x31c0   :  { %v5821_v39 = vpop.f32.mrb[137].mxu0 }
0x31c1   :  { %v4332_v63 = vpop.f32.mrb[138].mxu0  ;;  %v4377_v43 = vpop.f32.mrb[140].mxu1 }
0x31c2   :  { %v5956_v47 = vpack.i.bf16 %v4377_v43, %v4329_v46  ;;  %v5822_v48 = vpop.f32.mrb[139].mxu0  ;;  %v5827_v49 = vpop.f32.mrb[141].mxu1 }
0x31c3   :  { %v4380_v51 = vpop.f32.mrb[142].mxu1 }
0x31c4   :  { %v5828_v53 = vpop.f32.mrb[143].mxu1 }
0x31c7   :  { %v4427_v57 = vpop.f32.mrb[140].mxu0 }
0x31c8   :  { %v4483_v60 = vmul.f32 0.35355338, %v4427_v57  ;;  %v5833_v61 = vpop.f32.mrb[141].mxu0 }
0x31c9   :  { %v4430_v62 = vpop.f32.mrb[142].mxu0  ;;  %v4477_v14 = vpop.f32.mrb[144].mxu1 }
0x31ca   :  { %v4484_v8 = vmul.f32 0.35355338, %v4477_v14  ;;  %v5834_v9 = vpop.f32.mrb[143].mxu0  ;;  %v5839_v34 = vpop.f32.mrb[145].mxu1  ;;  %v4485_v12 = vsel %vm104_vm2, %v4483_v60, -inf }
0x31cb   :  { %v4480_v15 = vpop.f32.mrb[146].mxu1  ;;  %4486 = vmax.xlane.f32.xlu1 %v4485_v12 }
0x31cc   :  { %v5840_v16 = vpop.f32.mrb[147].mxu1  ;;  %v4488_v31 = vsel %vm104_vm2, %v4484_v8, -inf }
0x31cd   :  { %4489 = vmax.xlane.f32.xlu0 %v4488_v31 }
0x3258   :  { %v4487_v36 = vpop.xlane.xlu1 %4486 }
0x3259   :  { %v4491_v37 = vsub.f32 %v4483_v60, %v4487_v36 }
0x325a   :  { %v4490_v19 = vpop.xlane.xlu0 %4489 }
0x325b   :  { %v4493_v3 = vmul.f32 1.442695, %v4491_v37  ;;  %v4492_v17 = vsub.f32 %v4484_v8, %v4490_v19  ;;  %v5994_v37 = vld [vmem:[%s7291_s2 + $0x10] ss:$24 sps:$4 sm:$0xff]  }
0x325d   :  { %6138 = vpow2.f32 %v4493_v3  ;;  %v4495_v18 = vmul.f32 1.442695, %v4492_v17 }
0x325f   :  { %6140 = vpow2.f32 %v4495_v18 }
0x3267   :  { %v6139_v50 = vpop.eup %6138 }
0x3268   :  { %v4497_v54 = vsel %vm104_vm2, %v6139_v50, 0.0 }
0x3269   :  { %v6141_v21 = vpop.eup %6140  ;;  %4498 = vadd.xlane.f32.xlu0 %v4497_v54 }
0x326a   :  { %v4500_v22 = vsel %vm104_vm2, %v6141_v21, 0.0 }
0x326b   :  { %4501 = vadd.xlane.f32.xlu1 %v4500_v22 }
0x327c   :  { %4557 = vrot.lane.b32.xlu1 %v7014_v10, %s6168_s18 }
0x327f   :  { %4509 = vrot.lane.b32.xlu0 %v7012_v13, %s6168_s18 }
0x3280   :  { %4650 = vrot.lane.b32.xlu1 %v5992_v23, %s6160_s0  ;;  %v5995_v23 = vld [vmem:[%s7291_s2 + $0x40] ss:$24 sps:$4 sm:$0xff]  }
0x3283   :  { %5952 = vrot.lane.b32.xlu0 %v5951_v58, %s6172_s22 }
0x3284   :  { %5957 = vrot.lane.b32.xlu1 %v5956_v47, %s6173_s23 }
0x3288   :  { %4652 = vrot.lane.b32.xlu1 %v5993_v2, %s6160_s0 }
0x32f6   :  { %v4499_v1 = vpop.xlane.xlu0 %4498 }
0x32f7   :  { %6142 = vrcp.f32 %v4499_v1 }
0x32f8   :  { %v4502_v20 = vpop.xlane.xlu1 %4501 }
0x32f9   :  { %6144 = vrcp.f32 %v4502_v20  ;;  %v5996_v20 = vld [vmem:[%s7296_s3] sm:$0xff]  }
0x32fa   :  { %v4510_v10 = vpop.permute.xlu0 %4509 }
0x32fb   :  { %v4515_v25 = vsel %vm231_vm3, %v4510_v10, 0  ;;  %v5998_v10 = vld [vmem:[%s7296_s3 + $0x10] sm:$0xff]  }
0x32fc   :  { %5842 = vmatpush3.bf16.msra.mxu0 %v4515_v25  ;;  %v4558_v56 = vpop.permute.xlu1 %4557  ;;  %v5997_v25 = vld [vmem:[%s7296_s3 + $0x8] sm:$0xff]  }
0x32fd   :  { %v4563_v13 = vsel %vm231_vm3, %v4558_v56, 0  ;;  %5853 = vmatprep.subr.bf16.mxu0 %v6158_v0  ;;  %v5999_v56 = vld [vmem:[%s7296_s3 + $0x18] sm:$0xff]  }
0x32fe   :  { %5848 = vmatpush3.bf16.msra.mxu1 %v4563_v13  ;;  %v5953_v55 = vpop.permute.xlu0 %5952 }
0x32ff   :  { %5861 = vmatprep.subr.bf16.mxu1 %v6158_v0  ;;  %v5955_v44 = vunpack.i.h.bf16 %v5953_v55  ;;  %v5954_v46 = vunpack.i.l.bf16 %v5953_v55 }
0x3300   :  { %v4651_v28 = vpop.permute.xlu1 %4650 }
0x3301   :  { %v6143_v52 = vpop.eup %6142  ;;  %v4630_v47 = vsel %vm104_vm2, %v7075_v4, %v5955_v44  ;;  %v4629_v48 = vsel %vm104_vm2, %v7073_v7, %v5954_v46  ;;  %v5176_v7 = vld [vmem:[%s7294_s4 + $0xc] ss:$0 sm:$0xff]  ;;  %v5182_v46 = vld [vmem:[%s7293_s5 + $0x5] ss:$0 sm:$0xff] }
0x3302   :  { %v4505_v59 = vmul.f32 %v6143_v52, %v6139_v50 }
0x3303   :  { %v6145_v58 = vpop.eup %6144 }
0x3304   :  { %v4506_v26 = vmul.f32 %v6145_v58, %v6141_v21  ;;  %v4507_v27 = vpack.c.bf16 %v4505_v59, %v4505_v59  ;;  %v5958_v29 = vpop.permute.xlu1 %5957 }
0x3305   :  { %v5960_v39 = vunpack.i.h.bf16 %v5958_v29  ;;  %v5959_v63 = vunpack.i.l.bf16 %v5958_v29 }
0x3306   :  { %5844 = vmatmul.mubr.msk.bf16.vlgmr.msra.gmra.mrb[144].mxu0 %vm104_vm2, %v4507_v27  ;;  %v4508_v24 = vpack.c.bf16 %v4506_v26, %v4506_v26 }
0x3307   :  { %5854 = vmatpush3.bf16.msra.mxu0 %v4651_v28  ;;  %5857 = vmatprep.mubr.msk.bf16.mxu0 %vm6159_vm0, %v6158_v0  ;;  %v4632_v53 = vsel %vm1015_vm4, %v4630_v47, %v5960_v39  ;;  %v4631_v57 = vsel %vm1015_vm4, %v4629_v48, %v5959_v63 }
0x3308   :  { %5850 = vmatmul.mubr.msk.bf16.vlgmr.msra.gmra.mrb[148].mxu1 %vm104_vm2, %v4508_v24  ;;  %5855 = vmatprep.subr.bf16.mxu0 %v6158_v0  ;;  %v4653_v35 = vpop.permute.xlu1 %4652 }
0x3309   :  { %5865 = vmatprep.mubr.msk.bf16.mxu1 %vm6159_vm0, %v6158_v0 }
0x330b   :  { %5856 = vmatpush3.bf16.msra.mxu0 %v4653_v35  ;;  %v5180_v35 = vld [vmem:[%s7294_s4 + $0x10] ss:$0 sm:$0xff] }
0x330c   :  { %5869 = vmatprep.subr.bf16.mxu0 %v6158_v0 }
0x33d9   :  { %v4551_v45 = vpop.f32.mrb[144].mxu0 }
0x33da   :  { %v5845_v42 = vpop.f32.mrb[145].mxu0 }
0x33db   :  { %v4554_v30 = vpop.f32.mrb[146].mxu0  ;;  %v4599_v32 = vpop.f32.mrb[148].mxu1 }
0x33dc   :  { %v5961_v33 = vpack.i.bf16 %v4599_v32, %v4551_v45  ;;  %v5846_v38 = vpop.f32.mrb[147].mxu0  ;;  %v5851_v40 = vpop.f32.mrb[149].mxu1 }
0x33dd   :  { %v4602_v41 = vpop.f32.mrb[150].mxu1 }
0x33de   :  { %v5852_v11 = vpop.f32.mrb[151].mxu1  ;;  %5962 = vrot.lane.b32.xlu0 %v5961_v33, %s6174_s24  ;;  %v5181_v33 = vld [vmem:[%s7294_s4 + $0x11] ss:$0 sm:$0xff] }
0x3450   :  { %v5963_v43 = vpop.permute.xlu0 %5962 }
0x3451   :  { %v5965_v49 = vunpack.i.h.bf16 %v5963_v43  ;;  %v5964_v51 = vunpack.i.l.bf16 %v5963_v43 }
0x3453   :  { %v4634_v60 = vsel %vm1018_vm5, %v4632_v53, %v5965_v49  ;;  %v4633_v61 = vsel %vm1018_vm5, %v4631_v57, %v5964_v51 }
0x3454   :  { %v4635_v62 = vpack.c.bf16 %v4634_v60, %v4633_v61  ;;  %v5186_v60 = vld [vmem:[%s7294_s4 + $0xd] ss:$0 sm:$0xff] }
0x3456   :  { %5858 = vmatmul.mubr.msk.bf16.vlgmr.msra.gmra.mrb[148].mxu0 %vm53_vm1, %v4635_v62 }
0x3457   :  { %5877 = vmatprep.mubr.msk.bf16.mxu0 %vm6159_vm0, %v6158_v0 }
0x3529   :  { %v4693_v4 = vpop.f32.mrb[148].mxu0 }
0x352a   :  { %v4694_v14 = vadd.f32 %v5176_v7, %v4693_v4  ;;  %v5859_v8 = vpop.f32.mrb[149].mxu0 }
0x352b   :  { %v4696_v9 = vpop.f32.mrb[150].mxu0 }
0x352c   :  { %v4700_v34 = vadd.f32 %v4694_v14, %v7000_v5  ;;  %v4697_v12 = vadd.f32 %v5176_v7, %v4696_v9  ;;  %v5860_v15 = vpop.f32.mrb[151].mxu0 }
0x352e   :  { %v4701_v16 = vadd.f32 %v4697_v12, %v7002_v6  ;;  %v4704_v31 = vsel %vm53_vm1, %v4700_v34, 0.0 }
0x352f   :  { %4705 = vadd.xlane.f32.xlu0 %v4704_v31 }
0x3530   :  { %v4707_v36 = vsel %vm53_vm1, %v4701_v16, 0.0 }
0x3531   :  { %4708 = vadd.xlane.f32.xlu1 %v4707_v36 }
0x3542   :  { %4762 = vrot.lane.b32.xlu1 %v5994_v37, %s6161_s11 }
0x3546   :  { %4848 = vrot.lane.b32.xlu1 %v5996_v20, %s6160_s0 }
0x354a   :  { %4850 = vrot.lane.b32.xlu1 %v5997_v25, %s6160_s0 }
0x354e   :  { %4854 = vrot.lane.b32.xlu1 %v5999_v56, %s6160_s0  ;;  %v5193_v56 = vld [vmem:[%s7294_s4 + $0x13] ss:$0 sm:$0xff] }
0x35bc   :  { %v4706_v19 = vpop.xlane.xlu0 %4705 }
0x35bd   :  { %v4710_v3 = vmul.f32 0.03125, %v4706_v19 }
0x35be   :  { %v4709_v17 = vpop.xlane.xlu1 %4708 }
0x35bf   :  { %v4712_v5 = vsub.f32 %v4700_v34, %v4710_v3  ;;  %v4711_v18 = vmul.f32 0.03125, %v4709_v17 }
0x35c1   :  { %v4713_v50 = vsub.f32 %v4701_v16, %v4711_v18  ;;  %v4714_v54 = vmul.f32 %v4712_v5, %v4712_v5 }
0x35c2   :  { %v4763_v1 = vpop.permute.xlu1 %4762 }
0x35c3   :  { %v4716_v6 = vsel %vm53_vm1, %v4714_v54, 0.0  ;;  %v4715_v21 = vmul.f32 %v4713_v50, %v4713_v50  ;;  %5862 = vmatpush3.bf16.msra.mxu1 %v4763_v1 }
0x35c4   :  { %4717 = vadd.xlane.f32.xlu0 %v4716_v6  ;;  %5863 = vmatprep.subr.bf16.mxu1 %v6158_v0 }
0x35c5   :  { %v4719_v22 = vsel %vm53_vm1, %v4715_v21, 0.0 }
0x35c6   :  { %v4849_v29 = vpop.permute.xlu1 %4848 }
0x35c7   :  { %5870 = vmatpush3.bf16.msra.mxu0 %v4849_v29 }
0x35c8   :  { %4720 = vadd.xlane.f32.xlu0 %v4719_v22  ;;  %5871 = vmatprep.subr.bf16.mxu0 %v6158_v0 }
0x35ca   :  { %v4851_v32 = vpop.permute.xlu1 %4850 }
0x35cb   :  { %5872 = vmatpush3.bf16.msra.mxu0 %v4851_v32 }
0x35cc   :  { %5873 = vmatprep.subr.bf16.mxu0 %v6158_v0 }
0x35ce   :  { %v4855_v44 = vpop.permute.xlu1 %4854 }
0x35de   :  { %4764 = vrot.lane.b32.xlu0 %v5995_v23, %s6161_s11 }
0x35e2   :  { %4852 = vrot.lane.b32.xlu0 %v5998_v10, %s6160_s0  ;;  %v5192_v10 = vld [vmem:[%s7294_s4 + $0x12] ss:$0 sm:$0xff] }
0x3651   :  { %v4718_v13 = vpop.xlane.xlu0 %4717 }
0x3652   :  { %v4722_v52 = vmul.f32 0.03125, %v4718_v13 }
0x3654   :  { %v4724_v59 = vadd.f32 1e-05, %v4722_v52 }
0x3655   :  { %v4721_v58 = vpop.xlane.xlu0 %4720 }
0x3656   :  { %6146 = vrsqrt.f32 %v4724_v59  ;;  %v4723_v26 = vmul.f32 0.03125, %v4721_v58 }
0x3658   :  { %v4725_v27 = vadd.f32 1e-05, %v4723_v26 }
0x3659   :  { %v4765_v28 = vpop.permute.xlu0 %4764 }
0x365a   :  { %6148 = vrsqrt.f32 %v4725_v27  ;;  %5864 = vmatpush3.bf16.msra.mxu1 %v4765_v28 }
0x365b   :  { %5881 = vmatprep.subr.bf16.mxu1 %v6158_v0 }
0x365d   :  { %v4853_v55 = vpop.permute.xlu0 %4852 }
0x365e   :  { %5874 = vmatpush3.bf16.msra.mxu0 %v4853_v55 }
0x365f   :  { %5875 = vmatprep.subr.bf16.mxu0 %v6158_v0 }
0x3660   :  { %v6147_v24 = vpop.eup %6146 }
0x3661   :  { %v4728_v2 = vmul.f32 %v6147_v24, %v4712_v5 }
0x3662   :  { %5876 = vmatpush3.bf16.msra.mxu0 %v4855_v44 }
0x3663   :  { %v4734_v42 = vmul.f32 %v5180_v35, %v4728_v2 }
0x3664   :  { %v6149_v45 = vpop.eup %6148 }
0x3665   :  { %v4729_v30 = vmul.f32 %v6149_v45, %v4713_v50  ;;  %v4740_v40 = vadd.f32 %v5181_v33, %v4734_v42 }
0x3667   :  { %v4735_v38 = vmul.f32 %v5180_v35, %v4729_v30 }
0x3669   :  { %v4741_v41 = vadd.f32 %v5181_v33, %v4735_v38 }
0x366b   :  { %v4746_v11 = vpack.c.bf16 %v4741_v41, %v4740_v40 }
0x366d   :  { %5866 = vmatmul.mubr.msk.bf16.vlgmr.msra.gmra.mrb[152].mxu1 %vm53_vm1, %v4746_v11  ;;  %v6001_v11 = vld [vmem:[%s7291_s2 + $0x44] ss:$24 sps:$4 sm:$0xff]  }
0x366e   :  { %5885 = vmatprep.mubr.msk.bf16.mxu1 %vm6159_vm0, %v6158_v0 }
0x3740   :  { %v4805_v39 = vpop.f32.mrb[152].mxu1 }
0x3741   :  { %v4806_v63 = vadd.f32 %v5182_v46, %v4805_v39  ;;  %v5867_v43 = vpop.f32.mrb[153].mxu1 }
0x3742   :  { %v4808_v47 = vpop.f32.mrb[154].mxu1 }
0x3743   :  { %v4809_v48 = vadd.f32 %v5182_v46, %v4808_v47  ;;  %v5868_v49 = vpop.f32.mrb[155].mxu1  ;;  %v4812_v51 = vmax.f32 %v4806_v63, 0.0 }
0x3744   :  { %v5194_v49 = vld [vmem:[%s7294_s4 + $0x14] ss:$0 sm:$0xff] }
0x3745   :  { %v4813_v53 = vmax.f32 %v4809_v48, 0.0 }
0x3747   :  { %v4822_v57 = vpack.c.bf16 %v4813_v53, %v4812_v51 }
0x3749   :  { %5878 = vmatmul.mubr.msk.bf16.vlgmr.msra.gmra.mrb[152].mxu0 %vm2363_vm6, %v4822_v57 }
0x381c   :  { %v4897_v61 = vpop.f32.mrb[152].mxu0 }
0x381d   :  { %v4898_v62 = vadd.f32 %v5186_v60, %v4897_v61  ;;  %v5879_v7 = vpop.f32.mrb[153].mxu0 }
0x381e   :  { %v4900_v4 = vpop.f32.mrb[154].mxu0 }
0x381f   :  { %v4904_v14 = vadd.f32 %v4898_v62, %v4740_v40  ;;  %v4901_v8 = vadd.f32 %v5186_v60, %v4900_v4  ;;  %v5880_v9 = vpop.f32.mrb[155].mxu0  ;;  %v5196_v4 = vld [vmem:[%s7297_s6] ss:$0 sm:$0xff] }
0x3821   :  { %v4905_v34 = vadd.f32 %v4901_v8, %v4741_v41  ;;  %v4908_v12 = vsel %vm53_vm1, %v4904_v14, 0.0  ;;  %v6000_v41 = vld [vmem:[%s7291_s2 + $0x14] ss:$24 sps:$4 sm:$0xff]  }
0x3822   :  { %4909 = vadd.xlane.f32.xlu0 %v4908_v12  ;;  %5882 = vmatpush3.bf16.msra.mxu1 %v6000_v41 }
0x3823   :  { %v4911_v15 = vsel %vm53_vm1, %v4905_v34, 0.0  ;;  %5883 = vmatprep.subr.bf16.mxu1 %v6158_v0  ;;  %v5195_v0 = vld [vmem:[%s7294_s4 + $0x15] ss:$0 sm:$0xff] }
0x3824   :  { %4912 = vadd.xlane.f32.xlu1 %v4911_v15 }
0x3826   :  { %5884 = vmatpush3.bf16.msra.mxu1 %v6001_v11 }
0x38af   :  { %v4910_v16 = vpop.xlane.xlu0 %4909 }
0x38b0   :  { %v4914_v31 = vmul.f32 0.03125, %v4910_v16 }
0x38b1   :  { %v4913_v36 = vpop.xlane.xlu1 %4912 }
0x38b2   :  { %v4916_v37 = vsub.f32 %v4904_v14, %v4914_v31  ;;  %v4915_v19 = vmul.f32 0.03125, %v4913_v36 }
0x38b4   :  { %v4917_v3 = vsub.f32 %v4905_v34, %v4915_v19  ;;  %v4918_v17 = vmul.f32 %v4916_v37, %v4916_v37 }
0x38b6   :  { %v4920_v5 = vsel %vm53_vm1, %v4918_v17, 0.0  ;;  %v4919_v18 = vmul.f32 %v4917_v3, %v4917_v3 }
0x38b7   :  { %4921 = vadd.xlane.f32.xlu0 %v4920_v5 }
0x38b8   :  { %v4923_v50 = vsel %vm53_vm1, %v4919_v18, 0.0 }
0x38bb   :  { %4924 = vadd.xlane.f32.xlu0 %v4923_v50 }
0x3944   :  { %v4922_v54 = vpop.xlane.xlu0 %4921 }
0x3945   :  { %v4926_v6 = vmul.f32 0.03125, %v4922_v54 }
0x3947   :  { %v4928_v21 = vadd.f32 1e-05, %v4926_v6 }
0x3948   :  { %v4925_v22 = vpop.xlane.xlu0 %4924 }
0x3949   :  { %6150 = vrsqrt.f32 %v4928_v21  ;;  %v4927_v23 = vmul.f32 0.03125, %v4925_v22 }
0x394b   :  { %v4929_v1 = vadd.f32 1e-05, %v4927_v23 }
0x394d   :  { %6152 = vrsqrt.f32 %v4929_v1 }
0x3953   :  { %v6151_v20 = vpop.eup %6150 }
0x3954   :  { %v4932_v25 = vmul.f32 %v6151_v20, %v4916_v37 }
0x3956   :  { %v4938_v13 = vmul.f32 %v5192_v10, %v4932_v25 }
0x3957   :  { %v6153_v52 = vpop.eup %6152 }
0x3958   :  { %v4944_v59 = vadd.f32 %v5193_v56, %v4938_v13  ;;  %v4933_v58 = vmul.f32 %v6153_v52, %v4917_v3 }
0x395a   :  { %v4948_v26 = vsel %vm53_vm1, %v4944_v59, 0.0  ;;  %v4939_v27 = vmul.f32 %v5192_v10, %v4933_v58 }
0x395b   :  { %4949 = vadd.xlane.f32.xlu1 %v4948_v26 }
0x395c   :  { %v4945_v28 = vadd.f32 %v5193_v56, %v4939_v27 }
0x395e   :  { %v4951_v24 = vsel %vm53_vm1, %v4945_v28, 0.0 }
0x395f   :  { %4952 = vadd.xlane.f32.xlu0 %v4951_v24 }
0x39e8   :  { %v4950_v2 = vpop.xlane.xlu1 %4949 }
0x39e9   :  { %v4954_v29 = vmul.f32 0.03125, %v4950_v2 }
0x39eb   :  { %v4956_v35 = vsub.f32 %v4944_v59, %v4954_v29 }
0x39ec   :  { %v4953_v45 = vpop.xlane.xlu0 %4952 }
0x39ed   :  { %v4955_v42 = vmul.f32 0.03125, %v4953_v45  ;;  %v4958_v30 = vmul.f32 %v4956_v35, %v4956_v35 }
0x39ef   :  { %v4957_v32 = vsub.f32 %v4945_v28, %v4955_v42  ;;  %v4960_v33 = vsel %vm53_vm1, %v4958_v30, 0.0 }
0x39f0   :  { %4961 = vadd.xlane.f32.xlu1 %v4960_v33 }
0x39f1   :  { %v4959_v38 = vmul.f32 %v4957_v32, %v4957_v32 }
0x39f3   :  { %v4963_v40 = vsel %vm53_vm1, %v4959_v38, 0.0 }
0x39f4   :  { %4964 = vadd.xlane.f32.xlu0 %v4963_v40 }
0x3a7d   :  { %v4962_v55 = vpop.xlane.xlu1 %4961 }
0x3a7e   :  { %v4966_v44 = vmul.f32 0.03125, %v4962_v55 }
0x3a80   :  { %v4968_v46 = vadd.f32 1e-05, %v4966_v44 }
0x3a81   :  { %v4965_v39 = vpop.xlane.xlu0 %4964 }
0x3a82   :  { %6154 = vrsqrt.f32 %v4968_v46  ;;  %v4967_v63 = vmul.f32 0.03125, %v4965_v39 }
0x3a84   :  { %v4969_v43 = vadd.f32 1e-05, %v4967_v63 }
0x3a86   :  { %6156 = vrsqrt.f32 %v4969_v43 }
0x3a8c   :  { %v6155_v47 = vpop.eup %6154 }
0x3a8d   :  { %v4972_v48 = vmul.f32 %v6155_v47, %v4956_v35 }
0x3a8f   :  { %v4978_v53 = vmul.f32 %v5194_v49, %v4972_v48 }
0x3a90   :  { %v6157_v51 = vpop.eup %6156 }
0x3a91   :  { %v4973_v57 = vmul.f32 %v6157_v51, %v4957_v32  ;;  %v4984_v61 = vadd.f32 %v5195_v0, %v4978_v53 }
0x3a93   :  { %v4979_v60 = vmul.f32 %v5194_v49, %v4973_v57 }
0x3a95   :  { %v4985_v62 = vadd.f32 %v5195_v0, %v4979_v60 }
0x3a97   :  { %v4990_v7 = vpack.c.bf16 %v4985_v62, %v4984_v61 }
0x3a99   :  { %5886 = vmatmul.mubr.msk.bf16.vlgmr.msra.gmra.mrb[156].mxu1 %vm53_vm1, %v4990_v7 }
0x3b6c   :  { %v5047_v14 = vpop.f32.mrb[156].mxu1 }
0x3b6d   :  { %v5048_v8 = vadd.f32 %v5196_v4, %v5047_v14  ;;  %v5887_v9 = vpop.f32.mrb[157].mxu1 }
0x3b6e   :  { %v5050_v34 = vpop.f32.mrb[158].mxu1 }
0x3b6f   :  { %5054 = vst [vmem:[%s7298_s7] sm:$0xff] %v5048_v8  ;;  %v5051_v12 = vadd.f32 %v5196_v4, %v5050_v34  ;;  %v5888_v15 = vpop.f32.mrb[159].mxu1 }
0x3b71   :  { %5055 = vst [vmem:[%s7298_s7 + $0x8] sm:$0xff] %v5051_v12 }

</bundles_post_ra>
